<compile_context>
chip_gen: v5e
topology: v5e:2x2
jax: 0.10.0
libtpu: 0.0.40
codegen_flags: <defaults>
</compile_context>

<pallas_src>
import functools

import jax
import jax.numpy as jnp
from jax import lax
from jax.experimental import pallas as pl
from jax.experimental.pallas import tpu as pltpu

_NEG = -1e30  # f32 logit value for padded tag lanes (exp underflows to 0)


def _round_up(x, m):
    return (x + m - 1) // m * m


def make_tagger_kernel(seq_len, batch_chunk, hidden_p, num_layers):
    Hp = hidden_p
    B = batch_chunk

    def kernel(*refs):
        # refs = [embeds, (w_ih_T, w_hh_T, b) * L, w_out_T, b_out,
        #         out, xproj_scratch, hseq_scratch]
        embeds_ref = refs[0]                       # (seq*B, Ep)   bf16
        layer_refs = refs[1:1 + 3 * num_layers]
        w_out_ref = refs[1 + 3 * num_layers]       # (Hp, Tp)      bf16
        b_out_ref = refs[2 + 3 * num_layers]       # (1, Tp)       f32
        out_ref = refs[3 + 3 * num_layers]         # (seq*B, Tp)   f32
        xproj_ref = refs[4 + 3 * num_layers]       # (seq*B, 4Hp)  f32 scratch
        hseq_ref = refs[5 + 3 * num_layers]        # (seq*B, Hp)   f32 scratch

        for l in range(num_layers):
            w_ih = layer_refs[3 * l][...]          # bf16 (in_p, 4Hp)
            w_hh = layer_refs[3 * l + 1][...]      # bf16 (Hp, 4Hp) -- hoisted
            b = layer_refs[3 * l + 2][...]         # f32  (1, 4Hp) == b_ih+b_hh

            # Batched input projection for ALL timesteps / sentences at once
            # (bias fused).  Only h @ W_hh remains on the serial path.
            xin = (embeds_ref[...] if l == 0
                   else hseq_ref[...].astype(jnp.bfloat16))
            xproj_ref[...] = (
                jnp.dot(xin, w_ih, preferred_element_type=jnp.float32) + b)

            def step(t, carry):
                h, c = carry                       # f32 (B, Hp)
                row = pl.multiple_of(t * B, B)     # sublane-aligned (B == 8)
                z = xproj_ref[pl.ds(row, B), :] + jnp.dot(
                    h.astype(jnp.bfloat16), w_hh,
                    preferred_element_type=jnp.float32)       # (B, 4Hp) f32
                # sigmoid(x) = 0.5*tanh(0.5*x)+0.5: one EUP push per gate.
                i_g = 0.5 * jnp.tanh(0.5 * z[:, 0 * Hp:1 * Hp]) + 0.5
                f_g = 0.5 * jnp.tanh(0.5 * z[:, 1 * Hp:2 * Hp]) + 0.5
                g_g = jnp.tanh(z[:, 2 * Hp:3 * Hp])
                o_g = 0.5 * jnp.tanh(0.5 * z[:, 3 * Hp:4 * Hp]) + 0.5
                c = f_g * c + i_g * g_g
                h = o_g * jnp.tanh(c)
                hseq_ref[pl.ds(row, B), :] = h
                return (h, c)

            h0 = jnp.zeros((B, Hp), jnp.float32)   # must stay zero (padding)
            c0 = jnp.zeros((B, Hp), jnp.float32)
            lax.fori_loop(0, seq_len, step, (h0, c0),
                          unroll=True if seq_len <= 16 else 8)

        # Batched hidden2tag + log_softmax over the whole chunk; one dense
        # lane-aligned store of the full (seq*B, Tp) block.
        hq = hseq_ref[...].astype(jnp.bfloat16)
        logits = (jnp.dot(hq, w_out_ref[...],
                          preferred_element_type=jnp.float32)
                  + b_out_ref[...])                            # f32 (seq*B, Tp)
        m = jnp.max(logits, axis=1, keepdims=True)
        lse = m + jnp.log(jnp.sum(jnp.exp(logits - m), axis=1, keepdims=True))
        out_ref[...] = logits - lse

    return kernel


def _pad_gate_cols(w2d, H, Hp):
    """(rows, 4H) -> (rows, 4Hp): zero-pad each of the 4 gate blocks to Hp."""
    rows = w2d.shape[0]
    w = w2d.reshape(rows, 4, H)
    w = jnp.pad(w, ((0, 0), (0, 0), (0, Hp - H)))
    return w.reshape(rows, 4 * Hp)


def pack_params(lstm_raw, w_out, b_out, embedding_dim, hidden_dim, target_size):
    """Transpose + lane-pad + bf16-cast PyTorch-layout params for the kernel.

    lstm_raw: list of (w_ih (4H, in), w_hh (4H, H), b_ih (4H,), b_hh (4H,)).
    Returns (w_ih_T, w_hh_T, b) * L + (w_out_T, b_out_row):
      * hidden dim padded to Hp = round_up(H, 128), tag dim to Tp, layer-0
        input dim to Ep = round_up(E, 128);
      * weights stored bf16 (MXU-native), biases kept f32;
      * padded gate-bias lanes are zero (required for the padded-lane
        invariant) and padded logits are forced to -1e30.
    """
    E, H, T = embedding_dim, hidden_dim, target_size
    Ep, Hp, Tp = _round_up(E, 128), _round_up(H, 128), _round_up(T, 128)

    packed = []
    for l, (w_ih, w_hh, b_ih, b_hh) in enumerate(lstm_raw):
        in_dim = w_ih.shape[1]
        in_p = Ep if l == 0 else Hp
        w_ih_T = jnp.pad(w_ih.T, ((0, in_p - in_dim), (0, 0)))    # (in_p, 4H)
        w_ih_T = _pad_gate_cols(w_ih_T, H, Hp).astype(jnp.bfloat16)

        w_hh_T = jnp.pad(w_hh.T, ((0, Hp - H), (0, 0)))           # (Hp, 4H)
        w_hh_T = _pad_gate_cols(w_hh_T, H, Hp).astype(jnp.bfloat16)

        b = _pad_gate_cols((b_ih + b_hh)[None, :], H, Hp)         # f32 (1,4Hp)
        packed += [w_ih_T, w_hh_T, b]

    w_out_T = jnp.pad(w_out.T, ((0, Hp - H), (0, Tp - T))).astype(jnp.bfloat16)
    b_out_row = jnp.pad(b_out[None, :], ((0, 0), (0, Tp - T)),
                        constant_values=_NEG)                     # f32 (1, Tp)
    packed += [w_out_T, b_out_row]
    return tuple(packed)


def _vmem_limit_bytes(resident_bytes):
    """Size-derived VMEM limit, clamped to ~85% of physical (gen-aware)."""
    try:
        phys = int(pltpu.get_tpu_info().vmem_capacity_bytes)
    except Exception:                      # noqa: BLE001 - conservative fallback
        phys = 64 * 1024 * 1024
    want = int(resident_bytes) + (8 << 20)
    return max(32 << 20, min(want, int(phys * 0.85)))


@functools.partial(jax.jit, static_argnames=("target_size", "batch_chunk"))
def tagger_forward(sentences, emb_table, packed_params, target_size,
                   batch_chunk=8):
    """sentences: (B, seq) int32 token ids of B independent same-length
    sentences (each handled exactly like MyLSTMTagger.forward).
    Returns (B, seq, target_size) log-probs."""
    B, seq_len = sentences.shape
    embeds = emb_table[sentences]                 # glue gather == nn.Embedding
    E = embeds.shape[-1]

    layer_args = packed_params[:-2]
    w_out_T, b_out_row = packed_params[-2:]
    num_layers = len(layer_args) // 3
    Ep = layer_args[0].shape[0]                   # padded layer-0 input dim
    Hp = layer_args[1].shape[0]                   # padded hidden dim
    Tp = w_out_T.shape[1]                         # padded tag dim

    Bc = batch_chunk
    assert B % Bc == 0, "batch must be a multiple of batch_chunk"
    G = B // Bc

    # Lane-pad E, cast bf16, arrange time-major within each batch chunk:
    # row index inside a chunk = t * Bc + b.
    embeds = jnp.pad(embeds, ((0, 0), (0, 0), (0, Ep - E))).astype(jnp.bfloat16)
    embeds = (embeds.reshape(G, Bc, seq_len, Ep)
              .transpose(0, 2, 1, 3)
              .reshape(G, seq_len * Bc, Ep))

    weight_args = tuple(layer_args) + (w_out_T, b_out_row)
    kernel = make_tagger_kernel(seq_len, Bc, Hp, num_layers)

    in_specs = [pl.BlockSpec((None, seq_len * Bc, Ep), lambda g: (g, 0, 0))]
    in_specs += [pl.BlockSpec(w.shape, lambda g: (0, 0)) for w in weight_args]
    out_specs = pl.BlockSpec((None, seq_len * Bc, Tp), lambda g: (g, 0, 0))

    # Size-derived VMEM budget: double-buffered blocked I/O + weights + scratch.
    blk_in = seq_len * Bc * Ep * 2
    blk_out = seq_len * Bc * Tp * 4
    w_bytes = sum(int(w.size) * w.dtype.itemsize for w in weight_args)
    scratch_bytes = seq_len * Bc * 4 * Hp * 4 + seq_len * Bc * Hp * 4
    resident = 2 * (blk_in + blk_out) + 2 * w_bytes + scratch_bytes

    out_padded = pl.pallas_call(
        kernel,
        out_shape=jax.ShapeDtypeStruct((G, seq_len * Bc, Tp), jnp.float32),
        grid_spec=pltpu.PrefetchScalarGridSpec(
            num_scalar_prefetch=0,
            grid=(G,),
            in_specs=in_specs,
            out_specs=out_specs,
            scratch_shapes=[pltpu.VMEM((seq_len * Bc, 4 * Hp), jnp.float32),
                            pltpu.VMEM((seq_len * Bc, Hp), jnp.float32)]),
        compiler_params=pltpu.CompilerParams(
            dimension_semantics=("parallel",),
            vmem_limit_bytes=_vmem_limit_bytes(resident)),
    )(embeds, *weight_args)

    out = (out_padded.reshape(G, seq_len, Bc, Tp)
           .transpose(0, 2, 1, 3)
           .reshape(B, seq_len, Tp))
    return out[:, :, :target_size]


def reference_forward(sentence, emb_table, lstm_raw, w_out, b_out):
    """Pure-JAX single-sentence reference with PyTorch LSTM semantics.

    Mirrors the kernel's bf16 weight/activation rounding at matmul boundaries
    (q = round-to-bf16) so results match the MXU path to f32 accuracy."""
    def q(x):
        return x.astype(jnp.bfloat16).astype(jnp.float32)

    x_seq = q(emb_table[sentence])               # (seq, E)
    H = lstm_raw[0][1].shape[1]
    for (w_ih, w_hh, b_ih, b_hh) in lstm_raw:
        w_ih_T, w_hh_T = q(w_ih.T), q(w_hh.T)
        b = (b_ih + b_hh)[None, :]
        h = jnp.zeros((1, H), jnp.float32)
        c = jnp.zeros((1, H), jnp.float32)
        outs = []
        for t in range(x_seq.shape[0]):
            z = x_seq[t:t + 1] @ w_ih_T + q(h) @ w_hh_T + b
            i_g = jax.nn.sigmoid(z[:, 0 * H:1 * H])
            f_g = jax.nn.sigmoid(z[:, 1 * H:2 * H])
            g_g = jnp.tanh(z[:, 2 * H:3 * H])
            o_g = jax.nn.sigmoid(z[:, 3 * H:4 * H])
            c = f_g * c + i_g * g_g
            h = o_g * jnp.tanh(c)
            outs.append(q(h))
        x_seq = jnp.concatenate(outs, axis=0)
    tag_space = x_seq @ q(w_out.T) + b_out[None, :]
    return jax.nn.log_softmax(tag_space, axis=1)


if __name__ == "__main__":
    EMBEDDING_DIM = 32
    HIDDEN_DIM = 32
    VOCAB_SIZE = 50
    TARGET_SIZE = 8
    NUM_LAYERS = 2
    SEQ_LEN = 8
    BATCH = 16        # independent sentences, processed together
    BATCH_CHUNK = 8   # sentences per grid step (fills sublanes / MXU rows)

    key = jax.random.PRNGKey(0)
    keys = jax.random.split(key, 4 + 4 * NUM_LAYERS)

    emb_table = 0.1 * jax.random.normal(
        keys[0], (VOCAB_SIZE, EMBEDDING_DIM), jnp.float32)

    lstm_raw = []
    for l in range(NUM_LAYERS):
        in_dim = EMBEDDING_DIM if l == 0 else HIDDEN_DIM
        k0, k1, k2, k3 = keys[1 + 4 * l: 5 + 4 * l]
        w_ih = 0.1 * jax.random.normal(k0, (4 * HIDDEN_DIM, in_dim), jnp.float32)
        w_hh = 0.1 * jax.random.normal(k1, (4 * HIDDEN_DIM, HIDDEN_DIM),
                                       jnp.float32)
        b_ih = 0.1 * jax.random.normal(k2, (4 * HIDDEN_DIM,), jnp.float32)
        b_hh = 0.1 * jax.random.normal(k3, (4 * HIDDEN_DIM,), jnp.float32)
        lstm_raw.append((w_ih, w_hh, b_ih, b_hh))

    w_out = 0.1 * jax.random.normal(keys[1 + 4 * NUM_LAYERS],
                                    (TARGET_SIZE, HIDDEN_DIM), jnp.float32)
    b_out = 0.1 * jax.random.normal(keys[2 + 4 * NUM_LAYERS],
                                    (TARGET_SIZE,), jnp.float32)

    sentences = jax.random.randint(keys[3 + 4 * NUM_LAYERS],
                                   (BATCH, SEQ_LEN), 0, VOCAB_SIZE,
                                   dtype=jnp.int32)

    packed = pack_params(lstm_raw, w_out, b_out,
                         EMBEDDING_DIM, HIDDEN_DIM, TARGET_SIZE)

    tag_scores = tagger_forward(sentences, emb_table, packed,
                                target_size=TARGET_SIZE,
                                batch_chunk=BATCH_CHUNK)
    tag_scores = jax.block_until_ready(tag_scores)
    assert tag_scores.shape == (BATCH, SEQ_LEN, TARGET_SIZE)

    ref = jnp.stack([
        reference_forward(sentences[b], emb_table, lstm_raw, w_out, b_out)
        for b in range(BATCH)])
    # Tolerance covers EUP tanh / XLA sigmoid approximation differences and
    # f32 summation-order noise; weights/activations are bf16-rounded in both.
    err = jnp.max(jnp.abs(tag_scores - ref))
    assert jnp.allclose(tag_scores, ref, atol=1e-3, rtol=1e-3), err

    print("KERNEL_OK")
</pallas_src>

<mosaic_0001>
module attributes {stable_mosaic.version = 11 : i64} {
  func.func @kernel(%arg0: i32, %arg1: memref<1x64x128xbf16, #tpu.memory_space<vmem>>, %arg2: memref<128x512xbf16, #tpu.memory_space<vmem>>, %arg3: memref<128x512xbf16, #tpu.memory_space<vmem>>, %arg4: memref<1x512xf32, #tpu.memory_space<vmem>>, %arg5: memref<128x512xbf16, #tpu.memory_space<vmem>>, %arg6: memref<128x512xbf16, #tpu.memory_space<vmem>>, %arg7: memref<1x512xf32, #tpu.memory_space<vmem>>, %arg8: memref<128x128xbf16, #tpu.memory_space<vmem>>, %arg9: memref<1x128xf32, #tpu.memory_space<vmem>>, %arg10: memref<1x64x128xf32, #tpu.memory_space<vmem>>, %arg11: memref<64x512xf32, #tpu.memory_space<vmem>>, %arg12: memref<64x128xf32, #tpu.memory_space<vmem>>) attributes {dimension_semantics = [#tpu.dimension_semantics<parallel>], iteration_bounds = array<i64: 2>, scalar_prefetch = 0 : i64, scratch_operands = 2 : i64, tpu.core_type = #tpu.core_type<tc>, window_params = [{transform_indices = @transform_0, window_bounds = array<i64: 1, 64, 128>}, {pipeline_mode = #tpu.pipeline_mode<synchronous>, transform_indices = @transform_1, window_bounds = array<i64: 128, 512>}, {pipeline_mode = #tpu.pipeline_mode<synchronous>, transform_indices = @transform_2, window_bounds = array<i64: 128, 512>}, {pipeline_mode = #tpu.pipeline_mode<synchronous>, transform_indices = @transform_3, window_bounds = array<i64: 1, 512>}, {pipeline_mode = #tpu.pipeline_mode<synchronous>, transform_indices = @transform_4, window_bounds = array<i64: 128, 512>}, {pipeline_mode = #tpu.pipeline_mode<synchronous>, transform_indices = @transform_5, window_bounds = array<i64: 128, 512>}, {pipeline_mode = #tpu.pipeline_mode<synchronous>, transform_indices = @transform_6, window_bounds = array<i64: 1, 512>}, {pipeline_mode = #tpu.pipeline_mode<synchronous>, transform_indices = @transform_7, window_bounds = array<i64: 128, 128>}, {pipeline_mode = #tpu.pipeline_mode<synchronous>, transform_indices = @transform_8, window_bounds = array<i64: 1, 128>}, {transform_indices = @transform_9, window_bounds = array<i64: 1, 64, 128>}]} {
    %c0 = arith.constant 0 : index
    %c0_0 = arith.constant 0 : index
    %0 = vector.load %arg2[%c0, %c0_0] : memref<128x512xbf16, #tpu.memory_space<vmem>>, vector<128x512xbf16>
    %c0_1 = arith.constant 0 : index
    %c0_2 = arith.constant 0 : index
    %1 = vector.load %arg3[%c0_1, %c0_2] : memref<128x512xbf16, #tpu.memory_space<vmem>>, vector<128x512xbf16>
    %c0_3 = arith.constant 0 : index
    %c0_4 = arith.constant 0 : index
    %2 = vector.load %arg4[%c0_3, %c0_4] : memref<1x512xf32, #tpu.memory_space<vmem>>, vector<1x512xf32>
    %c0_5 = arith.constant 0 : index
    %c0_6 = arith.constant 0 : index
    %c0_7 = arith.constant 0 : index
    %3 = vector.load %arg1[%c0_5, %c0_6, %c0_7] : memref<1x64x128xbf16, #tpu.memory_space<vmem>>, vector<1x64x128xbf16>
    %4 = vector.shape_cast %3 : vector<1x64x128xbf16> to vector<64x128xbf16>
    %cst = arith.constant dense<0.000000e+00> : vector<64x512xf32>
    %5 = tpu.matmul %4, %0, %cst {dimension_numbers = #tpu.dot_dimension_numbers<[1], [0], [0], [1], [0, 0, 1, 1], [], []>} : vector<64x128xbf16>, vector<128x512xbf16>, vector<64x512xf32> -> vector<64x512xf32>
    %6 = vector.broadcast %2 : vector<1x512xf32> to vector<64x512xf32>
    %7 = arith.addf %5, %6 : vector<64x512xf32>
    %c0_8 = arith.constant 0 : index
    %c0_9 = arith.constant 0 : index
    %8 = vector.load %arg11[%c0_8, %c0_9] : memref<64x512xf32, #tpu.memory_space<vmem>>, vector<64x512xf32>
    tpu.vector_store %arg11[%c0_8, %c0_9], %7 {strides = array<i32>} : memref<64x512xf32, #tpu.memory_space<vmem>>, vector<64x512xf32>,
    %cst_10 = arith.constant 0.000000e+00 : f32
    %9 = vector.broadcast %cst_10 : f32 to vector<8x128xf32>
    %cst_11 = arith.constant 0.000000e+00 : f32
    %10 = vector.broadcast %cst_11 : f32 to vector<8x128xf32>
    %c0_i32 = arith.constant 0 : i32
    %c8_i32 = arith.constant 8 : i32
    %11 = arith.muli %c0_i32, %c8_i32 : i32
    %12 = tpu.assume_multiple %11, 8 : i32
    %13 = arith.index_cast %12 : i32 to index
    %c0_12 = arith.constant 0 : index
    %14 = vector.load %arg11[%13, %c0_12] : memref<64x512xf32, #tpu.memory_space<vmem>>, vector<8x512xf32>
    %15 = arith.truncf %9 : vector<8x128xf32> to vector<8x128xbf16>
    %cst_13 = arith.constant dense<0.000000e+00> : vector<8x512xf32>
    %16 = tpu.matmul %15, %1, %cst_13 {dimension_numbers = #tpu.dot_dimension_numbers<[1], [0], [0], [1], [0, 0, 1, 1], [], []>} : vector<8x128xbf16>, vector<128x512xbf16>, vector<8x512xf32> -> vector<8x512xf32>
    %17 = arith.addf %14, %16 : vector<8x512xf32>
    %18 = vector.extract_strided_slice %17 {offsets = [0, 0], sizes = [8, 128], strides = [1, 1]} : vector<8x512xf32> to vector<8x128xf32>
    %cst_14 = arith.constant 5.000000e-01 : f32
    %19 = vector.broadcast %cst_14 : f32 to vector<8x128xf32>
    %20 = arith.mulf %19, %18 : vector<8x128xf32>
    %21 = math.tanh %20 : vector<8x128xf32>
    %cst_15 = arith.constant 5.000000e-01 : f32
    %22 = vector.broadcast %cst_15 : f32 to vector<8x128xf32>
    %23 = arith.mulf %22, %21 : vector<8x128xf32>
    %cst_16 = arith.constant 5.000000e-01 : f32
    %24 = vector.broadcast %cst_16 : f32 to vector<8x128xf32>
    %25 = arith.addf %23, %24 : vector<8x128xf32>
    %26 = vector.extract_strided_slice %17 {offsets = [0, 128], sizes = [8, 128], strides = [1, 1]} : vector<8x512xf32> to vector<8x128xf32>
    %cst_17 = arith.constant 5.000000e-01 : f32
    %27 = vector.broadcast %cst_17 : f32 to vector<8x128xf32>
    %28 = arith.mulf %27, %26 : vector<8x128xf32>
    %29 = math.tanh %28 : vector<8x128xf32>
    %cst_18 = arith.constant 5.000000e-01 : f32
    %30 = vector.broadcast %cst_18 : f32 to vector<8x128xf32>
    %31 = arith.mulf %30, %29 : vector<8x128xf32>
    %cst_19 = arith.constant 5.000000e-01 : f32
    %32 = vector.broadcast %cst_19 : f32 to vector<8x128xf32>
    %33 = arith.addf %31, %32 : vector<8x128xf32>
    %34 = vector.extract_strided_slice %17 {offsets = [0, 256], sizes = [8, 128], strides = [1, 1]} : vector<8x512xf32> to vector<8x128xf32>
    %35 = math.tanh %34 : vector<8x128xf32>
    %36 = vector.extract_strided_slice %17 {offsets = [0, 384], sizes = [8, 128], strides = [1, 1]} : vector<8x512xf32> to vector<8x128xf32>
    %cst_20 = arith.constant 5.000000e-01 : f32
    %37 = vector.broadcast %cst_20 : f32 to vector<8x128xf32>
    %38 = arith.mulf %37, %36 : vector<8x128xf32>
    %39 = math.tanh %38 : vector<8x128xf32>
    %cst_21 = arith.constant 5.000000e-01 : f32
    %40 = vector.broadcast %cst_21 : f32 to vector<8x128xf32>
    %41 = arith.mulf %40, %39 : vector<8x128xf32>
    %cst_22 = arith.constant 5.000000e-01 : f32
    %42 = vector.broadcast %cst_22 : f32 to vector<8x128xf32>
    %43 = arith.addf %41, %42 : vector<8x128xf32>
    %44 = arith.mulf %33, %10 : vector<8x128xf32>
    %45 = arith.mulf %25, %35 : vector<8x128xf32>
    %46 = arith.addf %44, %45 : vector<8x128xf32>
    %47 = math.tanh %46 : vector<8x128xf32>
    %48 = arith.mulf %43, %47 : vector<8x128xf32>
    %49 = arith.index_cast %12 : i32 to index
    %c0_23 = arith.constant 0 : index
    %50 = vector.load %arg12[%49, %c0_23] : memref<64x128xf32, #tpu.memory_space<vmem>>, vector<8x128xf32>
    tpu.vector_store %arg12[%49, %c0_23], %48 {strides = array<i32>} : memref<64x128xf32, #tpu.memory_space<vmem>>, vector<8x128xf32>,
    %c1_i32 = arith.constant 1 : i32
    %c8_i32_24 = arith.constant 8 : i32
    %51 = arith.muli %c1_i32, %c8_i32_24 : i32
    %52 = tpu.assume_multiple %51, 8 : i32
    %53 = arith.index_cast %52 : i32 to index
    %c0_25 = arith.constant 0 : index
    %54 = vector.load %arg11[%53, %c0_25] : memref<64x512xf32, #tpu.memory_space<vmem>>, vector<8x512xf32>
    %55 = arith.truncf %48 : vector<8x128xf32> to vector<8x128xbf16>
    %cst_26 = arith.constant dense<0.000000e+00> : vector<8x512xf32>
    %56 = tpu.matmul %55, %1, %cst_26 {dimension_numbers = #tpu.dot_dimension_numbers<[1], [0], [0], [1], [0, 0, 1, 1], [], []>} : vector<8x128xbf16>, vector<128x512xbf16>, vector<8x512xf32> -> vector<8x512xf32>
    %57 = arith.addf %54, %56 : vector<8x512xf32>
    %58 = vector.extract_strided_slice %57 {offsets = [0, 0], sizes = [8, 128], strides = [1, 1]} : vector<8x512xf32> to vector<8x128xf32>
    %cst_27 = arith.constant 5.000000e-01 : f32
    %59 = vector.broadcast %cst_27 : f32 to vector<8x128xf32>
    %60 = arith.mulf %59, %58 : vector<8x128xf32>
    %61 = math.tanh %60 : vector<8x128xf32>
    %cst_28 = arith.constant 5.000000e-01 : f32
    %62 = vector.broadcast %cst_28 : f32 to vector<8x128xf32>
    %63 = arith.mulf %62, %61 : vector<8x128xf32>
    %cst_29 = arith.constant 5.000000e-01 : f32
    %64 = vector.broadcast %cst_29 : f32 to vector<8x128xf32>
    %65 = arith.addf %63, %64 : vector<8x128xf32>
    %66 = vector.extract_strided_slice %57 {offsets = [0, 128], sizes = [8, 128], strides = [1, 1]} : vector<8x512xf32> to vector<8x128xf32>
    %cst_30 = arith.constant 5.000000e-01 : f32
    %67 = vector.broadcast %cst_30 : f32 to vector<8x128xf32>
    %68 = arith.mulf %67, %66 : vector<8x128xf32>
    %69 = math.tanh %68 : vector<8x128xf32>
    %cst_31 = arith.constant 5.000000e-01 : f32
    %70 = vector.broadcast %cst_31 : f32 to vector<8x128xf32>
    %71 = arith.mulf %70, %69 : vector<8x128xf32>
    %cst_32 = arith.constant 5.000000e-01 : f32
    %72 = vector.broadcast %cst_32 : f32 to vector<8x128xf32>
    %73 = arith.addf %71, %72 : vector<8x128xf32>
    %74 = vector.extract_strided_slice %57 {offsets = [0, 256], sizes = [8, 128], strides = [1, 1]} : vector<8x512xf32> to vector<8x128xf32>
    %75 = math.tanh %74 : vector<8x128xf32>
    %76 = vector.extract_strided_slice %57 {offsets = [0, 384], sizes = [8, 128], strides = [1, 1]} : vector<8x512xf32> to vector<8x128xf32>
    %cst_33 = arith.constant 5.000000e-01 : f32
    %77 = vector.broadcast %cst_33 : f32 to vector<8x128xf32>
    %78 = arith.mulf %77, %76 : vector<8x128xf32>
    %79 = math.tanh %78 : vector<8x128xf32>
    %cst_34 = arith.constant 5.000000e-01 : f32
    %80 = vector.broadcast %cst_34 : f32 to vector<8x128xf32>
    %81 = arith.mulf %80, %79 : vector<8x128xf32>
    %cst_35 = arith.constant 5.000000e-01 : f32
    %82 = vector.broadcast %cst_35 : f32 to vector<8x128xf32>
    %83 = arith.addf %81, %82 : vector<8x128xf32>
    %84 = arith.mulf %73, %46 : vector<8x128xf32>
    %85 = arith.mulf %65, %75 : vector<8x128xf32>
    %86 = arith.addf %84, %85 : vector<8x128xf32>
    %87 = math.tanh %86 : vector<8x128xf32>
    %88 = arith.mulf %83, %87 : vector<8x128xf32>
    %89 = arith.index_cast %52 : i32 to index
    %c0_36 = arith.constant 0 : index
    %90 = vector.load %arg12[%89, %c0_36] : memref<64x128xf32, #tpu.memory_space<vmem>>, vector<8x128xf32>
    tpu.vector_store %arg12[%89, %c0_36], %88 {strides = array<i32>} : memref<64x128xf32, #tpu.memory_space<vmem>>, vector<8x128xf32>,
    %c2_i32 = arith.constant 2 : i32
    %c8_i32_37 = arith.constant 8 : i32
    %91 = arith.muli %c2_i32, %c8_i32_37 : i32
    %92 = tpu.assume_multiple %91, 8 : i32
    %93 = arith.index_cast %92 : i32 to index
    %c0_38 = arith.constant 0 : index
    %94 = vector.load %arg11[%93, %c0_38] : memref<64x512xf32, #tpu.memory_space<vmem>>, vector<8x512xf32>
    %95 = arith.truncf %88 : vector<8x128xf32> to vector<8x128xbf16>
    %cst_39 = arith.constant dense<0.000000e+00> : vector<8x512xf32>
    %96 = tpu.matmul %95, %1, %cst_39 {dimension_numbers = #tpu.dot_dimension_numbers<[1], [0], [0], [1], [0, 0, 1, 1], [], []>} : vector<8x128xbf16>, vector<128x512xbf16>, vector<8x512xf32> -> vector<8x512xf32>
    %97 = arith.addf %94, %96 : vector<8x512xf32>
    %98 = vector.extract_strided_slice %97 {offsets = [0, 0], sizes = [8, 128], strides = [1, 1]} : vector<8x512xf32> to vector<8x128xf32>
    %cst_40 = arith.constant 5.000000e-01 : f32
    %99 = vector.broadcast %cst_40 : f32 to vector<8x128xf32>
    %100 = arith.mulf %99, %98 : vector<8x128xf32>
    %101 = math.tanh %100 : vector<8x128xf32>
    %cst_41 = arith.constant 5.000000e-01 : f32
    %102 = vector.broadcast %cst_41 : f32 to vector<8x128xf32>
    %103 = arith.mulf %102, %101 : vector<8x128xf32>
    %cst_42 = arith.constant 5.000000e-01 : f32
    %104 = vector.broadcast %cst_42 : f32 to vector<8x128xf32>
    %105 = arith.addf %103, %104 : vector<8x128xf32>
    %106 = vector.extract_strided_slice %97 {offsets = [0, 128], sizes = [8, 128], strides = [1, 1]} : vector<8x512xf32> to vector<8x128xf32>
    %cst_43 = arith.constant 5.000000e-01 : f32
    %107 = vector.broadcast %cst_43 : f32 to vector<8x128xf32>
    %108 = arith.mulf %107, %106 : vector<8x128xf32>
    %109 = math.tanh %108 : vector<8x128xf32>
    %cst_44 = arith.constant 5.000000e-01 : f32
    %110 = vector.broadcast %cst_44 : f32 to vector<8x128xf32>
    %111 = arith.mulf %110, %109 : vector<8x128xf32>
    %cst_45 = arith.constant 5.000000e-01 : f32
    %112 = vector.broadcast %cst_45 : f32 to vector<8x128xf32>
    %113 = arith.addf %111, %112 : vector<8x128xf32>
    %114 = vector.extract_strided_slice %97 {offsets = [0, 256], sizes = [8, 128], strides = [1, 1]} : vector<8x512xf32> to vector<8x128xf32>
    %115 = math.tanh %114 : vector<8x128xf32>
    %116 = vector.extract_strided_slice %97 {offsets = [0, 384], sizes = [8, 128], strides = [1, 1]} : vector<8x512xf32> to vector<8x128xf32>
    %cst_46 = arith.constant 5.000000e-01 : f32
    %117 = vector.broadcast %cst_46 : f32 to vector<8x128xf32>
    %118 = arith.mulf %117, %116 : vector<8x128xf32>
    %119 = math.tanh %118 : vector<8x128xf32>
    %cst_47 = arith.constant 5.000000e-01 : f32
    %120 = vector.broadcast %cst_47 : f32 to vector<8x128xf32>
    %121 = arith.mulf %120, %119 : vector<8x128xf32>
    %cst_48 = arith.constant 5.000000e-01 : f32
    %122 = vector.broadcast %cst_48 : f32 to vector<8x128xf32>
    %123 = arith.addf %121, %122 : vector<8x128xf32>
    %124 = arith.mulf %113, %86 : vector<8x128xf32>
    %125 = arith.mulf %105, %115 : vector<8x128xf32>
    %126 = arith.addf %124, %125 : vector<8x128xf32>
    %127 = math.tanh %126 : vector<8x128xf32>
    %128 = arith.mulf %123, %127 : vector<8x128xf32>
    %129 = arith.index_cast %92 : i32 to index
    %c0_49 = arith.constant 0 : index
    %130 = vector.load %arg12[%129, %c0_49] : memref<64x128xf32, #tpu.memory_space<vmem>>, vector<8x128xf32>
    tpu.vector_store %arg12[%129, %c0_49], %128 {strides = array<i32>} : memref<64x128xf32, #tpu.memory_space<vmem>>, vector<8x128xf32>,
    %c3_i32 = arith.constant 3 : i32
    %c8_i32_50 = arith.constant 8 : i32
    %131 = arith.muli %c3_i32, %c8_i32_50 : i32
    %132 = tpu.assume_multiple %131, 8 : i32
    %133 = arith.index_cast %132 : i32 to index
    %c0_51 = arith.constant 0 : index
    %134 = vector.load %arg11[%133, %c0_51] : memref<64x512xf32, #tpu.memory_space<vmem>>, vector<8x512xf32>
    %135 = arith.truncf %128 : vector<8x128xf32> to vector<8x128xbf16>
    %cst_52 = arith.constant dense<0.000000e+00> : vector<8x512xf32>
    %136 = tpu.matmul %135, %1, %cst_52 {dimension_numbers = #tpu.dot_dimension_numbers<[1], [0], [0], [1], [0, 0, 1, 1], [], []>} : vector<8x128xbf16>, vector<128x512xbf16>, vector<8x512xf32> -> vector<8x512xf32>
    %137 = arith.addf %134, %136 : vector<8x512xf32>
    %138 = vector.extract_strided_slice %137 {offsets = [0, 0], sizes = [8, 128], strides = [1, 1]} : vector<8x512xf32> to vector<8x128xf32>
    %cst_53 = arith.constant 5.000000e-01 : f32
    %139 = vector.broadcast %cst_53 : f32 to vector<8x128xf32>
    %140 = arith.mulf %139, %138 : vector<8x128xf32>
    %141 = math.tanh %140 : vector<8x128xf32>
    %cst_54 = arith.constant 5.000000e-01 : f32
    %142 = vector.broadcast %cst_54 : f32 to vector<8x128xf32>
    %143 = arith.mulf %142, %141 : vector<8x128xf32>
    %cst_55 = arith.constant 5.000000e-01 : f32
    %144 = vector.broadcast %cst_55 : f32 to vector<8x128xf32>
    %145 = arith.addf %143, %144 : vector<8x128xf32>
    %146 = vector.extract_strided_slice %137 {offsets = [0, 128], sizes = [8, 128], strides = [1, 1]} : vector<8x512xf32> to vector<8x128xf32>
    %cst_56 = arith.constant 5.000000e-01 : f32
    %147 = vector.broadcast %cst_56 : f32 to vector<8x128xf32>
    %148 = arith.mulf %147, %146 : vector<8x128xf32>
    %149 = math.tanh %148 : vector<8x128xf32>
    %cst_57 = arith.constant 5.000000e-01 : f32
    %150 = vector.broadcast %cst_57 : f32 to vector<8x128xf32>
    %151 = arith.mulf %150, %149 : vector<8x128xf32>
    %cst_58 = arith.constant 5.000000e-01 : f32
    %152 = vector.broadcast %cst_58 : f32 to vector<8x128xf32>
    %153 = arith.addf %151, %152 : vector<8x128xf32>
    %154 = vector.extract_strided_slice %137 {offsets = [0, 256], sizes = [8, 128], strides = [1, 1]} : vector<8x512xf32> to vector<8x128xf32>
    %155 = math.tanh %154 : vector<8x128xf32>
    %156 = vector.extract_strided_slice %137 {offsets = [0, 384], sizes = [8, 128], strides = [1, 1]} : vector<8x512xf32> to vector<8x128xf32>
    %cst_59 = arith.constant 5.000000e-01 : f32
    %157 = vector.broadcast %cst_59 : f32 to vector<8x128xf32>
    %158 = arith.mulf %157, %156 : vector<8x128xf32>
    %159 = math.tanh %158 : vector<8x128xf32>
    %cst_60 = arith.constant 5.000000e-01 : f32
    %160 = vector.broadcast %cst_60 : f32 to vector<8x128xf32>
    %161 = arith.mulf %160, %159 : vector<8x128xf32>
    %cst_61 = arith.constant 5.000000e-01 : f32
    %162 = vector.broadcast %cst_61 : f32 to vector<8x128xf32>
    %163 = arith.addf %161, %162 : vector<8x128xf32>
    %164 = arith.mulf %153, %126 : vector<8x128xf32>
    %165 = arith.mulf %145, %155 : vector<8x128xf32>
    %166 = arith.addf %164, %165 : vector<8x128xf32>
    %167 = math.tanh %166 : vector<8x128xf32>
    %168 = arith.mulf %163, %167 : vector<8x128xf32>
    %169 = arith.index_cast %132 : i32 to index
    %c0_62 = arith.constant 0 : index
    %170 = vector.load %arg12[%169, %c0_62] : memref<64x128xf32, #tpu.memory_space<vmem>>, vector<8x128xf32>
    tpu.vector_store %arg12[%169, %c0_62], %168 {strides = array<i32>} : memref<64x128xf32, #tpu.memory_space<vmem>>, vector<8x128xf32>,
    %c4_i32 = arith.constant 4 : i32
    %c8_i32_63 = arith.constant 8 : i32
    %171 = arith.muli %c4_i32, %c8_i32_63 : i32
    %172 = tpu.assume_multiple %171, 8 : i32
    %173 = arith.index_cast %172 : i32 to index
    %c0_64 = arith.constant 0 : index
    %174 = vector.load %arg11[%173, %c0_64] : memref<64x512xf32, #tpu.memory_space<vmem>>, vector<8x512xf32>
    %175 = arith.truncf %168 : vector<8x128xf32> to vector<8x128xbf16>
    %cst_65 = arith.constant dense<0.000000e+00> : vector<8x512xf32>
    %176 = tpu.matmul %175, %1, %cst_65 {dimension_numbers = #tpu.dot_dimension_numbers<[1], [0], [0], [1], [0, 0, 1, 1], [], []>} : vector<8x128xbf16>, vector<128x512xbf16>, vector<8x512xf32> -> vector<8x512xf32>
    %177 = arith.addf %174, %176 : vector<8x512xf32>
    %178 = vector.extract_strided_slice %177 {offsets = [0, 0], sizes = [8, 128], strides = [1, 1]} : vector<8x512xf32> to vector<8x128xf32>
    %cst_66 = arith.constant 5.000000e-01 : f32
    %179 = vector.broadcast %cst_66 : f32 to vector<8x128xf32>
    %180 = arith.mulf %179, %178 : vector<8x128xf32>
    %181 = math.tanh %180 : vector<8x128xf32>
    %cst_67 = arith.constant 5.000000e-01 : f32
    %182 = vector.broadcast %cst_67 : f32 to vector<8x128xf32>
    %183 = arith.mulf %182, %181 : vector<8x128xf32>
    %cst_68 = arith.constant 5.000000e-01 : f32
    %184 = vector.broadcast %cst_68 : f32 to vector<8x128xf32>
    %185 = arith.addf %183, %184 : vector<8x128xf32>
    %186 = vector.extract_strided_slice %177 {offsets = [0, 128], sizes = [8, 128], strides = [1, 1]} : vector<8x512xf32> to vector<8x128xf32>
    %cst_69 = arith.constant 5.000000e-01 : f32
    %187 = vector.broadcast %cst_69 : f32 to vector<8x128xf32>
    %188 = arith.mulf %187, %186 : vector<8x128xf32>
    %189 = math.tanh %188 : vector<8x128xf32>
    %cst_70 = arith.constant 5.000000e-01 : f32
    %190 = vector.broadcast %cst_70 : f32 to vector<8x128xf32>
    %191 = arith.mulf %190, %189 : vector<8x128xf32>
    %cst_71 = arith.constant 5.000000e-01 : f32
    %192 = vector.broadcast %cst_71 : f32 to vector<8x128xf32>
    %193 = arith.addf %191, %192 : vector<8x128xf32>
    %194 = vector.extract_strided_slice %177 {offsets = [0, 256], sizes = [8, 128], strides = [1, 1]} : vector<8x512xf32> to vector<8x128xf32>
    %195 = math.tanh %194 : vector<8x128xf32>
    %196 = vector.extract_strided_slice %177 {offsets = [0, 384], sizes = [8, 128], strides = [1, 1]} : vector<8x512xf32> to vector<8x128xf32>
    %cst_72 = arith.constant 5.000000e-01 : f32
    %197 = vector.broadcast %cst_72 : f32 to vector<8x128xf32>
    %198 = arith.mulf %197, %196 : vector<8x128xf32>
    %199 = math.tanh %198 : vector<8x128xf32>
    %cst_73 = arith.constant 5.000000e-01 : f32
    %200 = vector.broadcast %cst_73 : f32 to vector<8x128xf32>
    %201 = arith.mulf %200, %199 : vector<8x128xf32>
    %cst_74 = arith.constant 5.000000e-01 : f32
    %202 = vector.broadcast %cst_74 : f32 to vector<8x128xf32>
    %203 = arith.addf %201, %202 : vector<8x128xf32>
    %204 = arith.mulf %193, %166 : vector<8x128xf32>
    %205 = arith.mulf %185, %195 : vector<8x128xf32>
    %206 = arith.addf %204, %205 : vector<8x128xf32>
    %207 = math.tanh %206 : vector<8x128xf32>
    %208 = arith.mulf %203, %207 : vector<8x128xf32>
    %209 = arith.index_cast %172 : i32 to index
    %c0_75 = arith.constant 0 : index
    %210 = vector.load %arg12[%209, %c0_75] : memref<64x128xf32, #tpu.memory_space<vmem>>, vector<8x128xf32>
    tpu.vector_store %arg12[%209, %c0_75], %208 {strides = array<i32>} : memref<64x128xf32, #tpu.memory_space<vmem>>, vector<8x128xf32>,
    %c5_i32 = arith.constant 5 : i32
    %c8_i32_76 = arith.constant 8 : i32
    %211 = arith.muli %c5_i32, %c8_i32_76 : i32
    %212 = tpu.assume_multiple %211, 8 : i32
    %213 = arith.index_cast %212 : i32 to index
    %c0_77 = arith.constant 0 : index
    %214 = vector.load %arg11[%213, %c0_77] : memref<64x512xf32, #tpu.memory_space<vmem>>, vector<8x512xf32>
    %215 = arith.truncf %208 : vector<8x128xf32> to vector<8x128xbf16>
    %cst_78 = arith.constant dense<0.000000e+00> : vector<8x512xf32>
    %216 = tpu.matmul %215, %1, %cst_78 {dimension_numbers = #tpu.dot_dimension_numbers<[1], [0], [0], [1], [0, 0, 1, 1], [], []>} : vector<8x128xbf16>, vector<128x512xbf16>, vector<8x512xf32> -> vector<8x512xf32>
    %217 = arith.addf %214, %216 : vector<8x512xf32>
    %218 = vector.extract_strided_slice %217 {offsets = [0, 0], sizes = [8, 128], strides = [1, 1]} : vector<8x512xf32> to vector<8x128xf32>
    %cst_79 = arith.constant 5.000000e-01 : f32
    %219 = vector.broadcast %cst_79 : f32 to vector<8x128xf32>
    %220 = arith.mulf %219, %218 : vector<8x128xf32>
    %221 = math.tanh %220 : vector<8x128xf32>
    %cst_80 = arith.constant 5.000000e-01 : f32
    %222 = vector.broadcast %cst_80 : f32 to vector<8x128xf32>
    %223 = arith.mulf %222, %221 : vector<8x128xf32>
    %cst_81 = arith.constant 5.000000e-01 : f32
    %224 = vector.broadcast %cst_81 : f32 to vector<8x128xf32>
    %225 = arith.addf %223, %224 : vector<8x128xf32>
    %226 = vector.extract_strided_slice %217 {offsets = [0, 128], sizes = [8, 128], strides = [1, 1]} : vector<8x512xf32> to vector<8x128xf32>
    %cst_82 = arith.constant 5.000000e-01 : f32
    %227 = vector.broadcast %cst_82 : f32 to vector<8x128xf32>
    %228 = arith.mulf %227, %226 : vector<8x128xf32>
    %229 = math.tanh %228 : vector<8x128xf32>
    %cst_83 = arith.constant 5.000000e-01 : f32
    %230 = vector.broadcast %cst_83 : f32 to vector<8x128xf32>
    %231 = arith.mulf %230, %229 : vector<8x128xf32>
    %cst_84 = arith.constant 5.000000e-01 : f32
    %232 = vector.broadcast %cst_84 : f32 to vector<8x128xf32>
    %233 = arith.addf %231, %232 : vector<8x128xf32>
    %234 = vector.extract_strided_slice %217 {offsets = [0, 256], sizes = [8, 128], strides = [1, 1]} : vector<8x512xf32> to vector<8x128xf32>
    %235 = math.tanh %234 : vector<8x128xf32>
    %236 = vector.extract_strided_slice %217 {offsets = [0, 384], sizes = [8, 128], strides = [1, 1]} : vector<8x512xf32> to vector<8x128xf32>
    %cst_85 = arith.constant 5.000000e-01 : f32
    %237 = vector.broadcast %cst_85 : f32 to vector<8x128xf32>
    %238 = arith.mulf %237, %236 : vector<8x128xf32>
    %239 = math.tanh %238 : vector<8x128xf32>
    %cst_86 = arith.constant 5.000000e-01 : f32
    %240 = vector.broadcast %cst_86 : f32 to vector<8x128xf32>
    %241 = arith.mulf %240, %239 : vector<8x128xf32>
    %cst_87 = arith.constant 5.000000e-01 : f32
    %242 = vector.broadcast %cst_87 : f32 to vector<8x128xf32>
    %243 = arith.addf %241, %242 : vector<8x128xf32>
    %244 = arith.mulf %233, %206 : vector<8x128xf32>
    %245 = arith.mulf %225, %235 : vector<8x128xf32>
    %246 = arith.addf %244, %245 : vector<8x128xf32>
    %247 = math.tanh %246 : vector<8x128xf32>
    %248 = arith.mulf %243, %247 : vector<8x128xf32>
    %249 = arith.index_cast %212 : i32 to index
    %c0_88 = arith.constant 0 : index
    %250 = vector.load %arg12[%249, %c0_88] : memref<64x128xf32, #tpu.memory_space<vmem>>, vector<8x128xf32>
    tpu.vector_store %arg12[%249, %c0_88], %248 {strides = array<i32>} : memref<64x128xf32, #tpu.memory_space<vmem>>, vector<8x128xf32>,
    %c6_i32 = arith.constant 6 : i32
    %c8_i32_89 = arith.constant 8 : i32
    %251 = arith.muli %c6_i32, %c8_i32_89 : i32
    %252 = tpu.assume_multiple %251, 8 : i32
    %253 = arith.index_cast %252 : i32 to index
    %c0_90 = arith.constant 0 : index
    %254 = vector.load %arg11[%253, %c0_90] : memref<64x512xf32, #tpu.memory_space<vmem>>, vector<8x512xf32>
    %255 = arith.truncf %248 : vector<8x128xf32> to vector<8x128xbf16>
    %cst_91 = arith.constant dense<0.000000e+00> : vector<8x512xf32>
    %256 = tpu.matmul %255, %1, %cst_91 {dimension_numbers = #tpu.dot_dimension_numbers<[1], [0], [0], [1], [0, 0, 1, 1], [], []>} : vector<8x128xbf16>, vector<128x512xbf16>, vector<8x512xf32> -> vector<8x512xf32>
    %257 = arith.addf %254, %256 : vector<8x512xf32>
    %258 = vector.extract_strided_slice %257 {offsets = [0, 0], sizes = [8, 128], strides = [1, 1]} : vector<8x512xf32> to vector<8x128xf32>
    %cst_92 = arith.constant 5.000000e-01 : f32
    %259 = vector.broadcast %cst_92 : f32 to vector<8x128xf32>
    %260 = arith.mulf %259, %258 : vector<8x128xf32>
    %261 = math.tanh %260 : vector<8x128xf32>
    %cst_93 = arith.constant 5.000000e-01 : f32
    %262 = vector.broadcast %cst_93 : f32 to vector<8x128xf32>
    %263 = arith.mulf %262, %261 : vector<8x128xf32>
    %cst_94 = arith.constant 5.000000e-01 : f32
    %264 = vector.broadcast %cst_94 : f32 to vector<8x128xf32>
    %265 = arith.addf %263, %264 : vector<8x128xf32>
    %266 = vector.extract_strided_slice %257 {offsets = [0, 128], sizes = [8, 128], strides = [1, 1]} : vector<8x512xf32> to vector<8x128xf32>
    %cst_95 = arith.constant 5.000000e-01 : f32
    %267 = vector.broadcast %cst_95 : f32 to vector<8x128xf32>
    %268 = arith.mulf %267, %266 : vector<8x128xf32>
    %269 = math.tanh %268 : vector<8x128xf32>
    %cst_96 = arith.constant 5.000000e-01 : f32
    %270 = vector.broadcast %cst_96 : f32 to vector<8x128xf32>
    %271 = arith.mulf %270, %269 : vector<8x128xf32>
    %cst_97 = arith.constant 5.000000e-01 : f32
    %272 = vector.broadcast %cst_97 : f32 to vector<8x128xf32>
    %273 = arith.addf %271, %272 : vector<8x128xf32>
    %274 = vector.extract_strided_slice %257 {offsets = [0, 256], sizes = [8, 128], strides = [1, 1]} : vector<8x512xf32> to vector<8x128xf32>
    %275 = math.tanh %274 : vector<8x128xf32>
    %276 = vector.extract_strided_slice %257 {offsets = [0, 384], sizes = [8, 128], strides = [1, 1]} : vector<8x512xf32> to vector<8x128xf32>
    %cst_98 = arith.constant 5.000000e-01 : f32
    %277 = vector.broadcast %cst_98 : f32 to vector<8x128xf32>
    %278 = arith.mulf %277, %276 : vector<8x128xf32>
    %279 = math.tanh %278 : vector<8x128xf32>
    %cst_99 = arith.constant 5.000000e-01 : f32
    %280 = vector.broadcast %cst_99 : f32 to vector<8x128xf32>
    %281 = arith.mulf %280, %279 : vector<8x128xf32>
    %cst_100 = arith.constant 5.000000e-01 : f32
    %282 = vector.broadcast %cst_100 : f32 to vector<8x128xf32>
    %283 = arith.addf %281, %282 : vector<8x128xf32>
    %284 = arith.mulf %273, %246 : vector<8x128xf32>
    %285 = arith.mulf %265, %275 : vector<8x128xf32>
    %286 = arith.addf %284, %285 : vector<8x128xf32>
    %287 = math.tanh %286 : vector<8x128xf32>
    %288 = arith.mulf %283, %287 : vector<8x128xf32>
    %289 = arith.index_cast %252 : i32 to index
    %c0_101 = arith.constant 0 : index
    %290 = vector.load %arg12[%289, %c0_101] : memref<64x128xf32, #tpu.memory_space<vmem>>, vector<8x128xf32>
    tpu.vector_store %arg12[%289, %c0_101], %288 {strides = array<i32>} : memref<64x128xf32, #tpu.memory_space<vmem>>, vector<8x128xf32>,
    %c7_i32 = arith.constant 7 : i32
    %c8_i32_102 = arith.constant 8 : i32
    %291 = arith.muli %c7_i32, %c8_i32_102 : i32
    %292 = tpu.assume_multiple %291, 8 : i32
    %293 = arith.index_cast %292 : i32 to index
    %c0_103 = arith.constant 0 : index
    %294 = vector.load %arg11[%293, %c0_103] : memref<64x512xf32, #tpu.memory_space<vmem>>, vector<8x512xf32>
    %295 = arith.truncf %288 : vector<8x128xf32> to vector<8x128xbf16>
    %cst_104 = arith.constant dense<0.000000e+00> : vector<8x512xf32>
    %296 = tpu.matmul %295, %1, %cst_104 {dimension_numbers = #tpu.dot_dimension_numbers<[1], [0], [0], [1], [0, 0, 1, 1], [], []>} : vector<8x128xbf16>, vector<128x512xbf16>, vector<8x512xf32> -> vector<8x512xf32>
    %297 = arith.addf %294, %296 : vector<8x512xf32>
    %298 = vector.extract_strided_slice %297 {offsets = [0, 0], sizes = [8, 128], strides = [1, 1]} : vector<8x512xf32> to vector<8x128xf32>
    %cst_105 = arith.constant 5.000000e-01 : f32
    %299 = vector.broadcast %cst_105 : f32 to vector<8x128xf32>
    %300 = arith.mulf %299, %298 : vector<8x128xf32>
    %301 = math.tanh %300 : vector<8x128xf32>
    %cst_106 = arith.constant 5.000000e-01 : f32
    %302 = vector.broadcast %cst_106 : f32 to vector<8x128xf32>
    %303 = arith.mulf %302, %301 : vector<8x128xf32>
    %cst_107 = arith.constant 5.000000e-01 : f32
    %304 = vector.broadcast %cst_107 : f32 to vector<8x128xf32>
    %305 = arith.addf %303, %304 : vector<8x128xf32>
    %306 = vector.extract_strided_slice %297 {offsets = [0, 128], sizes = [8, 128], strides = [1, 1]} : vector<8x512xf32> to vector<8x128xf32>
    %cst_108 = arith.constant 5.000000e-01 : f32
    %307 = vector.broadcast %cst_108 : f32 to vector<8x128xf32>
    %308 = arith.mulf %307, %306 : vector<8x128xf32>
    %309 = math.tanh %308 : vector<8x128xf32>
    %cst_109 = arith.constant 5.000000e-01 : f32
    %310 = vector.broadcast %cst_109 : f32 to vector<8x128xf32>
    %311 = arith.mulf %310, %309 : vector<8x128xf32>
    %cst_110 = arith.constant 5.000000e-01 : f32
    %312 = vector.broadcast %cst_110 : f32 to vector<8x128xf32>
    %313 = arith.addf %311, %312 : vector<8x128xf32>
    %314 = vector.extract_strided_slice %297 {offsets = [0, 256], sizes = [8, 128], strides = [1, 1]} : vector<8x512xf32> to vector<8x128xf32>
    %315 = math.tanh %314 : vector<8x128xf32>
    %316 = vector.extract_strided_slice %297 {offsets = [0, 384], sizes = [8, 128], strides = [1, 1]} : vector<8x512xf32> to vector<8x128xf32>
    %cst_111 = arith.constant 5.000000e-01 : f32
    %317 = vector.broadcast %cst_111 : f32 to vector<8x128xf32>
    %318 = arith.mulf %317, %316 : vector<8x128xf32>
    %319 = math.tanh %318 : vector<8x128xf32>
    %cst_112 = arith.constant 5.000000e-01 : f32
    %320 = vector.broadcast %cst_112 : f32 to vector<8x128xf32>
    %321 = arith.mulf %320, %319 : vector<8x128xf32>
    %cst_113 = arith.constant 5.000000e-01 : f32
    %322 = vector.broadcast %cst_113 : f32 to vector<8x128xf32>
    %323 = arith.addf %321, %322 : vector<8x128xf32>
    %324 = arith.mulf %313, %286 : vector<8x128xf32>
    %325 = arith.mulf %305, %315 : vector<8x128xf32>
    %326 = arith.addf %324, %325 : vector<8x128xf32>
    %327 = math.tanh %326 : vector<8x128xf32>
    %328 = arith.mulf %323, %327 : vector<8x128xf32>
    %329 = arith.index_cast %292 : i32 to index
    %c0_114 = arith.constant 0 : index
    %330 = vector.load %arg12[%329, %c0_114] : memref<64x128xf32, #tpu.memory_space<vmem>>, vector<8x128xf32>
    tpu.vector_store %arg12[%329, %c0_114], %328 {strides = array<i32>} : memref<64x128xf32, #tpu.memory_space<vmem>>, vector<8x128xf32>,
    %c8_i32_115 = arith.constant 8 : i32
    %c0_116 = arith.constant 0 : index
    %c0_117 = arith.constant 0 : index
    %331 = vector.load %arg5[%c0_116, %c0_117] : memref<128x512xbf16, #tpu.memory_space<vmem>>, vector<128x512xbf16>
    %c0_118 = arith.constant 0 : index
    %c0_119 = arith.constant 0 : index
    %332 = vector.load %arg6[%c0_118, %c0_119] : memref<128x512xbf16, #tpu.memory_space<vmem>>, vector<128x512xbf16>
    %c0_120 = arith.constant 0 : index
    %c0_121 = arith.constant 0 : index
    %333 = vector.load %arg7[%c0_120, %c0_121] : memref<1x512xf32, #tpu.memory_space<vmem>>, vector<1x512xf32>
    %c0_122 = arith.constant 0 : index
    %c0_123 = arith.constant 0 : index
    %334 = vector.load %arg12[%c0_122, %c0_123] : memref<64x128xf32, #tpu.memory_space<vmem>>, vector<64x128xf32>
    %335 = arith.truncf %334 : vector<64x128xf32> to vector<64x128xbf16>
    %cst_124 = arith.constant dense<0.000000e+00> : vector<64x512xf32>
    %336 = tpu.matmul %335, %331, %cst_124 {dimension_numbers = #tpu.dot_dimension_numbers<[1], [0], [0], [1], [0, 0, 1, 1], [], []>} : vector<64x128xbf16>, vector<128x512xbf16>, vector<64x512xf32> -> vector<64x512xf32>
    %337 = vector.broadcast %333 : vector<1x512xf32> to vector<64x512xf32>
    %338 = arith.addf %336, %337 : vector<64x512xf32>
    %c0_125 = arith.constant 0 : index
    %c0_126 = arith.constant 0 : index
    %339 = vector.load %arg11[%c0_125, %c0_126] : memref<64x512xf32, #tpu.memory_space<vmem>>, vector<64x512xf32>
    tpu.vector_store %arg11[%c0_125, %c0_126], %338 {strides = array<i32>} : memref<64x512xf32, #tpu.memory_space<vmem>>, vector<64x512xf32>,
    %cst_127 = arith.constant 0.000000e+00 : f32
    %340 = vector.broadcast %cst_127 : f32 to vector<8x128xf32>
    %cst_128 = arith.constant 0.000000e+00 : f32
    %341 = vector.broadcast %cst_128 : f32 to vector<8x128xf32>
    %c0_i32_129 = arith.constant 0 : i32
    %c8_i32_130 = arith.constant 8 : i32
    %342 = arith.muli %c0_i32_129, %c8_i32_130 : i32
    %343 = tpu.assume_multiple %342, 8 : i32
    %344 = arith.index_cast %343 : i32 to index
    %c0_131 = arith.constant 0 : index
    %345 = vector.load %arg11[%344, %c0_131] : memref<64x512xf32, #tpu.memory_space<vmem>>, vector<8x512xf32>
    %346 = arith.truncf %340 : vector<8x128xf32> to vector<8x128xbf16>
    %cst_132 = arith.constant dense<0.000000e+00> : vector<8x512xf32>
    %347 = tpu.matmul %346, %332, %cst_132 {dimension_numbers = #tpu.dot_dimension_numbers<[1], [0], [0], [1], [0, 0, 1, 1], [], []>} : vector<8x128xbf16>, vector<128x512xbf16>, vector<8x512xf32> -> vector<8x512xf32>
    %348 = arith.addf %345, %347 : vector<8x512xf32>
    %349 = vector.extract_strided_slice %348 {offsets = [0, 0], sizes = [8, 128], strides = [1, 1]} : vector<8x512xf32> to vector<8x128xf32>
    %cst_133 = arith.constant 5.000000e-01 : f32
    %350 = vector.broadcast %cst_133 : f32 to vector<8x128xf32>
    %351 = arith.mulf %350, %349 : vector<8x128xf32>
    %352 = math.tanh %351 : vector<8x128xf32>
    %cst_134 = arith.constant 5.000000e-01 : f32
    %353 = vector.broadcast %cst_134 : f32 to vector<8x128xf32>
    %354 = arith.mulf %353, %352 : vector<8x128xf32>
    %cst_135 = arith.constant 5.000000e-01 : f32
    %355 = vector.broadcast %cst_135 : f32 to vector<8x128xf32>
    %356 = arith.addf %354, %355 : vector<8x128xf32>
    %357 = vector.extract_strided_slice %348 {offsets = [0, 128], sizes = [8, 128], strides = [1, 1]} : vector<8x512xf32> to vector<8x128xf32>
    %cst_136 = arith.constant 5.000000e-01 : f32
    %358 = vector.broadcast %cst_136 : f32 to vector<8x128xf32>
    %359 = arith.mulf %358, %357 : vector<8x128xf32>
    %360 = math.tanh %359 : vector<8x128xf32>
    %cst_137 = arith.constant 5.000000e-01 : f32
    %361 = vector.broadcast %cst_137 : f32 to vector<8x128xf32>
    %362 = arith.mulf %361, %360 : vector<8x128xf32>
    %cst_138 = arith.constant 5.000000e-01 : f32
    %363 = vector.broadcast %cst_138 : f32 to vector<8x128xf32>
    %364 = arith.addf %362, %363 : vector<8x128xf32>
    %365 = vector.extract_strided_slice %348 {offsets = [0, 256], sizes = [8, 128], strides = [1, 1]} : vector<8x512xf32> to vector<8x128xf32>
    %366 = math.tanh %365 : vector<8x128xf32>
    %367 = vector.extract_strided_slice %348 {offsets = [0, 384], sizes = [8, 128], strides = [1, 1]} : vector<8x512xf32> to vector<8x128xf32>
    %cst_139 = arith.constant 5.000000e-01 : f32
    %368 = vector.broadcast %cst_139 : f32 to vector<8x128xf32>
    %369 = arith.mulf %368, %367 : vector<8x128xf32>
    %370 = math.tanh %369 : vector<8x128xf32>
    %cst_140 = arith.constant 5.000000e-01 : f32
    %371 = vector.broadcast %cst_140 : f32 to vector<8x128xf32>
    %372 = arith.mulf %371, %370 : vector<8x128xf32>
    %cst_141 = arith.constant 5.000000e-01 : f32
    %373 = vector.broadcast %cst_141 : f32 to vector<8x128xf32>
    %374 = arith.addf %372, %373 : vector<8x128xf32>
    %375 = arith.mulf %364, %341 : vector<8x128xf32>
    %376 = arith.mulf %356, %366 : vector<8x128xf32>
    %377 = arith.addf %375, %376 : vector<8x128xf32>
    %378 = math.tanh %377 : vector<8x128xf32>
    %379 = arith.mulf %374, %378 : vector<8x128xf32>
    %380 = arith.index_cast %343 : i32 to index
    %c0_142 = arith.constant 0 : index
    %381 = vector.load %arg12[%380, %c0_142] : memref<64x128xf32, #tpu.memory_space<vmem>>, vector<8x128xf32>
    tpu.vector_store %arg12[%380, %c0_142], %379 {strides = array<i32>} : memref<64x128xf32, #tpu.memory_space<vmem>>, vector<8x128xf32>,
    %c1_i32_143 = arith.constant 1 : i32
    %c8_i32_144 = arith.constant 8 : i32
    %382 = arith.muli %c1_i32_143, %c8_i32_144 : i32
    %383 = tpu.assume_multiple %382, 8 : i32
    %384 = arith.index_cast %383 : i32 to index
    %c0_145 = arith.constant 0 : index
    %385 = vector.load %arg11[%384, %c0_145] : memref<64x512xf32, #tpu.memory_space<vmem>>, vector<8x512xf32>
    %386 = arith.truncf %379 : vector<8x128xf32> to vector<8x128xbf16>
    %cst_146 = arith.constant dense<0.000000e+00> : vector<8x512xf32>
    %387 = tpu.matmul %386, %332, %cst_146 {dimension_numbers = #tpu.dot_dimension_numbers<[1], [0], [0], [1], [0, 0, 1, 1], [], []>} : vector<8x128xbf16>, vector<128x512xbf16>, vector<8x512xf32> -> vector<8x512xf32>
    %388 = arith.addf %385, %387 : vector<8x512xf32>
    %389 = vector.extract_strided_slice %388 {offsets = [0, 0], sizes = [8, 128], strides = [1, 1]} : vector<8x512xf32> to vector<8x128xf32>
    %cst_147 = arith.constant 5.000000e-01 : f32
    %390 = vector.broadcast %cst_147 : f32 to vector<8x128xf32>
    %391 = arith.mulf %390, %389 : vector<8x128xf32>
    %392 = math.tanh %391 : vector<8x128xf32>
    %cst_148 = arith.constant 5.000000e-01 : f32
    %393 = vector.broadcast %cst_148 : f32 to vector<8x128xf32>
    %394 = arith.mulf %393, %392 : vector<8x128xf32>
    %cst_149 = arith.constant 5.000000e-01 : f32
    %395 = vector.broadcast %cst_149 : f32 to vector<8x128xf32>
    %396 = arith.addf %394, %395 : vector<8x128xf32>
    %397 = vector.extract_strided_slice %388 {offsets = [0, 128], sizes = [8, 128], strides = [1, 1]} : vector<8x512xf32> to vector<8x128xf32>
    %cst_150 = arith.constant 5.000000e-01 : f32
    %398 = vector.broadcast %cst_150 : f32 to vector<8x128xf32>
    %399 = arith.mulf %398, %397 : vector<8x128xf32>
    %400 = math.tanh %399 : vector<8x128xf32>
    %cst_151 = arith.constant 5.000000e-01 : f32
    %401 = vector.broadcast %cst_151 : f32 to vector<8x128xf32>
    %402 = arith.mulf %401, %400 : vector<8x128xf32>
    %cst_152 = arith.constant 5.000000e-01 : f32
    %403 = vector.broadcast %cst_152 : f32 to vector<8x128xf32>
    %404 = arith.addf %402, %403 : vector<8x128xf32>
    %405 = vector.extract_strided_slice %388 {offsets = [0, 256], sizes = [8, 128], strides = [1, 1]} : vector<8x512xf32> to vector<8x128xf32>
    %406 = math.tanh %405 : vector<8x128xf32>
    %407 = vector.extract_strided_slice %388 {offsets = [0, 384], sizes = [8, 128], strides = [1, 1]} : vector<8x512xf32> to vector<8x128xf32>
    %cst_153 = arith.constant 5.000000e-01 : f32
    %408 = vector.broadcast %cst_153 : f32 to vector<8x128xf32>
    %409 = arith.mulf %408, %407 : vector<8x128xf32>
    %410 = math.tanh %409 : vector<8x128xf32>
    %cst_154 = arith.constant 5.000000e-01 : f32
    %411 = vector.broadcast %cst_154 : f32 to vector<8x128xf32>
    %412 = arith.mulf %411, %410 : vector<8x128xf32>
    %cst_155 = arith.constant 5.000000e-01 : f32
    %413 = vector.broadcast %cst_155 : f32 to vector<8x128xf32>
    %414 = arith.addf %412, %413 : vector<8x128xf32>
    %415 = arith.mulf %404, %377 : vector<8x128xf32>
    %416 = arith.mulf %396, %406 : vector<8x128xf32>
    %417 = arith.addf %415, %416 : vector<8x128xf32>
    %418 = math.tanh %417 : vector<8x128xf32>
    %419 = arith.mulf %414, %418 : vector<8x128xf32>
    %420 = arith.index_cast %383 : i32 to index
    %c0_156 = arith.constant 0 : index
    %421 = vector.load %arg12[%420, %c0_156] : memref<64x128xf32, #tpu.memory_space<vmem>>, vector<8x128xf32>
    tpu.vector_store %arg12[%420, %c0_156], %419 {strides = array<i32>} : memref<64x128xf32, #tpu.memory_space<vmem>>, vector<8x128xf32>,
    %c2_i32_157 = arith.constant 2 : i32
    %c8_i32_158 = arith.constant 8 : i32
    %422 = arith.muli %c2_i32_157, %c8_i32_158 : i32
    %423 = tpu.assume_multiple %422, 8 : i32
    %424 = arith.index_cast %423 : i32 to index
    %c0_159 = arith.constant 0 : index
    %425 = vector.load %arg11[%424, %c0_159] : memref<64x512xf32, #tpu.memory_space<vmem>>, vector<8x512xf32>
    %426 = arith.truncf %419 : vector<8x128xf32> to vector<8x128xbf16>
    %cst_160 = arith.constant dense<0.000000e+00> : vector<8x512xf32>
    %427 = tpu.matmul %426, %332, %cst_160 {dimension_numbers = #tpu.dot_dimension_numbers<[1], [0], [0], [1], [0, 0, 1, 1], [], []>} : vector<8x128xbf16>, vector<128x512xbf16>, vector<8x512xf32> -> vector<8x512xf32>
    %428 = arith.addf %425, %427 : vector<8x512xf32>
    %429 = vector.extract_strided_slice %428 {offsets = [0, 0], sizes = [8, 128], strides = [1, 1]} : vector<8x512xf32> to vector<8x128xf32>
    %cst_161 = arith.constant 5.000000e-01 : f32
    %430 = vector.broadcast %cst_161 : f32 to vector<8x128xf32>
    %431 = arith.mulf %430, %429 : vector<8x128xf32>
    %432 = math.tanh %431 : vector<8x128xf32>
    %cst_162 = arith.constant 5.000000e-01 : f32
    %433 = vector.broadcast %cst_162 : f32 to vector<8x128xf32>
    %434 = arith.mulf %433, %432 : vector<8x128xf32>
    %cst_163 = arith.constant 5.000000e-01 : f32
    %435 = vector.broadcast %cst_163 : f32 to vector<8x128xf32>
    %436 = arith.addf %434, %435 : vector<8x128xf32>
    %437 = vector.extract_strided_slice %428 {offsets = [0, 128], sizes = [8, 128], strides = [1, 1]} : vector<8x512xf32> to vector<8x128xf32>
    %cst_164 = arith.constant 5.000000e-01 : f32
    %438 = vector.broadcast %cst_164 : f32 to vector<8x128xf32>
    %439 = arith.mulf %438, %437 : vector<8x128xf32>
    %440 = math.tanh %439 : vector<8x128xf32>
    %cst_165 = arith.constant 5.000000e-01 : f32
    %441 = vector.broadcast %cst_165 : f32 to vector<8x128xf32>
    %442 = arith.mulf %441, %440 : vector<8x128xf32>
    %cst_166 = arith.constant 5.000000e-01 : f32
    %443 = vector.broadcast %cst_166 : f32 to vector<8x128xf32>
    %444 = arith.addf %442, %443 : vector<8x128xf32>
    %445 = vector.extract_strided_slice %428 {offsets = [0, 256], sizes = [8, 128], strides = [1, 1]} : vector<8x512xf32> to vector<8x128xf32>
    %446 = math.tanh %445 : vector<8x128xf32>
    %447 = vector.extract_strided_slice %428 {offsets = [0, 384], sizes = [8, 128], strides = [1, 1]} : vector<8x512xf32> to vector<8x128xf32>
    %cst_167 = arith.constant 5.000000e-01 : f32
    %448 = vector.broadcast %cst_167 : f32 to vector<8x128xf32>
    %449 = arith.mulf %448, %447 : vector<8x128xf32>
    %450 = math.tanh %449 : vector<8x128xf32>
    %cst_168 = arith.constant 5.000000e-01 : f32
    %451 = vector.broadcast %cst_168 : f32 to vector<8x128xf32>
    %452 = arith.mulf %451, %450 : vector<8x128xf32>
    %cst_169 = arith.constant 5.000000e-01 : f32
    %453 = vector.broadcast %cst_169 : f32 to vector<8x128xf32>
    %454 = arith.addf %452, %453 : vector<8x128xf32>
    %455 = arith.mulf %444, %417 : vector<8x128xf32>
    %456 = arith.mulf %436, %446 : vector<8x128xf32>
    %457 = arith.addf %455, %456 : vector<8x128xf32>
    %458 = math.tanh %457 : vector<8x128xf32>
    %459 = arith.mulf %454, %458 : vector<8x128xf32>
    %460 = arith.index_cast %423 : i32 to index
    %c0_170 = arith.constant 0 : index
    %461 = vector.load %arg12[%460, %c0_170] : memref<64x128xf32, #tpu.memory_space<vmem>>, vector<8x128xf32>
    tpu.vector_store %arg12[%460, %c0_170], %459 {strides = array<i32>} : memref<64x128xf32, #tpu.memory_space<vmem>>, vector<8x128xf32>,
    %c3_i32_171 = arith.constant 3 : i32
    %c8_i32_172 = arith.constant 8 : i32
    %462 = arith.muli %c3_i32_171, %c8_i32_172 : i32
    %463 = tpu.assume_multiple %462, 8 : i32
    %464 = arith.index_cast %463 : i32 to index
    %c0_173 = arith.constant 0 : index
    %465 = vector.load %arg11[%464, %c0_173] : memref<64x512xf32, #tpu.memory_space<vmem>>, vector<8x512xf32>
    %466 = arith.truncf %459 : vector<8x128xf32> to vector<8x128xbf16>
    %cst_174 = arith.constant dense<0.000000e+00> : vector<8x512xf32>
    %467 = tpu.matmul %466, %332, %cst_174 {dimension_numbers = #tpu.dot_dimension_numbers<[1], [0], [0], [1], [0, 0, 1, 1], [], []>} : vector<8x128xbf16>, vector<128x512xbf16>, vector<8x512xf32> -> vector<8x512xf32>
    %468 = arith.addf %465, %467 : vector<8x512xf32>
    %469 = vector.extract_strided_slice %468 {offsets = [0, 0], sizes = [8, 128], strides = [1, 1]} : vector<8x512xf32> to vector<8x128xf32>
    %cst_175 = arith.constant 5.000000e-01 : f32
    %470 = vector.broadcast %cst_175 : f32 to vector<8x128xf32>
    %471 = arith.mulf %470, %469 : vector<8x128xf32>
    %472 = math.tanh %471 : vector<8x128xf32>
    %cst_176 = arith.constant 5.000000e-01 : f32
    %473 = vector.broadcast %cst_176 : f32 to vector<8x128xf32>
    %474 = arith.mulf %473, %472 : vector<8x128xf32>
    %cst_177 = arith.constant 5.000000e-01 : f32
    %475 = vector.broadcast %cst_177 : f32 to vector<8x128xf32>
    %476 = arith.addf %474, %475 : vector<8x128xf32>
    %477 = vector.extract_strided_slice %468 {offsets = [0, 128], sizes = [8, 128], strides = [1, 1]} : vector<8x512xf32> to vector<8x128xf32>
    %cst_178 = arith.constant 5.000000e-01 : f32
    %478 = vector.broadcast %cst_178 : f32 to vector<8x128xf32>
    %479 = arith.mulf %478, %477 : vector<8x128xf32>
    %480 = math.tanh %479 : vector<8x128xf32>
    %cst_179 = arith.constant 5.000000e-01 : f32
    %481 = vector.broadcast %cst_179 : f32 to vector<8x128xf32>
    %482 = arith.mulf %481, %480 : vector<8x128xf32>
    %cst_180 = arith.constant 5.000000e-01 : f32
    %483 = vector.broadcast %cst_180 : f32 to vector<8x128xf32>
    %484 = arith.addf %482, %483 : vector<8x128xf32>
    %485 = vector.extract_strided_slice %468 {offsets = [0, 256], sizes = [8, 128], strides = [1, 1]} : vector<8x512xf32> to vector<8x128xf32>
    %486 = math.tanh %485 : vector<8x128xf32>
    %487 = vector.extract_strided_slice %468 {offsets = [0, 384], sizes = [8, 128], strides = [1, 1]} : vector<8x512xf32> to vector<8x128xf32>
    %cst_181 = arith.constant 5.000000e-01 : f32
    %488 = vector.broadcast %cst_181 : f32 to vector<8x128xf32>
    %489 = arith.mulf %488, %487 : vector<8x128xf32>
    %490 = math.tanh %489 : vector<8x128xf32>
    %cst_182 = arith.constant 5.000000e-01 : f32
    %491 = vector.broadcast %cst_182 : f32 to vector<8x128xf32>
    %492 = arith.mulf %491, %490 : vector<8x128xf32>
    %cst_183 = arith.constant 5.000000e-01 : f32
    %493 = vector.broadcast %cst_183 : f32 to vector<8x128xf32>
    %494 = arith.addf %492, %493 : vector<8x128xf32>
    %495 = arith.mulf %484, %457 : vector<8x128xf32>
    %496 = arith.mulf %476, %486 : vector<8x128xf32>
    %497 = arith.addf %495, %496 : vector<8x128xf32>
    %498 = math.tanh %497 : vector<8x128xf32>
    %499 = arith.mulf %494, %498 : vector<8x128xf32>
    %500 = arith.index_cast %463 : i32 to index
    %c0_184 = arith.constant 0 : index
    %501 = vector.load %arg12[%500, %c0_184] : memref<64x128xf32, #tpu.memory_space<vmem>>, vector<8x128xf32>
    tpu.vector_store %arg12[%500, %c0_184], %499 {strides = array<i32>} : memref<64x128xf32, #tpu.memory_space<vmem>>, vector<8x128xf32>,
    %c4_i32_185 = arith.constant 4 : i32
    %c8_i32_186 = arith.constant 8 : i32
    %502 = arith.muli %c4_i32_185, %c8_i32_186 : i32
    %503 = tpu.assume_multiple %502, 8 : i32
    %504 = arith.index_cast %503 : i32 to index
    %c0_187 = arith.constant 0 : index
    %505 = vector.load %arg11[%504, %c0_187] : memref<64x512xf32, #tpu.memory_space<vmem>>, vector<8x512xf32>
    %506 = arith.truncf %499 : vector<8x128xf32> to vector<8x128xbf16>
    %cst_188 = arith.constant dense<0.000000e+00> : vector<8x512xf32>
    %507 = tpu.matmul %506, %332, %cst_188 {dimension_numbers = #tpu.dot_dimension_numbers<[1], [0], [0], [1], [0, 0, 1, 1], [], []>} : vector<8x128xbf16>, vector<128x512xbf16>, vector<8x512xf32> -> vector<8x512xf32>
    %508 = arith.addf %505, %507 : vector<8x512xf32>
    %509 = vector.extract_strided_slice %508 {offsets = [0, 0], sizes = [8, 128], strides = [1, 1]} : vector<8x512xf32> to vector<8x128xf32>
    %cst_189 = arith.constant 5.000000e-01 : f32
    %510 = vector.broadcast %cst_189 : f32 to vector<8x128xf32>
    %511 = arith.mulf %510, %509 : vector<8x128xf32>
    %512 = math.tanh %511 : vector<8x128xf32>
    %cst_190 = arith.constant 5.000000e-01 : f32
    %513 = vector.broadcast %cst_190 : f32 to vector<8x128xf32>
    %514 = arith.mulf %513, %512 : vector<8x128xf32>
    %cst_191 = arith.constant 5.000000e-01 : f32
    %515 = vector.broadcast %cst_191 : f32 to vector<8x128xf32>
    %516 = arith.addf %514, %515 : vector<8x128xf32>
    %517 = vector.extract_strided_slice %508 {offsets = [0, 128], sizes = [8, 128], strides = [1, 1]} : vector<8x512xf32> to vector<8x128xf32>
    %cst_192 = arith.constant 5.000000e-01 : f32
    %518 = vector.broadcast %cst_192 : f32 to vector<8x128xf32>
    %519 = arith.mulf %518, %517 : vector<8x128xf32>
    %520 = math.tanh %519 : vector<8x128xf32>
    %cst_193 = arith.constant 5.000000e-01 : f32
    %521 = vector.broadcast %cst_193 : f32 to vector<8x128xf32>
    %522 = arith.mulf %521, %520 : vector<8x128xf32>
    %cst_194 = arith.constant 5.000000e-01 : f32
    %523 = vector.broadcast %cst_194 : f32 to vector<8x128xf32>
    %524 = arith.addf %522, %523 : vector<8x128xf32>
    %525 = vector.extract_strided_slice %508 {offsets = [0, 256], sizes = [8, 128], strides = [1, 1]} : vector<8x512xf32> to vector<8x128xf32>
    %526 = math.tanh %525 : vector<8x128xf32>
    %527 = vector.extract_strided_slice %508 {offsets = [0, 384], sizes = [8, 128], strides = [1, 1]} : vector<8x512xf32> to vector<8x128xf32>
    %cst_195 = arith.constant 5.000000e-01 : f32
    %528 = vector.broadcast %cst_195 : f32 to vector<8x128xf32>
    %529 = arith.mulf %528, %527 : vector<8x128xf32>
    %530 = math.tanh %529 : vector<8x128xf32>
    %cst_196 = arith.constant 5.000000e-01 : f32
    %531 = vector.broadcast %cst_196 : f32 to vector<8x128xf32>
    %532 = arith.mulf %531, %530 : vector<8x128xf32>
    %cst_197 = arith.constant 5.000000e-01 : f32
    %533 = vector.broadcast %cst_197 : f32 to vector<8x128xf32>
    %534 = arith.addf %532, %533 : vector<8x128xf32>
    %535 = arith.mulf %524, %497 : vector<8x128xf32>
    %536 = arith.mulf %516, %526 : vector<8x128xf32>
    %537 = arith.addf %535, %536 : vector<8x128xf32>
    %538 = math.tanh %537 : vector<8x128xf32>
    %539 = arith.mulf %534, %538 : vector<8x128xf32>
    %540 = arith.index_cast %503 : i32 to index
    %c0_198 = arith.constant 0 : index
    %541 = vector.load %arg12[%540, %c0_198] : memref<64x128xf32, #tpu.memory_space<vmem>>, vector<8x128xf32>
    tpu.vector_store %arg12[%540, %c0_198], %539 {strides = array<i32>} : memref<64x128xf32, #tpu.memory_space<vmem>>, vector<8x128xf32>,
    %c5_i32_199 = arith.constant 5 : i32
    %c8_i32_200 = arith.constant 8 : i32
    %542 = arith.muli %c5_i32_199, %c8_i32_200 : i32
    %543 = tpu.assume_multiple %542, 8 : i32
    %544 = arith.index_cast %543 : i32 to index
    %c0_201 = arith.constant 0 : index
    %545 = vector.load %arg11[%544, %c0_201] : memref<64x512xf32, #tpu.memory_space<vmem>>, vector<8x512xf32>
    %546 = arith.truncf %539 : vector<8x128xf32> to vector<8x128xbf16>
    %cst_202 = arith.constant dense<0.000000e+00> : vector<8x512xf32>
    %547 = tpu.matmul %546, %332, %cst_202 {dimension_numbers = #tpu.dot_dimension_numbers<[1], [0], [0], [1], [0, 0, 1, 1], [], []>} : vector<8x128xbf16>, vector<128x512xbf16>, vector<8x512xf32> -> vector<8x512xf32>
    %548 = arith.addf %545, %547 : vector<8x512xf32>
    %549 = vector.extract_strided_slice %548 {offsets = [0, 0], sizes = [8, 128], strides = [1, 1]} : vector<8x512xf32> to vector<8x128xf32>
    %cst_203 = arith.constant 5.000000e-01 : f32
    %550 = vector.broadcast %cst_203 : f32 to vector<8x128xf32>
    %551 = arith.mulf %550, %549 : vector<8x128xf32>
    %552 = math.tanh %551 : vector<8x128xf32>
    %cst_204 = arith.constant 5.000000e-01 : f32
    %553 = vector.broadcast %cst_204 : f32 to vector<8x128xf32>
    %554 = arith.mulf %553, %552 : vector<8x128xf32>
    %cst_205 = arith.constant 5.000000e-01 : f32
    %555 = vector.broadcast %cst_205 : f32 to vector<8x128xf32>
    %556 = arith.addf %554, %555 : vector<8x128xf32>
    %557 = vector.extract_strided_slice %548 {offsets = [0, 128], sizes = [8, 128], strides = [1, 1]} : vector<8x512xf32> to vector<8x128xf32>
    %cst_206 = arith.constant 5.000000e-01 : f32
    %558 = vector.broadcast %cst_206 : f32 to vector<8x128xf32>
    %559 = arith.mulf %558, %557 : vector<8x128xf32>
    %560 = math.tanh %559 : vector<8x128xf32>
    %cst_207 = arith.constant 5.000000e-01 : f32
    %561 = vector.broadcast %cst_207 : f32 to vector<8x128xf32>
    %562 = arith.mulf %561, %560 : vector<8x128xf32>
    %cst_208 = arith.constant 5.000000e-01 : f32
    %563 = vector.broadcast %cst_208 : f32 to vector<8x128xf32>
    %564 = arith.addf %562, %563 : vector<8x128xf32>
    %565 = vector.extract_strided_slice %548 {offsets = [0, 256], sizes = [8, 128], strides = [1, 1]} : vector<8x512xf32> to vector<8x128xf32>
    %566 = math.tanh %565 : vector<8x128xf32>
    %567 = vector.extract_strided_slice %548 {offsets = [0, 384], sizes = [8, 128], strides = [1, 1]} : vector<8x512xf32> to vector<8x128xf32>
    %cst_209 = arith.constant 5.000000e-01 : f32
    %568 = vector.broadcast %cst_209 : f32 to vector<8x128xf32>
    %569 = arith.mulf %568, %567 : vector<8x128xf32>
    %570 = math.tanh %569 : vector<8x128xf32>
    %cst_210 = arith.constant 5.000000e-01 : f32
    %571 = vector.broadcast %cst_210 : f32 to vector<8x128xf32>
    %572 = arith.mulf %571, %570 : vector<8x128xf32>
    %cst_211 = arith.constant 5.000000e-01 : f32
    %573 = vector.broadcast %cst_211 : f32 to vector<8x128xf32>
    %574 = arith.addf %572, %573 : vector<8x128xf32>
    %575 = arith.mulf %564, %537 : vector<8x128xf32>
    %576 = arith.mulf %556, %566 : vector<8x128xf32>
    %577 = arith.addf %575, %576 : vector<8x128xf32>
    %578 = math.tanh %577 : vector<8x128xf32>
    %579 = arith.mulf %574, %578 : vector<8x128xf32>
    %580 = arith.index_cast %543 : i32 to index
    %c0_212 = arith.constant 0 : index
    %581 = vector.load %arg12[%580, %c0_212] : memref<64x128xf32, #tpu.memory_space<vmem>>, vector<8x128xf32>
    tpu.vector_store %arg12[%580, %c0_212], %579 {strides = array<i32>} : memref<64x128xf32, #tpu.memory_space<vmem>>, vector<8x128xf32>,
    %c6_i32_213 = arith.constant 6 : i32
    %c8_i32_214 = arith.constant 8 : i32
    %582 = arith.muli %c6_i32_213, %c8_i32_214 : i32
    %583 = tpu.assume_multiple %582, 8 : i32
    %584 = arith.index_cast %583 : i32 to index
    %c0_215 = arith.constant 0 : index
    %585 = vector.load %arg11[%584, %c0_215] : memref<64x512xf32, #tpu.memory_space<vmem>>, vector<8x512xf32>
    %586 = arith.truncf %579 : vector<8x128xf32> to vector<8x128xbf16>
    %cst_216 = arith.constant dense<0.000000e+00> : vector<8x512xf32>
    %587 = tpu.matmul %586, %332, %cst_216 {dimension_numbers = #tpu.dot_dimension_numbers<[1], [0], [0], [1], [0, 0, 1, 1], [], []>} : vector<8x128xbf16>, vector<128x512xbf16>, vector<8x512xf32> -> vector<8x512xf32>
    %588 = arith.addf %585, %587 : vector<8x512xf32>
    %589 = vector.extract_strided_slice %588 {offsets = [0, 0], sizes = [8, 128], strides = [1, 1]} : vector<8x512xf32> to vector<8x128xf32>
    %cst_217 = arith.constant 5.000000e-01 : f32
    %590 = vector.broadcast %cst_217 : f32 to vector<8x128xf32>
    %591 = arith.mulf %590, %589 : vector<8x128xf32>
    %592 = math.tanh %591 : vector<8x128xf32>
    %cst_218 = arith.constant 5.000000e-01 : f32
    %593 = vector.broadcast %cst_218 : f32 to vector<8x128xf32>
    %594 = arith.mulf %593, %592 : vector<8x128xf32>
    %cst_219 = arith.constant 5.000000e-01 : f32
    %595 = vector.broadcast %cst_219 : f32 to vector<8x128xf32>
    %596 = arith.addf %594, %595 : vector<8x128xf32>
    %597 = vector.extract_strided_slice %588 {offsets = [0, 128], sizes = [8, 128], strides = [1, 1]} : vector<8x512xf32> to vector<8x128xf32>
    %cst_220 = arith.constant 5.000000e-01 : f32
    %598 = vector.broadcast %cst_220 : f32 to vector<8x128xf32>
    %599 = arith.mulf %598, %597 : vector<8x128xf32>
    %600 = math.tanh %599 : vector<8x128xf32>
    %cst_221 = arith.constant 5.000000e-01 : f32
    %601 = vector.broadcast %cst_221 : f32 to vector<8x128xf32>
    %602 = arith.mulf %601, %600 : vector<8x128xf32>
    %cst_222 = arith.constant 5.000000e-01 : f32
    %603 = vector.broadcast %cst_222 : f32 to vector<8x128xf32>
    %604 = arith.addf %602, %603 : vector<8x128xf32>
    %605 = vector.extract_strided_slice %588 {offsets = [0, 256], sizes = [8, 128], strides = [1, 1]} : vector<8x512xf32> to vector<8x128xf32>
    %606 = math.tanh %605 : vector<8x128xf32>
    %607 = vector.extract_strided_slice %588 {offsets = [0, 384], sizes = [8, 128], strides = [1, 1]} : vector<8x512xf32> to vector<8x128xf32>
    %cst_223 = arith.constant 5.000000e-01 : f32
    %608 = vector.broadcast %cst_223 : f32 to vector<8x128xf32>
    %609 = arith.mulf %608, %607 : vector<8x128xf32>
    %610 = math.tanh %609 : vector<8x128xf32>
    %cst_224 = arith.constant 5.000000e-01 : f32
    %611 = vector.broadcast %cst_224 : f32 to vector<8x128xf32>
    %612 = arith.mulf %611, %610 : vector<8x128xf32>
    %cst_225 = arith.constant 5.000000e-01 : f32
    %613 = vector.broadcast %cst_225 : f32 to vector<8x128xf32>
    %614 = arith.addf %612, %613 : vector<8x128xf32>
    %615 = arith.mulf %604, %577 : vector<8x128xf32>
    %616 = arith.mulf %596, %606 : vector<8x128xf32>
    %617 = arith.addf %615, %616 : vector<8x128xf32>
    %618 = math.tanh %617 : vector<8x128xf32>
    %619 = arith.mulf %614, %618 : vector<8x128xf32>
    %620 = arith.index_cast %583 : i32 to index
    %c0_226 = arith.constant 0 : index
    %621 = vector.load %arg12[%620, %c0_226] : memref<64x128xf32, #tpu.memory_space<vmem>>, vector<8x128xf32>
    tpu.vector_store %arg12[%620, %c0_226], %619 {strides = array<i32>} : memref<64x128xf32, #tpu.memory_space<vmem>>, vector<8x128xf32>,
    %c7_i32_227 = arith.constant 7 : i32
    %c8_i32_228 = arith.constant 8 : i32
    %622 = arith.muli %c7_i32_227, %c8_i32_228 : i32
    %623 = tpu.assume_multiple %622, 8 : i32
    %624 = arith.index_cast %623 : i32 to index
    %c0_229 = arith.constant 0 : index
    %625 = vector.load %arg11[%624, %c0_229] : memref<64x512xf32, #tpu.memory_space<vmem>>, vector<8x512xf32>
    %626 = arith.truncf %619 : vector<8x128xf32> to vector<8x128xbf16>
    %cst_230 = arith.constant dense<0.000000e+00> : vector<8x512xf32>
    %627 = tpu.matmul %626, %332, %cst_230 {dimension_numbers = #tpu.dot_dimension_numbers<[1], [0], [0], [1], [0, 0, 1, 1], [], []>} : vector<8x128xbf16>, vector<128x512xbf16>, vector<8x512xf32> -> vector<8x512xf32>
    %628 = arith.addf %625, %627 : vector<8x512xf32>
    %629 = vector.extract_strided_slice %628 {offsets = [0, 0], sizes = [8, 128], strides = [1, 1]} : vector<8x512xf32> to vector<8x128xf32>
    %cst_231 = arith.constant 5.000000e-01 : f32
    %630 = vector.broadcast %cst_231 : f32 to vector<8x128xf32>
    %631 = arith.mulf %630, %629 : vector<8x128xf32>
    %632 = math.tanh %631 : vector<8x128xf32>
    %cst_232 = arith.constant 5.000000e-01 : f32
    %633 = vector.broadcast %cst_232 : f32 to vector<8x128xf32>
    %634 = arith.mulf %633, %632 : vector<8x128xf32>
    %cst_233 = arith.constant 5.000000e-01 : f32
    %635 = vector.broadcast %cst_233 : f32 to vector<8x128xf32>
    %636 = arith.addf %634, %635 : vector<8x128xf32>
    %637 = vector.extract_strided_slice %628 {offsets = [0, 128], sizes = [8, 128], strides = [1, 1]} : vector<8x512xf32> to vector<8x128xf32>
    %cst_234 = arith.constant 5.000000e-01 : f32
    %638 = vector.broadcast %cst_234 : f32 to vector<8x128xf32>
    %639 = arith.mulf %638, %637 : vector<8x128xf32>
    %640 = math.tanh %639 : vector<8x128xf32>
    %cst_235 = arith.constant 5.000000e-01 : f32
    %641 = vector.broadcast %cst_235 : f32 to vector<8x128xf32>
    %642 = arith.mulf %641, %640 : vector<8x128xf32>
    %cst_236 = arith.constant 5.000000e-01 : f32
    %643 = vector.broadcast %cst_236 : f32 to vector<8x128xf32>
    %644 = arith.addf %642, %643 : vector<8x128xf32>
    %645 = vector.extract_strided_slice %628 {offsets = [0, 256], sizes = [8, 128], strides = [1, 1]} : vector<8x512xf32> to vector<8x128xf32>
    %646 = math.tanh %645 : vector<8x128xf32>
    %647 = vector.extract_strided_slice %628 {offsets = [0, 384], sizes = [8, 128], strides = [1, 1]} : vector<8x512xf32> to vector<8x128xf32>
    %cst_237 = arith.constant 5.000000e-01 : f32
    %648 = vector.broadcast %cst_237 : f32 to vector<8x128xf32>
    %649 = arith.mulf %648, %647 : vector<8x128xf32>
    %650 = math.tanh %649 : vector<8x128xf32>
    %cst_238 = arith.constant 5.000000e-01 : f32
    %651 = vector.broadcast %cst_238 : f32 to vector<8x128xf32>
    %652 = arith.mulf %651, %650 : vector<8x128xf32>
    %cst_239 = arith.constant 5.000000e-01 : f32
    %653 = vector.broadcast %cst_239 : f32 to vector<8x128xf32>
    %654 = arith.addf %652, %653 : vector<8x128xf32>
    %655 = arith.mulf %644, %617 : vector<8x128xf32>
    %656 = arith.mulf %636, %646 : vector<8x128xf32>
    %657 = arith.addf %655, %656 : vector<8x128xf32>
    %658 = math.tanh %657 : vector<8x128xf32>
    %659 = arith.mulf %654, %658 : vector<8x128xf32>
    %660 = arith.index_cast %623 : i32 to index
    %c0_240 = arith.constant 0 : index
    %661 = vector.load %arg12[%660, %c0_240] : memref<64x128xf32, #tpu.memory_space<vmem>>, vector<8x128xf32>
    tpu.vector_store %arg12[%660, %c0_240], %659 {strides = array<i32>} : memref<64x128xf32, #tpu.memory_space<vmem>>, vector<8x128xf32>,
    %c8_i32_241 = arith.constant 8 : i32
    %c0_242 = arith.constant 0 : index
    %c0_243 = arith.constant 0 : index
    %662 = vector.load %arg12[%c0_242, %c0_243] : memref<64x128xf32, #tpu.memory_space<vmem>>, vector<64x128xf32>
    %663 = arith.truncf %662 : vector<64x128xf32> to vector<64x128xbf16>
    %c0_244 = arith.constant 0 : index
    %c0_245 = arith.constant 0 : index
    %664 = vector.load %arg8[%c0_244, %c0_245] : memref<128x128xbf16, #tpu.memory_space<vmem>>, vector<128x128xbf16>
    %cst_246 = arith.constant dense<0.000000e+00> : vector<64x128xf32>
    %665 = tpu.matmul %663, %664, %cst_246 {dimension_numbers = #tpu.dot_dimension_numbers<[1], [0], [0], [1], [0, 0, 1, 1], [], []>} : vector<64x128xbf16>, vector<128x128xbf16>, vector<64x128xf32> -> vector<64x128xf32>
    %c0_247 = arith.constant 0 : index
    %c0_248 = arith.constant 0 : index
    %666 = vector.load %arg9[%c0_247, %c0_248] : memref<1x128xf32, #tpu.memory_space<vmem>>, vector<1x128xf32>
    %667 = vector.broadcast %666 : vector<1x128xf32> to vector<64x128xf32>
    %668 = arith.addf %665, %667 : vector<64x128xf32>
    %cst_249 = arith.constant dense<0xFF800000> : vector<64xf32>
    %669 = vector.multi_reduction <maximumf>, %668, %cst_249 [1] : vector<64x128xf32> to vector<64xf32>
    %670 = vector.shape_cast %669 : vector<64xf32> to vector<64x1xf32>
    %671 = vector.broadcast %670 : vector<64x1xf32> to vector<64x128xf32>
    %672 = arith.subf %668, %671 : vector<64x128xf32>
    %673 = math.exp %672 : vector<64x128xf32>
    %cst_250 = arith.constant dense<0.000000e+00> : vector<64xf32>
    %674 = vector.multi_reduction <add>, %673, %cst_250 [1] : vector<64x128xf32> to vector<64xf32>
    %675 = vector.shape_cast %674 : vector<64xf32> to vector<64x1xf32>
    %676 = math.log %675 : vector<64x1xf32>
    %677 = arith.addf %670, %676 : vector<64x1xf32>
    %678 = vector.broadcast %677 : vector<64x1xf32> to vector<64x128xf32>
    %679 = arith.subf %668, %678 : vector<64x128xf32>
    %c0_251 = arith.constant 0 : index
    %c0_252 = arith.constant 0 : index
    %c0_253 = arith.constant 0 : index
    %680 = vector.load %arg10[%c0_251, %c0_252, %c0_253] : memref<1x64x128xf32, #tpu.memory_space<vmem>>, vector<1x64x128xf32>
    %681 = vector.shape_cast %680 : vector<1x64x128xf32> to vector<64x128xf32>
    %682 = vector.shape_cast %679 : vector<64x128xf32> to vector<1x64x128xf32>
    tpu.vector_store %arg10[%c0_251, %c0_252, %c0_253], %682 {strides = array<i32>} : memref<1x64x128xf32, #tpu.memory_space<vmem>>, vector<1x64x128xf32>,
    return
  }
  func.func @transform_0(%arg0: i32) -> (i32, i32, i32) {
    %c0_i32 = arith.constant 0 : i32
    %c0_i32_0 = arith.constant 0 : i32
    %c0_i32_1 = arith.constant 0 : i32
    return %arg0, %c0_i32, %c0_i32_0 : i32, i32, i32
  }
  func.func @transform_1(%arg0: i32) -> (i32, i32) {
    %c0_i32 = arith.constant 0 : i32
    %c0_i32_0 = arith.constant 0 : i32
    %c0_i32_1 = arith.constant 0 : i32
    return %c0_i32, %c0_i32_0 : i32, i32
  }
  func.func @transform_2(%arg0: i32) -> (i32, i32) {
    %c0_i32 = arith.constant 0 : i32
    %c0_i32_0 = arith.constant 0 : i32
    %c0_i32_1 = arith.constant 0 : i32
    return %c0_i32, %c0_i32_0 : i32, i32
  }
  func.func @transform_3(%arg0: i32) -> (i32, i32) {
    %c0_i32 = arith.constant 0 : i32
    %c0_i32_0 = arith.constant 0 : i32
    %c0_i32_1 = arith.constant 0 : i32
    return %c0_i32, %c0_i32_0 : i32, i32
  }
  func.func @transform_4(%arg0: i32) -> (i32, i32) {
    %c0_i32 = arith.constant 0 : i32
    %c0_i32_0 = arith.constant 0 : i32
    %c0_i32_1 = arith.constant 0 : i32
    return %c0_i32, %c0_i32_0 : i32, i32
  }
  func.func @transform_5(%arg0: i32) -> (i32, i32) {
    %c0_i32 = arith.constant 0 : i32
    %c0_i32_0 = arith.constant 0 : i32
    %c0_i32_1 = arith.constant 0 : i32
    return %c0_i32, %c0_i32_0 : i32, i32
  }
  func.func @transform_6(%arg0: i32) -> (i32, i32) {
    %c0_i32 = arith.constant 0 : i32
    %c0_i32_0 = arith.constant 0 : i32
    %c0_i32_1 = arith.constant 0 : i32
    return %c0_i32, %c0_i32_0 : i32, i32
  }
  func.func @transform_7(%arg0: i32) -> (i32, i32) {
    %c0_i32 = arith.constant 0 : i32
    %c0_i32_0 = arith.constant 0 : i32
    %c0_i32_1 = arith.constant 0 : i32
    return %c0_i32, %c0_i32_0 : i32, i32
  }
  func.func @transform_8(%arg0: i32) -> (i32, i32) {
    %c0_i32 = arith.constant 0 : i32
    %c0_i32_0 = arith.constant 0 : i32
    %c0_i32_1 = arith.constant 0 : i32
    return %c0_i32, %c0_i32_0 : i32, i32
  }
  func.func @transform_9(%arg0: i32) -> (i32, i32, i32) {
    %c0_i32 = arith.constant 0 : i32
    %c0_i32_0 = arith.constant 0 : i32
    %c0_i32_1 = arith.constant 0 : i32
    return %arg0, %c0_i32, %c0_i32_0 : i32, i32, i32
  }
}

</mosaic_0001>

<bundles_post_ra>
// kernel: tagger_forward.1
= control target key start
LH: loop header
LB: loop body
LE: loop exit
PB: predicated region body
PF: predicated region fallthrough
CT: control target
= control target key end

     0   :  { %14 = vsyncpa [#allocation5], 0  ;;  %s4101_s30 = smov 0   ;;  %s5850_s0 = inlined_call_operand.vmem [shape: bf16[2,64,128], index: 0, kind: input, shape index: {}]   ;;  %s5851_s1 = inlined_call_operand.vmem [shape: bf16[128,512], index: 1, kind: input, shape index: {}]   ;;  %s5852_s2 = inlined_call_operand.vmem [shape: bf16[128,512], index: 2, kind: input, shape index: {}]   ;;  %s5853_s3 = inlined_call_operand.vmem [shape: f32[1,512], index: 3, kind: input, shape index: {}]   ;;  %s5854_s4 = inlined_call_operand.vmem [shape: bf16[128,512], index: 4, kind: input, shape index: {}]   ;;  %s5855_s5 = inlined_call_operand.hbm [shape: bf16[128,512], index: 5, kind: input, shape index: {}]   ;;  %s5856_s6 = inlined_call_operand.vmem [shape: f32[1,512], index: 6, kind: input, shape index: {}]   ;;  %s5857_s7 = inlined_call_operand.vmem [shape: bf16[128,128], index: 7, kind: input, shape index: {}]   ;;  %s5858_s8 = inlined_call_operand.vmem [shape: f32[1,128], index: 8, kind: input, shape index: {}]   ;;  %s5859_s9 = inlined_call_operand.vmem [shape: f32[2,64,128], index: 9, kind: output, shape index: {}]  }
   0x1 LB: > { %s268_s12 = sshll.u32 %s5855_s5, 4  ;;  %s4110_s13 = sadd.s32 4294967295, %s4045_s30   ;;  %s4045_s30 = sphi %s4101_s30, %s20_s30   ;;  %s269_s12 = int_to_ptr.hbm [resolvable:$true] %s268_s12 }
   0x2   : > { %p3069_p0 = scmp.ge.s32.totalorder %s4045_s30, 1  ;;  %p245_p1 = scmp.lt.s32.totalorder %s4045_s30, 3 }
   0x3   : > { %p3798_p2 = scmp.eq.s32.totalorder %s4110_s13, 0  ;;  %s4047_s14 = smov [#allocation4]  }
   0x4   : > { %p246_p3 = pnand %p3069_p0, %p245_p1  ;;  %s270_s15 = sshll.u32 %s4047_s14, 4  ;;  %s271_s15 = int_to_ptr.vmem [resolvable:$true] %s270_s15 }
   0x5   : > { %s4048_s16 = smov 256   ;;  %s4049_s17 = smov 16  }
   0x6   : > { %p3794_p4 = pneg %p246_p3  ;;  %303 = sbr.rel (%p246_p3) target bundleno = 3062 (0xbf6), region = 56 }
   0x8   : > { %p3795_p5 = pnand %p3798_p2, %p3794_p4 }
   0xa   : > { %3797 = dma.hbm_to_vmem [thread:$0]  (!%p3795_p5), %s269_s12, 4096, %s271_s15, [#allocation5], %s4048_s16, %s4048_s16, %s4049_s17  }
   0xb   : > { %4040 = dma.done.wait (%p3798_p2), [#allocation5], 4096  }
   0xc   : > { %4042 = vsyncadd (%p3798_p2), [#allocation5], 4294963200  ;;  %v3208_v0 = vld [vmem:[%s5851_s1 + $0xe0] sm:$0xf]  ;;  %v3672_v1 = vld [vmem:[%s5851_s1 + $0xec] sm:$0xf0] }
   0xd   : > { %v3671_v2 = vld [vmem:[%s5851_s1 + $0xec] sm:$0xf]  ;;  %v3209_v3 = vor.u32 %v3672_v1, %v3208_v0  ;;  %v3218_v4 = vld [vmem:[%s5851_s1 + $0xf8] sm:$0xf0]  ;;  %v3336_v5 = vld [vmem:[%s5852_s2 + $0xe0] sm:$0xf] }
   0xe   : > { %v3704_v6 = vld [vmem:[%s5852_s2 + $0xec] sm:$0xf0]  ;;  %v3221_v7 = vor.u32 %v3671_v2, %v3218_v4  ;;  %v3192_v9 = vld [vmem:[%s5851_s1 + $0xc0] sm:$0xf]  ;;  %v3667_v11 = vld [vmem:[%s5851_s1 + $0xcc] sm:$0xf] }
   0xf   : > { %v4133_v8 = vor.u32 %v3704_v6, %v3336_v5  ;;  %v3668_v10 = vld [vmem:[%s5851_s1 + $0xcc] sm:$0xf0]  ;;  %617 = vmatpush.bf16.msra.mxu1 %v3209_v3  ;;  %3782 = vmatpush.bf16.msra.mxu2 %v3209_v3  ;;  %v3202_v13 = vld [vmem:[%s5851_s1 + $0xd8] sm:$0xf0]  ;;  %v3320_v14 = vld [vmem:[%s5852_s2 + $0xc0] sm:$0xf] }
  0x10   : > { %v3193_v12 = vor.u32 %v3668_v10, %v3192_v9  ;;  %v3700_v15 = vld [vmem:[%s5852_s2 + $0xcc] sm:$0xf0]  ;;  %704 = vmatpush.bf16.msra.mxu3 %v3221_v7  ;;  %v3205_v16 = vor.u32 %v3667_v11, %v3202_v13  ;;  %v3176_v18 = vld [vmem:[%s5851_s1 + $0xa0] sm:$0xf]  ;;  %v3663_v20 = vld [vmem:[%s5851_s1 + $0xac] sm:$0xf] }
  0x11   : > { %932 = vmatpush.bf16.msra.mxu0 %v4133_v8  ;;  %v4154_v17 = vor.u32 %v3700_v15, %v3320_v14  ;;  %v3664_v19 = vld [vmem:[%s5851_s1 + $0xac] sm:$0xf0]  ;;  %v3186_v21 = vld [vmem:[%s5851_s1 + $0xb8] sm:$0xf0]  ;;  %v3304_v22 = vld [vmem:[%s5852_s2 + $0xa0] sm:$0xf] }
  0x12   : > { %v3696_v23 = vld [vmem:[%s5852_s2 + $0xac] sm:$0xf0]  ;;  %v3177_v24 = vor.u32 %v3664_v19, %v3176_v18  ;;  %v3189_v25 = vor.u32 %v3663_v20, %v3186_v21  ;;  %v3160_v27 = vld [vmem:[%s5851_s1 + $0x80] sm:$0xf]  ;;  %v3659_v29 = vld [vmem:[%s5851_s1 + $0x8c] sm:$0xf] }
  0x13   : > { %618 = vmatpush.bf16.msra.mxu1 %v3193_v12  ;;  %3783 = vmatpush.bf16.msra.mxu2 %v3193_v12  ;;  %v4175_v26 = vor.u32 %v3696_v23, %v3304_v22  ;;  %v3660_v28 = vld [vmem:[%s5851_s1 + $0x8c] sm:$0xf0]  ;;  %v3170_v30 = vld [vmem:[%s5851_s1 + $0x98] sm:$0xf0]  ;;  %v3288_v31 = vld [vmem:[%s5852_s2 + $0x80] sm:$0xf] }
  0x14   : > { %705 = vmatpush.bf16.msra.mxu3 %v3205_v16  ;;  %v3692_v32 = vld [vmem:[%s5852_s2 + $0x8c] sm:$0xf0]  ;;  %v3161_v33 = vor.u32 %v3660_v28, %v3160_v27  ;;  %v3173_v34 = vor.u32 %v3659_v29, %v3170_v30  ;;  %v3144_v36 = vld [vmem:[%s5851_s1 + $0x60] sm:$0xf]  ;;  %v3655_v38 = vld [vmem:[%s5851_s1 + $0x6c] sm:$0xf] }
  0x15   : > { %933 = vmatpush.bf16.msra.mxu0 %v4154_v17  ;;  %v4196_v35 = vor.u32 %v3692_v32, %v3288_v31  ;;  %v3656_v37 = vld [vmem:[%s5851_s1 + $0x6c] sm:$0xf0]  ;;  %v3154_v39 = vld [vmem:[%s5851_s1 + $0x78] sm:$0xf0]  ;;  %v3272_v40 = vld [vmem:[%s5852_s2 + $0x60] sm:$0xf] }
  0x16   : > { %v3688_v41 = vld [vmem:[%s5852_s2 + $0x6c] sm:$0xf0]  ;;  %v3145_v42 = vor.u32 %v3656_v37, %v3144_v36  ;;  %p340_p6 = scmp.lt.s32.totalorder %s4110_s13, 1  ;;  %v3157_v43 = vor.u32 %v3655_v38, %v3154_v39  ;;  %v3128_v45 = vld [vmem:[%s5851_s1 + $0x40] sm:$0xf]  ;;  %v5860_v32 = vmov 0  }
  0x17   : > { %619 = vmatpush.bf16.msra.mxu1 %v3177_v24  ;;  %3784 = vmatpush.bf16.msra.mxu2 %v3177_v24  ;;  %v4218_v44 = vor.u32 %v3688_v41, %v3272_v40  ;;  %v3652_v46 = vld [vmem:[%s5851_s1 + $0x4c] sm:$0xf0]  ;;  %v3651_v47 = vld [vmem:[%s5851_s1 + $0x4c] sm:$0xf]  ;;  %v3138_v48 = vld [vmem:[%s5851_s1 + $0x58] sm:$0xf0] }
  0x18   : > { %706 = vmatpush.bf16.msra.mxu3 %v3189_v25  ;;  %v3256_v49 = vld [vmem:[%s5852_s2 + $0x40] sm:$0xf]  ;;  %v3684_v50 = vld [vmem:[%s5852_s2 + $0x4c] sm:$0xf0]  ;;  %v3129_v51 = vor.u32 %v3652_v46, %v3128_v45  ;;  %s5948_s13 = smov (!%p340_p6, %s4110_s13), 1  ;;  %v3141_v52 = vor.u32 %v3651_v47, %v3138_v48 }
  0x19   : > { %934 = vmatpush.bf16.msra.mxu0 %v4175_v26  ;;  %v4244_v53 = vor.u32 %v3684_v50, %v3256_v49  ;;  %v3112_v54 = vld [vmem:[%s5851_s1 + $0x20] sm:$0xf]  ;;  %v3648_v55 = vld [vmem:[%s5851_s1 + $0x2c] sm:$0xf0]  ;;  %v3647_v56 = vld [vmem:[%s5851_s1 + $0x2c] sm:$0xf] }
  0x1a   : > { %v3122_v57 = vld [vmem:[%s5851_s1 + $0x38] sm:$0xf0]  ;;  %v3240_v58 = vld [vmem:[%s5852_s2 + $0x20] sm:$0xf]  ;;  %v3680_v59 = vld [vmem:[%s5852_s2 + $0x2c] sm:$0xf0]  ;;  %v3113_v60 = vor.u32 %v3648_v55, %v3112_v54 }
  0x1b   : > { %620 = vmatpush.bf16.msra.mxu1 %v3161_v33  ;;  %3785 = vmatpush.bf16.msra.mxu2 %v3161_v33  ;;  %v3096_v61 = vld [vmem:[%s5851_s1] sm:$0xf]  ;;  %s3640_s28 = sshll.u32 %s5948_s13, 5  ;;  %v3125_v62 = vor.u32 %v3647_v56, %v3122_v57  ;;  %v4269_v63 = vor.u32 %v3680_v59, %v3240_v58  ;;  %v3644_v0 = vld [vmem:[%s5851_s1 + $0xc] sm:$0xf0]  ;;  %s3641_s12 = sshll.u32 %s5948_s13, 6 }
  0x1c   : > { %707 = vmatpush.bf16.msra.mxu3 %v3173_v34  ;;  %v3643_v1 = vld [vmem:[%s5851_s1 + $0xc] sm:$0xf]  ;;  %v3106_v2 = vld [vmem:[%s5851_s1 + $0x18] sm:$0xf0]  ;;  %v3224_v3 = vld [vmem:[%s5852_s2] sm:$0xf]  ;;  %s4292_s24 = scalar_lea.vmem %s5850_s0, %s3640_s28  ;;  %v3097_v10 = vor.u32 %v3644_v0, %v3096_v61  ;;  %s5822_s15 = scalar_lea.vmem %s5859_s9, %s3641_s12 }
  0x1d   : > { %935 = vmatpush.bf16.msra.mxu0 %v4196_v35  ;;  %v3676_v4 = vld [vmem:[%s5852_s2 + $0xc] sm:$0xf0]  ;;  %v3670_v5 = vld [vmem:[%s5851_s1 + $0xe4] sm:$0xf]  ;;  %v3210_v6 = vld [vmem:[%s5851_s1 + $0xf0] sm:$0xf0]  ;;  %v3109_v11 = vor.u32 %v3643_v1, %v3106_v2 }
  0x1e   : > { %v3216_v7 = vld [vmem:[%s5851_s1 + $0xe8] sm:$0xf]  ;;  %v3673_v9 = vld [vmem:[%s5851_s1 + $0xf4] sm:$0xf0]  ;;  %v4304_v12 = vor.u32 %v3676_v4, %v3224_v3  ;;  %v4307_v13 = vld [vmem:[%s4292_s24] sm:$0xff]  ;;  %v3213_v15 = vor.u32 %v3670_v5, %v3210_v6 }
  0x1f   : > { %621 = vmatpush.bf16.msra.mxu1 %v3145_v42  ;;  %3786 = vmatpush.bf16.msra.mxu2 %v3145_v42  ;;  %v4310_v14 = vld [vmem:[%s4292_s24 + $0x10] sm:$0xff]  ;;  %v3217_v16 = vor.u32 %v3673_v9, %v3216_v7  ;;  %v3666_v18 = vld [vmem:[%s5851_s1 + $0xc4] sm:$0xf]  ;;  %v3200_v20 = vld [vmem:[%s5851_s1 + $0xc8] sm:$0xf] }
  0x20   : > { %708 = vmatpush.bf16.msra.mxu3 %v3157_v43  ;;  %v3194_v19 = vld [vmem:[%s5851_s1 + $0xd0] sm:$0xf0]  ;;  %v3669_v21 = vld [vmem:[%s5851_s1 + $0xd4] sm:$0xf0]  ;;  %v3662_v24 = vld [vmem:[%s5851_s1 + $0xa4] sm:$0xf] }
  0x21   : > { %936 = vmatpush.bf16.msra.mxu0 %v4218_v44  ;;  %v3197_v22 = vor.u32 %v3666_v18, %v3194_v19  ;;  %v3201_v23 = vor.u32 %v3669_v21, %v3200_v20  ;;  %v3703_v25 = vld [vmem:[%s5852_s2 + $0xec] sm:$0xf]  ;;  %v3346_v27 = vld [vmem:[%s5852_s2 + $0xf8] sm:$0xf0]  ;;  %v3178_v28 = vld [vmem:[%s5851_s1 + $0xb0] sm:$0xf0] }
  0x22   : > { %v3184_v29 = vld [vmem:[%s5851_s1 + $0xa8] sm:$0xf]  ;;  %v3665_v30 = vld [vmem:[%s5851_s1 + $0xb4] sm:$0xf0]  ;;  %v4345_v31 = vor.u32 %v3703_v25, %v3346_v27  ;;  %v3699_v33 = vld [vmem:[%s5852_s2 + $0xcc] sm:$0xf]  ;;  %v3181_v36 = vor.u32 %v3662_v24, %v3178_v28 }
  0x23   : > { %622 = vmatpush.bf16.msra.mxu1 %v3129_v51  ;;  %3787 = vmatpush.bf16.msra.mxu2 %v3129_v51  ;;  %v3330_v34 = vld [vmem:[%s5852_s2 + $0xd8] sm:$0xf0]  ;;  %v3185_v37 = vor.u32 %v3665_v30, %v3184_v29  ;;  %v3658_v38 = vld [vmem:[%s5851_s1 + $0x84] sm:$0xf]  ;;  %v3162_v39 = vld [vmem:[%s5851_s1 + $0x90] sm:$0xf0] }
  0x24   : > { %709 = vmatpush.bf16.msra.mxu3 %v3141_v52  ;;  %v3168_v40 = vld [vmem:[%s5851_s1 + $0x88] sm:$0xf]  ;;  %v4366_v41 = vor.u32 %v3699_v33, %v3330_v34  ;;  %v3661_v42 = vld [vmem:[%s5851_s1 + $0x94] sm:$0xf0]  ;;  %v3695_v43 = vld [vmem:[%s5852_s2 + $0xac] sm:$0xf]  ;;  %v3165_v47 = vor.u32 %v3658_v38, %v3162_v39 }
  0x25   : > { %937 = vmatpush.bf16.msra.mxu0 %v4244_v53  ;;  %v3314_v45 = vld [vmem:[%s5852_s2 + $0xb8] sm:$0xf0]  ;;  %v3169_v48 = vor.u32 %v3661_v42, %v3168_v40  ;;  %v3654_v49 = vld [vmem:[%s5851_s1 + $0x64] sm:$0xf]  ;;  %v3691_v50 = vld [vmem:[%s5852_s2 + $0x8c] sm:$0xf] }
  0x26   : > { %v4378_v46 = vor.u32 %v3695_v43, %v3314_v45  ;;  %v3298_v51 = vld [vmem:[%s5852_s2 + $0x98] sm:$0xf0]  ;;  %v3146_v52 = vld [vmem:[%s5851_s1 + $0x70] sm:$0xf0]  ;;  %v3152_v54 = vld [vmem:[%s5851_s1 + $0x68] sm:$0xf] }
  0x27   : > { %623 = vmatpush.bf16.msra.mxu1 %v3113_v60  ;;  %3788 = vmatpush.bf16.msra.mxu2 %v3113_v60  ;;  %v3657_v55 = vld [vmem:[%s5851_s1 + $0x74] sm:$0xf0]  ;;  %v4400_v56 = vor.u32 %v3691_v50, %v3298_v51  ;;  %v4404_v57 = vld [vmem:[%s4292_s24 + $0x8] sm:$0xff]  ;;  %v3149_v59 = vor.u32 %v3654_v49, %v3146_v52  ;;  %v3650_v61 = vld [vmem:[%s5851_s1 + $0x44] sm:$0xf] }
  0x28   : > { %710 = vmatpush.bf16.msra.mxu3 %v3125_v62  ;;  %v4407_v58 = vld [vmem:[%s4292_s24 + $0x18] sm:$0xff]  ;;  %v3153_v60 = vor.u32 %v3657_v55, %v3152_v54  ;;  %v3130_v62 = vld [vmem:[%s5851_s1 + $0x50] sm:$0xf0]  ;;  %v3136_v0 = vld [vmem:[%s5851_s1 + $0x48] sm:$0xf] }
  0x29   : > { %938 = vmatpush.bf16.msra.mxu0 %v4269_v63  ;;  %v3653_v1 = vld [vmem:[%s5851_s1 + $0x54] sm:$0xf0]  ;;  %v3133_v2 = vor.u32 %v3650_v61, %v3130_v62  ;;  %v3646_v4 = vld [vmem:[%s5851_s1 + $0x24] sm:$0xf]  ;;  %v3687_v5 = vld [vmem:[%s5852_s2 + $0x6c] sm:$0xf] }
  0x2a   : > { %v3137_v3 = vor.u32 %v3653_v1, %v3136_v0  ;;  %v3282_v6 = vld [vmem:[%s5852_s2 + $0x78] sm:$0xf0]  ;;  %v3114_v7 = vld [vmem:[%s5851_s1 + $0x30] sm:$0xf0]  ;;  %v3120_v9 = vld [vmem:[%s5851_s1 + $0x28] sm:$0xf] }
  0x2b   : > { %624 = vmatpush.bf16.msra.mxu1 %v3097_v10  ;;  %3789 = vmatpush.bf16.msra.mxu2 %v3097_v10  ;;  %v3649_v10 = vld [vmem:[%s5851_s1 + $0x34] sm:$0xf0]  ;;  %v3266_v18 = vld [vmem:[%s5852_s2 + $0x58] sm:$0xf0]  ;;  %v3117_v19 = vor.u32 %v3646_v4, %v3114_v7  ;;  %v3098_v21 = vld [vmem:[%s5851_s1 + $0x10] sm:$0xf0] }
  0x2c   : > { %711 = vmatpush.bf16.msra.mxu3 %v3109_v11  ;;  %v4443_v11 = vor.u32 %v3687_v5, %v3282_v6  ;;  %v3121_v20 = vor.u32 %v3649_v10, %v3120_v9  ;;  %v3702_v25 = vld [vmem:[%s5852_s2 + $0xe4] sm:$0xf]  ;;  %v3679_v27 = vld [vmem:[%s5852_s2 + $0x2c] sm:$0xf]  ;;  %v3250_v28 = vld [vmem:[%s5852_s2 + $0x38] sm:$0xf0] }
  0x2d   : > { %939 = vmatpush.bf16.msra.mxu0 %v4304_v12  ;;  %v3338_v29 = vld [vmem:[%s5852_s2 + $0xf0] sm:$0xf0]  ;;  %v3344_v30 = vld [vmem:[%s5852_s2 + $0xe8] sm:$0xf]  ;;  %v3705_v33 = vld [vmem:[%s5852_s2 + $0xf4] sm:$0xf0]  ;;  %v4487_v34 = vor.u32 %v3679_v27, %v3250_v28 }
  0x2e   : > { %625 = vmatmul.bf16.vlgmr.msra.gmra.mxu1 %v4307_v13  ;;  %635 = vmatmul.bf16.vlgmr.msra.gmra.mxu2 %v4310_v14  ;;  %v3675_v38 = vld [vmem:[%s5852_s2 + $0xc] sm:$0xf]  ;;  %v3234_v39 = vld [vmem:[%s5852_s2 + $0x18] sm:$0xf0]  ;;  %v4496_v40 = vor.u32 %v3702_v25, %v3338_v29  ;;  %v4498_v42 = vor.u32 %v3705_v33, %v3344_v30  ;;  %v3698_v43 = vld [vmem:[%s5852_s2 + $0xc4] sm:$0xf] }
  0x2f   : > { %646 = vmatpush.bf16.msrb.mxu1 %v3213_v15  ;;  %675 = vmatpush.bf16.msrb.mxu2 %v3217_v16  ;;  %v3642_v15 = vld [vmem:[%s5851_s1 + $0x4] sm:$0xf]  ;;  %v3683_v16 = vld [vmem:[%s5852_s2 + $0x4c] sm:$0xf]  ;;  %v3322_v45 = vld [vmem:[%s5852_s2 + $0xd0] sm:$0xf0] }
  0x30   : > { %712 = vmatmul.bf16.vlgmr.msra.gmra.mxu3 %v4307_v13  ;;  %940 = vmatmul.bf16.vlgmr.msra.gmra.mxu0 %v5860_v32  ;;  %v4466_v24 = vor.u32 %v3683_v16, %v3266_v18  ;;  %v3701_v49 = vld [vmem:[%s5852_s2 + $0xd4] sm:$0xf0]  ;;  %v4518_v50 = vor.u32 %v3698_v43, %v3322_v45  ;;  %v3694_v52 = vld [vmem:[%s5852_s2 + $0xa4] sm:$0xf]  ;;  %v3306_v54 = vld [vmem:[%s5852_s2 + $0xb0] sm:$0xf0] }
  0x31   : > { %971 = vmatpush.bf16.msrb.mxu3 %v4345_v31  ;;  %1015 = vmatpush.bf16.msrb.mxu0 %v4133_v8  ;;  %v3312_v55 = vld [vmem:[%s5852_s2 + $0xa8] sm:$0xf]  ;;  %v3690_v62 = vld [vmem:[%s5852_s2 + $0x84] sm:$0xf]  ;;  %v3290_v0 = vld [vmem:[%s5852_s2 + $0x90] sm:$0xf0] }
  0x32   : > { %v3693_v1 = vld [vmem:[%s5852_s2 + $0x94] sm:$0xf0]  ;;  %v3686_v4 = vld [vmem:[%s5852_s2 + $0x64] sm:$0xf]  ;;  %v3274_v5 = vld [vmem:[%s5852_s2 + $0x70] sm:$0xf0] }
  0x33   : > { %647 = vmatpush.bf16.msrb.mxu1 %v3197_v22  ;;  %676 = vmatpush.bf16.msrb.mxu2 %v3201_v23  ;;  %v3104_v22 = vld [vmem:[%s5851_s1 + $0x8] sm:$0xf]  ;;  %v3645_v23 = vld [vmem:[%s5851_s1 + $0x14] sm:$0xf0]  ;;  %v4582_v9 = vor.u32 %v3686_v4, %v3274_v5  ;;  %v3258_v16 = vld [vmem:[%s5852_s2 + $0x50] sm:$0xf0] }
  0x34   : > { %v3280_v6 = vld [vmem:[%s5852_s2 + $0x68] sm:$0xf]  ;;  %v3689_v7 = vld [vmem:[%s5852_s2 + $0x74] sm:$0xf0]  ;;  %v3674_v29 = vld [vmem:[%s5852_s2 + $0x4] sm:$0xf] }
  0x35   : > { %972 = vmatpush.bf16.msrb.mxu3 %v4366_v41  ;;  %1016 = vmatpush.bf16.msrb.mxu0 %v4154_v17  ;;  %v4585_v10 = vor.u32 %v3689_v7, %v3280_v6  ;;  %v3264_v18 = vld [vmem:[%s5852_s2 + $0x48] sm:$0xf]  ;;  %v3226_v30 = vld [vmem:[%s5852_s2 + $0x10] sm:$0xf0] }
  0x36   : > { %v3248_v25 = vld [vmem:[%s5852_s2 + $0x28] sm:$0xf] }
  0x37   : > { %648 = vmatpush.bf16.msrb.mxu1 %v3181_v36  ;;  %677 = vmatpush.bf16.msrb.mxu2 %v3185_v37  ;;  %v3101_v36 = vor.u32 %v3642_v15, %v3098_v21  ;;  %v3105_v37 = vor.u32 %v3645_v23, %v3104_v22  ;;  %v3682_v15 = vld [vmem:[%s5852_s2 + $0x44] sm:$0xf]  ;;  %v3242_v23 = vld [vmem:[%s5852_s2 + $0x30] sm:$0xf0]  ;;  %v3232_v33 = vld [vmem:[%s5852_s2 + $0x8] sm:$0xf] }
  0x38   : > { %v3678_v22 = vld [vmem:[%s5852_s2 + $0x24] sm:$0xf] }
  0x39   : > { %973 = vmatpush.bf16.msrb.mxu3 %v4378_v46  ;;  %1017 = vmatpush.bf16.msrb.mxu0 %v4175_v26  ;;  %v4622_v27 = vor.u32 %v3678_v22, %v3242_v23 }
  0x3b   : > { %649 = vmatpush.bf16.msrb.mxu1 %v3165_v47  ;;  %678 = vmatpush.bf16.msrb.mxu2 %v3169_v48  ;;  %v4507_v47 = vor.u32 %v3675_v38, %v3234_v39  ;;  %v3328_v48 = vld [vmem:[%s5852_s2 + $0xc8] sm:$0xf] }
  0x3c   : > { %v4520_v51 = vor.u32 %v3701_v49, %v3328_v48 }
  0x3d   : > { %974 = vmatpush.bf16.msrb.mxu3 %v4400_v56  ;;  %1018 = vmatpush.bf16.msrb.mxu0 %v4196_v35 }
  0x3e   : > { %630 = vmatmul.bf16.gmra.mxu1 %v4404_v57  ;;  %640 = vmatmul.bf16.gmra.mxu2 %v4407_v58 }
  0x3f   : > { %650 = vmatpush.bf16.msrb.mxu1 %v3149_v59  ;;  %679 = vmatpush.bf16.msrb.mxu2 %v3153_v60  ;;  %v3697_v59 = vld [vmem:[%s5852_s2 + $0xb4] sm:$0xf0]  ;;  %v4542_v60 = vor.u32 %v3694_v52, %v3306_v54 }
  0x40   : > { %717 = vmatmul.bf16.gmra.mxu3 %v4404_v57  ;;  %v4545_v61 = vor.u32 %v3697_v59, %v3312_v55 }
  0x41   : > { %975 = vmatpush.bf16.msrb.mxu3 %v4443_v11  ;;  %1019 = vmatpush.bf16.msrb.mxu0 %v4218_v44 }
  0x43   : > { %651 = vmatpush.bf16.msrb.mxu1 %v3133_v2  ;;  %680 = vmatpush.bf16.msrb.mxu2 %v3137_v3  ;;  %v4562_v2 = vor.u32 %v3690_v62, %v3290_v0 }
  0x45   : > { %976 = vmatpush.bf16.msrb.mxu3 %v4466_v24  ;;  %1020 = vmatpush.bf16.msrb.mxu0 %v4244_v53 }
  0x47   : > { %652 = vmatpush.bf16.msrb.mxu1 %v3117_v19  ;;  %681 = vmatpush.bf16.msrb.mxu2 %v3121_v20  ;;  %v3685_v19 = vld [vmem:[%s5852_s2 + $0x54] sm:$0xf0]  ;;  %v4602_v20 = vor.u32 %v3682_v15, %v3258_v16 }
  0x48   : > { %v4605_v21 = vor.u32 %v3685_v19, %v3264_v18 }
  0x49   : > { %977 = vmatpush.bf16.msrb.mxu3 %v4487_v34  ;;  %1021 = vmatpush.bf16.msrb.mxu0 %v4269_v63 }
  0x4b   : > { %653 = vmatpush.bf16.msrb.mxu1 %v3101_v36  ;;  %682 = vmatpush.bf16.msrb.mxu2 %v3105_v37  ;;  %v3677_v36 = vld [vmem:[%s5852_s2 + $0x14] sm:$0xf0]  ;;  %v4645_v37 = vor.u32 %v3674_v29, %v3226_v30 }
  0x4c   : > { %v4648_v38 = vor.u32 %v3677_v36, %v3232_v33 }
  0x4d   : > { %978 = vmatpush.bf16.msrb.mxu3 %v4507_v47  ;;  %1022 = vmatpush.bf16.msrb.mxu0 %v4304_v12 }
  0x4e   : > { %654 = vmatmul.bf16.vlgmr.msrb.gmra.mxu1 %v4307_v13  ;;  %683 = vmatmul.bf16.vlgmr.msrb.gmra.mxu2 %v4307_v13  ;;  %v3296_v13 = vld [vmem:[%s5852_s2 + $0x88] sm:$0xf] }
  0x4f   : > { %945 = vmatpush.bf16.msra.mxu1 %v4496_v40  ;;  %958 = vmatpush.bf16.msra.mxu2 %v4498_v42  ;;  %v4565_v3 = vor.u32 %v3693_v1, %v3296_v13 }
  0x50   : > { %722 = vmatmul.bf16.gmra.mxu3 %v4310_v14 }
  0x51   : > { %1054 = vmatpush.bf16.msra.mxu3 %v4345_v31  ;;  %1099 = vmatpush.bf16.msra.mxu0 %v4133_v8 }
  0x53   : > { %946 = vmatpush.bf16.msra.mxu1 %v4518_v50  ;;  %959 = vmatpush.bf16.msra.mxu2 %v4520_v51 }
  0x55   : > { %1055 = vmatpush.bf16.msra.mxu3 %v4366_v41  ;;  %1100 = vmatpush.bf16.msra.mxu0 %v4154_v17 }
  0x57   : > { %947 = vmatpush.bf16.msra.mxu1 %v4542_v60  ;;  %960 = vmatpush.bf16.msra.mxu2 %v4545_v61 }
  0x59   : > { %1056 = vmatpush.bf16.msra.mxu3 %v4378_v46  ;;  %1101 = vmatpush.bf16.msra.mxu0 %v4175_v26 }
  0x5b   : > { %948 = vmatpush.bf16.msra.mxu1 %v4562_v2  ;;  %961 = vmatpush.bf16.msra.mxu2 %v4565_v3 }
  0x5d   : > { %1057 = vmatpush.bf16.msra.mxu3 %v4400_v56  ;;  %1102 = vmatpush.bf16.msra.mxu0 %v4196_v35 }
  0x5e   : > { %659 = vmatmul.bf16.gmra.mxu1 %v4404_v57  ;;  %688 = vmatmul.bf16.gmra.mxu2 %v4404_v57  ;;  %v3681_v57 = vld [vmem:[%s5852_s2 + $0x34] sm:$0xf0] }
  0x5f   : > { %949 = vmatpush.bf16.msra.mxu1 %v4582_v9  ;;  %962 = vmatpush.bf16.msra.mxu2 %v4585_v10  ;;  %v4628_v28 = vor.u32 %v3681_v57, %v3248_v25 }
  0x60   : > { %727 = vmatmul.bf16.gmra.mxu3 %v4407_v58 }
  0x61   : > { %1058 = vmatpush.bf16.msra.mxu3 %v4443_v11  ;;  %1103 = vmatpush.bf16.msra.mxu0 %v4218_v44 }
  0x63   : > { %950 = vmatpush.bf16.msra.mxu1 %v4602_v20  ;;  %963 = vmatpush.bf16.msra.mxu2 %v4605_v21 }
  0x65   : > { %1059 = vmatpush.bf16.msra.mxu3 %v4466_v24  ;;  %1104 = vmatpush.bf16.msra.mxu0 %v4244_v53 }
  0x67   : > { %951 = vmatpush.bf16.msra.mxu1 %v4622_v27  ;;  %964 = vmatpush.bf16.msra.mxu2 %v4628_v28 }
  0x69   : > { %1060 = vmatpush.bf16.msra.mxu3 %v4487_v34  ;;  %1105 = vmatpush.bf16.msra.mxu0 %v4269_v63 }
  0x6b   : > { %952 = vmatpush.bf16.msra.mxu1 %v4645_v37  ;;  %965 = vmatpush.bf16.msra.mxu2 %v4648_v38 }
  0x6d   : > { %1061 = vmatpush.bf16.msra.mxu3 %v4507_v47  ;;  %1106 = vmatpush.bf16.msra.mxu0 %v4304_v12 }
  0x6e   : > { %664 = vmatmul.bf16.gmra.mxu1 %v4310_v14  ;;  %693 = vmatmul.bf16.gmra.mxu2 %v4310_v14  ;;  %v415_v14 = vld [vmem:[%s5853_s3] sm:$0xf] }
  0x6f   : > { %1028 = vmatpush.bf16.msrb.mxu1 %v4496_v40  ;;  %1041 = vmatpush.bf16.msrb.mxu2 %v4498_v42  ;;  %v4721_v4 = vperm.slane %v415_v14, 3  ;;  %v4742_v33 = vperm.slane %v415_v14, 1 }
  0x70   : > { %979 = vmatmul.bf16.vlgmr.msrb.gmra.mxu3 %v5860_v32 }
  0x71   : > { %1138 = vmatpush.bf16.msrb.mxu3 %v4345_v31 }
  0x73   : > { %1029 = vmatpush.bf16.msrb.mxu1 %v4518_v50  ;;  %1042 = vmatpush.bf16.msrb.mxu2 %v4520_v51 }
  0x75   : > { %1139 = vmatpush.bf16.msrb.mxu3 %v4366_v41 }
  0x77   : > { %1030 = vmatpush.bf16.msrb.mxu1 %v4542_v60  ;;  %1043 = vmatpush.bf16.msrb.mxu2 %v4545_v61 }
  0x79   : > { %1140 = vmatpush.bf16.msrb.mxu3 %v4378_v46 }
  0x7b   : > { %1031 = vmatpush.bf16.msrb.mxu1 %v4562_v2  ;;  %1044 = vmatpush.bf16.msrb.mxu2 %v4565_v3 }
  0x7d   : > { %1141 = vmatpush.bf16.msrb.mxu3 %v4400_v56 }
  0x7e   : > { %669 = vmatmul.bf16.gmra.mxu1 %v4407_v58  ;;  %698 = vmatmul.bf16.gmra.mxu2 %v4407_v58  ;;  %v4704_v58 = vperm.slane %v415_v14, 0 }
  0x7f   : > { %1032 = vmatpush.bf16.msrb.mxu1 %v4582_v9  ;;  %1045 = vmatpush.bf16.msrb.mxu2 %v4585_v10 }
  0x81   : > { %1142 = vmatpush.bf16.msrb.mxu3 %v4443_v11 }
  0x83   : > { %1033 = vmatpush.bf16.msrb.mxu1 %v4602_v20  ;;  %1046 = vmatpush.bf16.msrb.mxu2 %v4605_v21 }
  0x85   : > { %1143 = vmatpush.bf16.msrb.mxu3 %v4466_v24 }
  0x87   : > { %1034 = vmatpush.bf16.msrb.mxu1 %v4622_v27  ;;  %1047 = vmatpush.bf16.msrb.mxu2 %v4628_v28 }
  0x89   : > { %1144 = vmatpush.bf16.msrb.mxu3 %v4487_v34 }
  0x8b   : > { %1035 = vmatpush.bf16.msrb.mxu1 %v4645_v37  ;;  %1048 = vmatpush.bf16.msrb.mxu2 %v4648_v38 }
  0x8d   : > { %1145 = vmatpush.bf16.msrb.mxu3 %v4507_v47 }
  0x8e   : > { %953 = vmatmul.bf16.vlgmr.msra.gmra.mxu1 %v5860_v32  ;;  %966 = vmatmul.bf16.vlgmr.msra.gmra.mxu2 %v5860_v32 }
  0x8f   : > { %1112 = vmatpush.bf16.msra.mxu1 %v4496_v40  ;;  %1125 = vmatpush.bf16.msra.mxu2 %v4498_v42 }
  0x93   : > { %1113 = vmatpush.bf16.msra.mxu1 %v4518_v50  ;;  %1126 = vmatpush.bf16.msra.mxu2 %v4520_v51 }
  0x97   : > { %1114 = vmatpush.bf16.msra.mxu1 %v4542_v60  ;;  %1127 = vmatpush.bf16.msra.mxu2 %v4545_v61 }
  0x9b   : > { %1115 = vmatpush.bf16.msra.mxu1 %v4562_v2  ;;  %1128 = vmatpush.bf16.msra.mxu2 %v4565_v3 }
  0x9f   : > { %1116 = vmatpush.bf16.msra.mxu1 %v4582_v9  ;;  %1129 = vmatpush.bf16.msra.mxu2 %v4585_v10 }
  0xa3   : > { %1117 = vmatpush.bf16.msra.mxu1 %v4602_v20  ;;  %1130 = vmatpush.bf16.msra.mxu2 %v4605_v21 }
  0xa7   : > { %1118 = vmatpush.bf16.msra.mxu1 %v4622_v27  ;;  %1131 = vmatpush.bf16.msra.mxu2 %v4628_v28 }
  0xab   : > { %v626_v39 = vpop.f32.mrf.mxu1  ;;  %1119 = vmatpush.bf16.msra.mxu1 %v4645_v37  ;;  %1132 = vmatpush.bf16.msra.mxu2 %v4648_v38 }
  0xac   : > { %v627_v43 = vadd.f32 %v626_v39, %v4704_v58 }
  0xad   : > { %v941_v45 = vpop.f32.mrf.mxu0 }
  0xae   : > { %v984_v48 = vadd.f32 %v941_v45, %v627_v43  ;;  %v4749_v45 = vperm.slane %v415_v14, 2 }
  0xb1   : > { %v636_v49 = vpop.f32.mrf.mxu2 }
  0xb2   : > { %v4710_v52 = vadd.f32 %v636_v49, %v4704_v58 }
  0xb3   : > { %v713_v54 = vpop.f32.mrf.mxu3  ;;  %v4712_v55 = vpop.f32.mrf.mxu1 }
  0xb4   : > { %5862 = vst [vmem:[#allocation7_spill] sm:$0xff] %v4710_v52 }
  0xb5   : > { %v943_v59 = vpop.f32.mrf.mxu0 }
  0xb9   : > { %v4714_v62 = vpop.f32.mrf.mxu2 }
  0xba   : > { %5863 = vst [vmem:[#allocation8_spill] sm:$0xff] %v4714_v62 }
  0xbb   : > { %v4716_v0 = vpop.f32.mrf.mxu3  ;;  %v631_v13 = vpop.f32.mrf.mxu1 }
  0xbc   : > { %v4719_v1 = vadd.f32 %v631_v13, %v4704_v58 }
  0xc1   : > { %v641_v5 = vpop.f32.mrf.mxu2 }
  0xc2   : > { %v4724_v6 = vadd.f32 %v641_v5, %v4704_v58 }
  0xc3   : > { %v718_v7 = vpop.f32.mrf.mxu3  ;;  %v4729_v16 = vpop.f32.mrf.mxu1 }
  0xc4   : > { %5864 = vst [vmem:[#allocation9_spill] sm:$0xff] %v4724_v6  ;;  %v4727_v15 = vadd.f32 %v718_v7, %v4721_v4 }
  0xc5   : > { %5865 = vst [vmem:[#allocation10_spill] sm:$0xff] %v4729_v16 }
  0xc9   : > { %v4731_v18 = vpop.f32.mrf.mxu2 }
  0xca   : > { %5866 = vst [vmem:[#allocation11_spill] sm:$0xff] %v4731_v18 }
  0xcb   : > { %v4733_v19 = vpop.f32.mrf.mxu3  ;;  %v655_v22 = vpop.f32.mrf.mxu1 }
  0xcc   : > { %5867 = vst [vmem:[#allocation12_spill] sm:$0xff] %v4733_v19 }
  0xd1   : > { %v684_v23 = vpop.f32.mrf.mxu2 }
  0xd3   : > { %v723_v25 = vpop.f32.mrf.mxu3  ;;  %v4738_v29 = vpop.f32.mrf.mxu1 }
  0xd4   : > { %v4736_v57 = vadd.f32 %v723_v25, %v4721_v4 }
  0xd6   : > { %5868 = vst [vmem:[#allocation13_spill] sm:$0xff] %v4736_v57 }
  0xd9   : > { %v4740_v30 = vpop.f32.mrf.mxu2 }
  0xdb   : > { %v4744_v36 = vpop.f32.mrf.mxu3  ;;  %v660_v39 = vpop.f32.mrf.mxu1 }
  0xdc   : > { %5869 = vst [vmem:[#allocation14_spill] sm:$0xff] %v4744_v36  ;;  %v4747_v43 = vadd.f32 %v660_v39, %v4742_v33 }
  0xe1   : > { %v689_v49 = vpop.f32.mrf.mxu2 }
  0xe2   : > { %v4752_v59 = vadd.f32 %v689_v49, %v4749_v45 }
  0xe3   : > { %v728_v13 = vpop.f32.mrf.mxu3  ;;  %v4757_v7 = vpop.f32.mrf.mxu1 }
  0xe4   : > { %v4755_v5 = vadd.f32 %v728_v13, %v4721_v4  ;;  %5871 = vst [vmem:[#allocation16_spill] sm:$0xff] %v4757_v7 }
  0xe6   : > { %5870 = vst [vmem:[#allocation15_spill] sm:$0xff] %v4755_v5 }
  0xe9   : > { %v4759_v25 = vpop.f32.mrf.mxu2 }
  0xea   : > { %5872 = vst [vmem:[#allocation17_spill] sm:$0xff] %v4759_v25 }
  0xeb   : > { %v4761_v32 = vpop.f32.mrf.mxu3  ;;  %v665_v18 = vpop.f32.mrf.mxu1 }
  0xec   : > { %5873 = vst [vmem:[#allocation18_spill] sm:$0xff] %v4761_v32  ;;  %v4764_v39 = vadd.f32 %v665_v18, %v4742_v33 }
  0xee   : > { %5874 = vst [vmem:[#allocation19_spill] sm:$0xff] %v4764_v39  ;;  %v988_v39 = vmul.f32 0.5, %v984_v48 }
  0xf0   : > { %3813 = vtanh.f32 %v988_v39 }
  0xf1   : > { %v694_v14 = vpop.f32.mrf.mxu2 }
  0xf2   : > { %v4767_v6 = vadd.f32 %v694_v14, %v4749_v45  ;;  %v656_v14 = vadd.f32 %v655_v22, %v4742_v33 }
  0xf3   : > { %v980_v49 = vpop.f32.mrf.mxu3  ;;  %v4769_v36 = vpop.f32.mrf.mxu1 }
  0xf4   : > { %5875 = vst [vmem:[#allocation20_spill] sm:$0xff] %v4767_v6 }
  0xf5   : > { %5876 = vst [vmem:[#allocation21_spill] sm:$0xff] %v4769_v36 }
  0xf9   : > { %v4771_v62 = vpop.f32.mrf.mxu2 }
  0xfa   : > { %5877 = vst [vmem:[#allocation22_spill] sm:$0xff] %v4771_v62 }
  0xfb   : > { %v982_v13 = vpop.f32.mrf.mxu3  ;;  %v670_v5 = vpop.f32.mrf.mxu1 }
  0xfc   : > { %v4774_v57 = vadd.f32 %v670_v5, %v4742_v33  ;;  %v714_v13 = vadd.f32 %v713_v54, %v4721_v4  ;;  %v685_v5 = vadd.f32 %v684_v23, %v4749_v45 }
  0xfe   : > { %5878 = vst [vmem:[#allocation23_spill] sm:$0xff] %v4774_v57  ;;  %v987_v19 = vadd.f32 %v980_v49, %v714_v13 }
 0x100   : > { %v997_v7 = vmul.f32 0.5, %v987_v19 }
 0x101   : > { %v699_v52 = vpop.f32.mrf.mxu2 }
 0x102   : > { %v4777_v32 = vadd.f32 %v699_v52, %v4749_v45  ;;  %v3814_v52 = vpop.eup %3813 }
 0x103   : > { %v4779_v18 = vpop.f32.mrf.mxu1  ;;  %v990_v48 = vmul.f32 0.5, %v3814_v52 }
 0x104   : > { %5879 = vst [vmem:[#allocation24_spill] sm:$0xff] %v4777_v32 }
 0x105   : > { %5880 = vst [vmem:[#allocation25_spill] sm:$0xff] %v4779_v18  ;;  %v991_v16 = vadd.f32 0.5, %v990_v48 }
 0x109   : > { %v4781_v25 = vpop.f32.mrf.mxu2 }
 0x10a   : > { %5881 = vst [vmem:[#allocation26_spill] sm:$0xff] %v4781_v25 }
 0x10b   : > { %v954_v6 = vpop.f32.mrf.mxu1 }
 0x10c   : > { %v985_v36 = vadd.f32 %v954_v6, %v656_v14 }
 0x10e   : > { %v992_v62 = vmul.f32 0.5, %v985_v36 }
 0x110   : > { %3815 = vtanh.f32 %v992_v62 }
 0x111   : > { %v967_v57 = vpop.f32.mrf.mxu2 }
 0x112   : > { %v986_v32 = vadd.f32 %v967_v57, %v685_v5 }
 0x113   : > { %v956_v18 = vpop.f32.mrf.mxu1 }
 0x114   : > { %3817 = vtanh.f32 %v986_v32 }
 0x115   : > { %3819 = vtanh.f32 %v997_v7  ;;  %v658_v7 = vadd.f32 %v4738_v29, %v4742_v33 }
 0x116   : > { %v3816_v25 = vpop.eup %3815 }
 0x117   : > { %v994_v22 = vmul.f32 0.5, %v3816_v25 }
 0x119   : > { %v995_v39 = vadd.f32 0.5, %v994_v22  ;;  %v969_v6 = vpop.f32.mrf.mxu2 }
 0x11a   : > { %v3818_v14 = vpop.eup %3817  ;;  %v687_v6 = vadd.f32 %v4740_v30, %v4749_v45 }
 0x11b   : > { %v1001_v54 = vmul.f32 0.0, %v995_v39  ;;  %v1002_v36 = vmul.f32 %v3818_v14, %v991_v16  ;;  %v3820_v49 = vpop.eup %3819  ;;  %v629_v16 = vadd.f32 %v4712_v55, %v4704_v58  ;;  %v716_v39 = vadd.f32 %v4716_v0, %v4721_v4 }
 0x11c   : > { %v999_v62 = vmul.f32 0.5, %v3820_v49 }
 0x11d   : > { %v4786_v13 = vadd.f32 %v1002_v36, %v1001_v54 }
 0x11e   : > { %v1000_v23 = vadd.f32 0.5, %v999_v62 }
 0x11f   : > { %3821 = vtanh.f32 %v4786_v13 }
 0x125   : > { %v3822_v19 = vpop.eup %3821 }
 0x126   : > { %v4789_v57 = vmul.f32 %v3822_v19, %v1000_v23 }
 0x128   : > { %v1014_v32 = vpack.c.bf16 %v4789_v57, %v4789_v57 }
 0x12a   : > { %1023 = vmatmul.bf16.vlgmr.msrb.gmra.mxu0 %v1014_v32  ;;  %1036 = vmatmul.bf16.vlgmr.msrb.gmra.mxu1 %v1014_v32 }
 0x12b   : > { %1049 = vmatmul.bf16.vlgmr.msrb.gmra.mxu2 %v1014_v32  ;;  %1062 = vmatmul.bf16.vlgmr.msra.gmra.mxu3 %v1014_v32 }
 0x12c   : > { %1183 = vmatpush.bf16.msrb.mxu0 %v4133_v8  ;;  %1196 = vmatpush.bf16.msrb.mxu1 %v4496_v40 }
 0x12d   : > { %1209 = vmatpush.bf16.msrb.mxu2 %v4498_v42  ;;  %1222 = vmatpush.bf16.msra.mxu3 %v4345_v31 }
 0x130   : > { %1184 = vmatpush.bf16.msrb.mxu0 %v4154_v17  ;;  %1197 = vmatpush.bf16.msrb.mxu1 %v4518_v50 }
 0x131   : > { %1210 = vmatpush.bf16.msrb.mxu2 %v4520_v51  ;;  %1223 = vmatpush.bf16.msra.mxu3 %v4366_v41 }
 0x134   : > { %1185 = vmatpush.bf16.msrb.mxu0 %v4175_v26  ;;  %1198 = vmatpush.bf16.msrb.mxu1 %v4542_v60 }
 0x135   : > { %1211 = vmatpush.bf16.msrb.mxu2 %v4545_v61  ;;  %1224 = vmatpush.bf16.msra.mxu3 %v4378_v46 }
 0x138   : > { %1186 = vmatpush.bf16.msrb.mxu0 %v4196_v35  ;;  %1199 = vmatpush.bf16.msrb.mxu1 %v4562_v2 }
 0x139   : > { %1212 = vmatpush.bf16.msrb.mxu2 %v4565_v3  ;;  %1225 = vmatpush.bf16.msra.mxu3 %v4400_v56 }
 0x13c   : > { %1187 = vmatpush.bf16.msrb.mxu0 %v4218_v44  ;;  %1200 = vmatpush.bf16.msrb.mxu1 %v4582_v9 }
 0x13d   : > { %1213 = vmatpush.bf16.msrb.mxu2 %v4585_v10  ;;  %1226 = vmatpush.bf16.msra.mxu3 %v4443_v11 }
 0x140   : > { %1188 = vmatpush.bf16.msrb.mxu0 %v4244_v53  ;;  %1201 = vmatpush.bf16.msrb.mxu1 %v4602_v20 }
 0x141   : > { %1214 = vmatpush.bf16.msrb.mxu2 %v4605_v21  ;;  %1227 = vmatpush.bf16.msra.mxu3 %v4466_v24 }
 0x144   : > { %1189 = vmatpush.bf16.msrb.mxu0 %v4269_v63  ;;  %1202 = vmatpush.bf16.msrb.mxu1 %v4622_v27 }
 0x145   : > { %1215 = vmatpush.bf16.msrb.mxu2 %v4628_v28  ;;  %1228 = vmatpush.bf16.msra.mxu3 %v4487_v34 }
 0x148   : > { %1190 = vmatpush.bf16.msrb.mxu0 %v4304_v12  ;;  %1203 = vmatpush.bf16.msrb.mxu1 %v4645_v37 }
 0x149   : > { %1216 = vmatpush.bf16.msrb.mxu2 %v4648_v38  ;;  %1229 = vmatpush.bf16.msra.mxu3 %v4507_v47 }
 0x1a7   : > { %v1024_v25 = vpop.f32.mrf.mxu0  ;;  %v1037_v18 = vpop.f32.mrf.mxu1 }
 0x1a8   : > { %v1067_v5 = vadd.f32 %v1024_v25, %v629_v16  ;;  %v1068_v52 = vadd.f32 %v1037_v18, %v658_v7 }
 0x1aa   : > { %v1071_v48 = vmul.f32 0.5, %v1067_v5  ;;  %v1075_v22 = vmul.f32 0.5, %v1068_v52 }
 0x1ac   : > { %3823 = vtanh.f32 %v1071_v48 }
 0x1ad   : > { %3825 = vtanh.f32 %v1075_v22 }
 0x1ae   : > { %v1050_v14 = vpop.f32.mrf.mxu2  ;;  %v1063_v54 = vpop.f32.mrf.mxu3 }
 0x1af   : > { %v1069_v55 = vadd.f32 %v1050_v14, %v687_v6  ;;  %v1070_v36 = vadd.f32 %v1063_v54, %v716_v39  ;;  %v1026_v49 = vpop.f32.mrf.mxu0  ;;  %v1039_v29 = vpop.f32.mrf.mxu1 }
 0x1b1   : > { %3827 = vtanh.f32 %v1069_v55  ;;  %v1080_v62 = vmul.f32 0.5, %v1070_v36 }
 0x1b2   : > { %v3824_v23 = vpop.eup %3823 }
 0x1b3   : > { %v3826_v19 = vpop.eup %3825  ;;  %v1073_v32 = vmul.f32 0.5, %v3824_v23  ;;  %3829 = vtanh.f32 %v1080_v62 }
 0x1b4   : > { %v1077_v16 = vmul.f32 0.5, %v3826_v19 }
 0x1b5   : > { %v1074_v7 = vadd.f32 0.5, %v1073_v32 }
 0x1b6   : > { %v1078_v25 = vadd.f32 0.5, %v1077_v16  ;;  %v1052_v0 = vpop.f32.mrf.mxu2  ;;  %v1065_v18 = vpop.f32.mrf.mxu3 }
 0x1b7   : > { %v3828_v5 = vpop.eup %3827 }
 0x1b8   : > { %v1084_v30 = vmul.f32 %v1078_v25, %v4786_v13  ;;  %v1085_v52 = vmul.f32 %v3828_v5, %v1074_v7 }
 0x1b9   : > { %v3830_v48 = vpop.eup %3829 }
 0x1ba   : > { %v4834_v22 = vadd.f32 %v1085_v52, %v1084_v30  ;;  %v1082_v39 = vmul.f32 0.5, %v3830_v48 }
 0x1bc   : > { %3831 = vtanh.f32 %v4834_v22  ;;  %v1083_v6 = vadd.f32 0.5, %v1082_v39 }
 0x1c2   : > { %v3832_v14 = vpop.eup %3831 }
 0x1c3   : > { %v4837_v54 = vmul.f32 %v3832_v14, %v1083_v6 }
 0x1c5   : > { %v1098_v55 = vpack.c.bf16 %v4837_v54, %v4837_v54 }
 0x1c7   : > { %1107 = vmatmul.bf16.vlgmr.msra.gmra.mxu0 %v1098_v55  ;;  %1120 = vmatmul.bf16.vlgmr.msra.gmra.mxu1 %v1098_v55 }
 0x1c8   : > { %1133 = vmatmul.bf16.vlgmr.msra.gmra.mxu2 %v1098_v55  ;;  %1146 = vmatmul.bf16.vlgmr.msrb.gmra.mxu3 %v1098_v55 }
 0x1c9   : > { %1267 = vmatpush.bf16.msra.mxu0 %v4133_v8  ;;  %1280 = vmatpush.bf16.msra.mxu1 %v4496_v40 }
 0x1ca   : > { %1293 = vmatpush.bf16.msra.mxu2 %v4498_v42  ;;  %1306 = vmatpush.bf16.msrb.mxu3 %v4345_v31 }
 0x1cd   : > { %1268 = vmatpush.bf16.msra.mxu0 %v4154_v17  ;;  %1281 = vmatpush.bf16.msra.mxu1 %v4518_v50 }
 0x1ce   : > { %1294 = vmatpush.bf16.msra.mxu2 %v4520_v51  ;;  %1307 = vmatpush.bf16.msrb.mxu3 %v4366_v41 }
 0x1d1   : > { %1269 = vmatpush.bf16.msra.mxu0 %v4175_v26  ;;  %1282 = vmatpush.bf16.msra.mxu1 %v4542_v60 }
 0x1d2   : > { %1295 = vmatpush.bf16.msra.mxu2 %v4545_v61  ;;  %1308 = vmatpush.bf16.msrb.mxu3 %v4378_v46 }
 0x1d5   : > { %1270 = vmatpush.bf16.msra.mxu0 %v4196_v35  ;;  %1283 = vmatpush.bf16.msra.mxu1 %v4562_v2 }
 0x1d6   : > { %1296 = vmatpush.bf16.msra.mxu2 %v4565_v3  ;;  %1309 = vmatpush.bf16.msrb.mxu3 %v4400_v56 }
 0x1d9   : > { %1271 = vmatpush.bf16.msra.mxu0 %v4218_v44  ;;  %1284 = vmatpush.bf16.msra.mxu1 %v4582_v9 }
 0x1da   : > { %1297 = vmatpush.bf16.msra.mxu2 %v4585_v10  ;;  %1310 = vmatpush.bf16.msrb.mxu3 %v4443_v11 }
 0x1dd   : > { %1272 = vmatpush.bf16.msra.mxu0 %v4244_v53  ;;  %1285 = vmatpush.bf16.msra.mxu1 %v4602_v20 }
 0x1de   : > { %1298 = vmatpush.bf16.msra.mxu2 %v4605_v21  ;;  %1311 = vmatpush.bf16.msrb.mxu3 %v4466_v24 }
 0x1e1   : > { %1273 = vmatpush.bf16.msra.mxu0 %v4269_v63  ;;  %1286 = vmatpush.bf16.msra.mxu1 %v4622_v27 }
 0x1e2   : > { %1299 = vmatpush.bf16.msra.mxu2 %v4628_v28  ;;  %1312 = vmatpush.bf16.msrb.mxu3 %v4487_v34 }
 0x1e5   : > { %1274 = vmatpush.bf16.msra.mxu0 %v4304_v12  ;;  %1287 = vmatpush.bf16.msra.mxu1 %v4645_v37 }
 0x1e6   : > { %1300 = vmatpush.bf16.msra.mxu2 %v4648_v38  ;;  %1313 = vmatpush.bf16.msrb.mxu3 %v4507_v47 }
 0x244   : > { %v1108_v13 = vpop.f32.mrf.mxu0  ;;  %v1121_v36 = vpop.f32.mrf.mxu1 }
 0x245   : > { %v1151_v49 = vadd.f32 %v1108_v13, %v4719_v1  ;;  %v1152_v29 = vadd.f32 %v1121_v36, %v4747_v43 }
 0x247   : > { %v1155_v62 = vmul.f32 0.5, %v1151_v49  ;;  %v1159_v23 = vmul.f32 0.5, %v1152_v29 }
 0x249   : > { %3833 = vtanh.f32 %v1155_v62 }
 0x24a   : > { %3835 = vtanh.f32 %v1159_v23 }
 0x24b   : > { %v1134_v19 = vpop.f32.mrf.mxu2  ;;  %v1147_v32 = vpop.f32.mrf.mxu3 }
 0x24c   : > { %v1153_v16 = vadd.f32 %v1134_v19, %v4752_v59  ;;  %v1154_v7 = vadd.f32 %v1147_v32, %v4727_v15  ;;  %v1110_v25 = vpop.f32.mrf.mxu0  ;;  %v1123_v0 = vpop.f32.mrf.mxu1  ;;  %v5883_v32 = vld [vmem:[#allocation16_spill] sm:$0xff] }
 0x24e   : > { %3837 = vtanh.f32 %v1153_v16  ;;  %v1164_v18 = vmul.f32 0.5, %v1154_v7  ;;  %v663_v16 = vadd.f32 %v5883_v32, %v4742_v33 }
 0x24f   : > { %v3834_v5 = vpop.eup %3833 }
 0x250   : > { %v3836_v30 = vpop.eup %3835  ;;  %v1157_v52 = vmul.f32 0.5, %v3834_v5  ;;  %3839 = vtanh.f32 %v1164_v18 }
 0x251   : > { %v1161_v1 = vmul.f32 0.5, %v3836_v30 }
 0x252   : > { %v1158_v43 = vadd.f32 0.5, %v1157_v52  ;;  %v5884_v52 = vld [vmem:[#allocation12_spill] sm:$0xff] }
 0x253   : > { %v1162_v48 = vadd.f32 0.5, %v1161_v1  ;;  %v1136_v39 = vpop.f32.mrf.mxu2  ;;  %v1149_v6 = vpop.f32.mrf.mxu3  ;;  %v721_v1 = vadd.f32 %v5884_v52, %v4721_v4 }
 0x254   : > { %v3838_v14 = vpop.eup %3837 }
 0x255   : > { %v1168_v55 = vmul.f32 %v1162_v48, %v4834_v22  ;;  %v1169_v13 = vmul.f32 %v3838_v14, %v1158_v43  ;;  %v5882_v22 = vld [vmem:[#allocation10_spill] sm:$0xff]  ;;  %v5885_v43 = vld [vmem:[#allocation17_spill] sm:$0xff] }
 0x256   : > { %v3840_v59 = vpop.eup %3839  ;;  %v634_v19 = vadd.f32 %v5882_v22, %v4704_v58  ;;  %v692_v48 = vadd.f32 %v5885_v43, %v4749_v45 }
 0x257   : > { %v4878_v36 = vadd.f32 %v1169_v13, %v1168_v55  ;;  %v1166_v15 = vmul.f32 0.5, %v3840_v59 }
 0x259   : > { %3841 = vtanh.f32 %v4878_v36  ;;  %v1167_v49 = vadd.f32 0.5, %v1166_v15 }
 0x25f   : > { %v3842_v29 = vpop.eup %3841 }
 0x260   : > { %v4881_v62 = vmul.f32 %v3842_v29, %v1167_v49 }
 0x262   : > { %v1182_v23 = vpack.c.bf16 %v4881_v62, %v4881_v62 }
 0x264   : > { %1191 = vmatmul.bf16.vlgmr.msrb.gmra.mxu0 %v1182_v23  ;;  %1204 = vmatmul.bf16.vlgmr.msrb.gmra.mxu1 %v1182_v23 }
 0x265   : > { %1217 = vmatmul.bf16.vlgmr.msrb.gmra.mxu2 %v1182_v23  ;;  %1230 = vmatmul.bf16.vlgmr.msra.gmra.mxu3 %v1182_v23 }
 0x266   : > { %1351 = vmatpush.bf16.msrb.mxu0 %v4133_v8  ;;  %1364 = vmatpush.bf16.msrb.mxu1 %v4496_v40 }
 0x267   : > { %1377 = vmatpush.bf16.msrb.mxu2 %v4498_v42  ;;  %1390 = vmatpush.bf16.msra.mxu3 %v4345_v31 }
 0x26a   : > { %1352 = vmatpush.bf16.msrb.mxu0 %v4154_v17  ;;  %1365 = vmatpush.bf16.msrb.mxu1 %v4518_v50 }
 0x26b   : > { %1378 = vmatpush.bf16.msrb.mxu2 %v4520_v51  ;;  %1391 = vmatpush.bf16.msra.mxu3 %v4366_v41 }
 0x26e   : > { %1353 = vmatpush.bf16.msrb.mxu0 %v4175_v26  ;;  %1366 = vmatpush.bf16.msrb.mxu1 %v4542_v60 }
 0x26f   : > { %1379 = vmatpush.bf16.msrb.mxu2 %v4545_v61  ;;  %1392 = vmatpush.bf16.msra.mxu3 %v4378_v46 }
 0x272   : > { %1354 = vmatpush.bf16.msrb.mxu0 %v4196_v35  ;;  %1367 = vmatpush.bf16.msrb.mxu1 %v4562_v2 }
 0x273   : > { %1380 = vmatpush.bf16.msrb.mxu2 %v4565_v3  ;;  %1393 = vmatpush.bf16.msra.mxu3 %v4400_v56 }
 0x276   : > { %1355 = vmatpush.bf16.msrb.mxu0 %v4218_v44  ;;  %1368 = vmatpush.bf16.msrb.mxu1 %v4582_v9 }
 0x277   : > { %1381 = vmatpush.bf16.msrb.mxu2 %v4585_v10  ;;  %1394 = vmatpush.bf16.msra.mxu3 %v4443_v11 }
 0x27a   : > { %1356 = vmatpush.bf16.msrb.mxu0 %v4244_v53  ;;  %1369 = vmatpush.bf16.msrb.mxu1 %v4602_v20 }
 0x27b   : > { %1382 = vmatpush.bf16.msrb.mxu2 %v4605_v21  ;;  %1395 = vmatpush.bf16.msra.mxu3 %v4466_v24 }
 0x27e   : > { %1357 = vmatpush.bf16.msrb.mxu0 %v4269_v63  ;;  %1370 = vmatpush.bf16.msrb.mxu1 %v4622_v27 }
 0x27f   : > { %1383 = vmatpush.bf16.msrb.mxu2 %v4628_v28  ;;  %1396 = vmatpush.bf16.msra.mxu3 %v4487_v34 }
 0x282   : > { %1358 = vmatpush.bf16.msrb.mxu0 %v4304_v12  ;;  %1371 = vmatpush.bf16.msrb.mxu1 %v4645_v37 }
 0x283   : > { %1384 = vmatpush.bf16.msrb.mxu2 %v4648_v38  ;;  %1397 = vmatpush.bf16.msra.mxu3 %v4507_v47 }
 0x2e1   : > { %v1192_v7 = vpop.f32.mrf.mxu0  ;;  %v1205_v25 = vpop.f32.mrf.mxu1 }
 0x2e2   : > { %v1235_v0 = vadd.f32 %v1192_v7, %v634_v19  ;;  %v1236_v18 = vadd.f32 %v1205_v25, %v663_v16 }
 0x2e4   : > { %v1239_v5 = vmul.f32 0.5, %v1235_v0  ;;  %v1243_v30 = vmul.f32 0.5, %v1236_v18 }
 0x2e6   : > { %3843 = vtanh.f32 %v1239_v5 }
 0x2e7   : > { %3845 = vtanh.f32 %v1243_v30 }
 0x2e8   : > { %v1218_v39 = vpop.f32.mrf.mxu2  ;;  %v1231_v6 = vpop.f32.mrf.mxu3 }
 0x2e9   : > { %v1237_v14 = vadd.f32 %v1218_v39, %v692_v48  ;;  %v1238_v55 = vadd.f32 %v1231_v6, %v721_v1  ;;  %v1194_v13 = vpop.f32.mrf.mxu0  ;;  %v1207_v59 = vpop.f32.mrf.mxu1 }
 0x2ea   : > { %v5887_v13 = vld [vmem:[#allocation19_spill] sm:$0xff] }
 0x2eb   : > { %3847 = vtanh.f32 %v1237_v14  ;;  %v1248_v15 = vmul.f32 0.5, %v1238_v55  ;;  %v5886_v14 = vld [vmem:[#allocation7_spill] sm:$0xff] }
 0x2ec   : > { %v3844_v49 = vpop.eup %3843 }
 0x2ed   : > { %v3846_v29 = vpop.eup %3845  ;;  %v1241_v23 = vmul.f32 0.5, %v3844_v49  ;;  %3849 = vtanh.f32 %v1248_v15 }
 0x2ee   : > { %v1245_v22 = vmul.f32 0.5, %v3846_v29 }
 0x2ef   : > { %v1242_v19 = vadd.f32 0.5, %v1241_v23 }
 0x2f0   : > { %v1246_v32 = vadd.f32 0.5, %v1245_v22  ;;  %v1220_v16 = vpop.f32.mrf.mxu2  ;;  %v1233_v7 = vpop.f32.mrf.mxu3  ;;  %v5888_v22 = vld [vmem:[#allocation20_spill] sm:$0xff] }
 0x2f1   : > { %v3848_v25 = vpop.eup %3847 }
 0x2f2   : > { %v1252_v0 = vmul.f32 %v1246_v32, %v4878_v36  ;;  %v1253_v18 = vmul.f32 %v3848_v25, %v1242_v19  ;;  %v5889_v32 = vld [vmem:[#allocation13_spill] sm:$0xff] }
 0x2f3   : > { %v3850_v5 = vpop.eup %3849 }
 0x2f4   : > { %v4926_v30 = vadd.f32 %v1253_v18, %v1252_v0  ;;  %v1250_v52 = vmul.f32 0.5, %v3850_v5 }
 0x2f6   : > { %3851 = vtanh.f32 %v4926_v30  ;;  %v1251_v1 = vadd.f32 0.5, %v1250_v52 }
 0x2fc   : > { %v3852_v43 = vpop.eup %3851 }
 0x2fd   : > { %v4929_v48 = vmul.f32 %v3852_v43, %v1251_v1 }
 0x2ff   : > { %v1266_v39 = vpack.c.bf16 %v4929_v48, %v4929_v48 }
 0x301   : > { %1275 = vmatmul.bf16.vlgmr.msra.gmra.mxu0 %v1266_v39  ;;  %1288 = vmatmul.bf16.vlgmr.msra.gmra.mxu1 %v1266_v39 }
 0x302   : > { %1301 = vmatmul.bf16.vlgmr.msra.gmra.mxu2 %v1266_v39  ;;  %1314 = vmatmul.bf16.vlgmr.msrb.gmra.mxu3 %v1266_v39 }
 0x303   : > { %1435 = vmatpush.bf16.msra.mxu0 %v4133_v8  ;;  %1448 = vmatpush.bf16.msra.mxu1 %v4496_v40 }
 0x304   : > { %1461 = vmatpush.bf16.msra.mxu2 %v4498_v42  ;;  %1474 = vmatpush.bf16.msrb.mxu3 %v4345_v31 }
 0x307   : > { %1436 = vmatpush.bf16.msra.mxu0 %v4154_v17  ;;  %1449 = vmatpush.bf16.msra.mxu1 %v4518_v50 }
 0x308   : > { %1462 = vmatpush.bf16.msra.mxu2 %v4520_v51  ;;  %1475 = vmatpush.bf16.msrb.mxu3 %v4366_v41 }
 0x30b   : > { %1437 = vmatpush.bf16.msra.mxu0 %v4175_v26  ;;  %1450 = vmatpush.bf16.msra.mxu1 %v4542_v60 }
 0x30c   : > { %1463 = vmatpush.bf16.msra.mxu2 %v4545_v61  ;;  %1476 = vmatpush.bf16.msrb.mxu3 %v4378_v46 }
 0x30f   : > { %1438 = vmatpush.bf16.msra.mxu0 %v4196_v35  ;;  %1451 = vmatpush.bf16.msra.mxu1 %v4562_v2 }
 0x310   : > { %1464 = vmatpush.bf16.msra.mxu2 %v4565_v3  ;;  %1477 = vmatpush.bf16.msrb.mxu3 %v4400_v56 }
 0x313   : > { %1439 = vmatpush.bf16.msra.mxu0 %v4218_v44  ;;  %1452 = vmatpush.bf16.msra.mxu1 %v4582_v9 }
 0x314   : > { %1465 = vmatpush.bf16.msra.mxu2 %v4585_v10  ;;  %1478 = vmatpush.bf16.msrb.mxu3 %v4443_v11 }
 0x317   : > { %1440 = vmatpush.bf16.msra.mxu0 %v4244_v53  ;;  %1453 = vmatpush.bf16.msra.mxu1 %v4602_v20 }
 0x318   : > { %1466 = vmatpush.bf16.msra.mxu2 %v4605_v21  ;;  %1479 = vmatpush.bf16.msrb.mxu3 %v4466_v24 }
 0x31b   : > { %1441 = vmatpush.bf16.msra.mxu0 %v4269_v63  ;;  %1454 = vmatpush.bf16.msra.mxu1 %v4622_v27 }
 0x31c   : > { %1467 = vmatpush.bf16.msra.mxu2 %v4628_v28  ;;  %1480 = vmatpush.bf16.msrb.mxu3 %v4487_v34 }
 0x31f   : > { %1442 = vmatpush.bf16.msra.mxu0 %v4304_v12  ;;  %1455 = vmatpush.bf16.msra.mxu1 %v4645_v37 }
 0x320   : > { %1468 = vmatpush.bf16.msra.mxu2 %v4648_v38  ;;  %1481 = vmatpush.bf16.msrb.mxu3 %v4507_v47 }
 0x37e   : > { %v1276_v36 = vpop.f32.mrf.mxu0  ;;  %v1289_v6 = vpop.f32.mrf.mxu1 }
 0x37f   : > { %v1319_v55 = vadd.f32 %v1276_v36, %v5886_v14  ;;  %v1320_v59 = vadd.f32 %v1289_v6, %v5887_v13 }
 0x381   : > { %v1323_v15 = vmul.f32 0.5, %v1319_v55  ;;  %v1327_v49 = vmul.f32 0.5, %v1320_v59 }
 0x383   : > { %3853 = vtanh.f32 %v1323_v15 }
 0x384   : > { %3855 = vtanh.f32 %v1327_v49 }
 0x385   : > { %v1302_v29 = vpop.f32.mrf.mxu2  ;;  %v1315_v23 = vpop.f32.mrf.mxu3 }
 0x386   : > { %v1321_v19 = vadd.f32 %v1302_v29, %v5888_v22  ;;  %v1322_v16 = vadd.f32 %v1315_v23, %v5889_v32  ;;  %v1278_v7 = vpop.f32.mrf.mxu0  ;;  %v1291_v25 = vpop.f32.mrf.mxu1 }
 0x388   : > { %3857 = vtanh.f32 %v1321_v19  ;;  %v1332_v0 = vmul.f32 0.5, %v1322_v16 }
 0x389   : > { %v3854_v18 = vpop.eup %3853 }
 0x38a   : > { %v3856_v5 = vpop.eup %3855  ;;  %v1325_v52 = vmul.f32 0.5, %v3854_v18  ;;  %3859 = vtanh.f32 %v1332_v0 }
 0x38b   : > { %v1329_v1 = vmul.f32 0.5, %v3856_v5  ;;  %v3464_v5 = vld [vmem:[%s5854_s4 + $0xe0] sm:$0xf] }
 0x38c   : > { %v1326_v43 = vadd.f32 0.5, %v1325_v52  ;;  %v3740_v52 = vld [vmem:[%s5854_s4 + $0xec] sm:$0xf0] }
 0x38d   : > { %v1330_v39 = vadd.f32 0.5, %v1329_v1  ;;  %v1304_v36 = vpop.f32.mrf.mxu2  ;;  %v1317_v6 = vpop.f32.mrf.mxu3  ;;  %v3738_v1 = vld [vmem:[%s5854_s4 + $0xe4] sm:$0xf] }
 0x38e   : > { %v3858_v14 = vpop.eup %3857  ;;  %v3472_v36 = vld [vmem:[%s5854_s4 + $0xe8] sm:$0xf]  ;;  %v3741_v6 = vld [vmem:[%s5854_s4 + $0xf4] sm:$0xf0] }
 0x38f   : > { %v1336_v55 = vmul.f32 %v1330_v39, %v4926_v30  ;;  %v1337_v13 = vmul.f32 %v3858_v14, %v1326_v43  ;;  %v3465_v43 = vor.u32 %v3740_v52, %v3464_v5  ;;  %v3466_v39 = vld [vmem:[%s5854_s4 + $0xf0] sm:$0xf0] }
 0x390   : > { %v3860_v59 = vpop.eup %3859  ;;  %v3469_v14 = vor.u32 %v3738_v1, %v3466_v39  ;;  %v3402_v52 = vld [vmem:[%s5854_s4 + $0x70] sm:$0xf0]  ;;  %v3408_v1 = vld [vmem:[%s5854_s4 + $0x68] sm:$0xf] }
 0x391   : > { %v4970_v15 = vadd.f32 %v1337_v13, %v1336_v55  ;;  %v1334_v49 = vmul.f32 0.5, %v3860_v59  ;;  %v3473_v55 = vor.u32 %v3741_v6, %v3472_v36  ;;  %v3739_v13 = vld [vmem:[%s5854_s4 + $0xec] sm:$0xf]  ;;  %v3474_v59 = vld [vmem:[%s5854_s4 + $0xf8] sm:$0xf0]  ;;  %v5894_v39 = vld [vmem:[#allocation9_spill] sm:$0xff] }
 0x392   : > { %v5895_v6 = vld [vmem:[#allocation23_spill] sm:$0xff] }
 0x393   : > { %3861 = vtanh.f32 %v4970_v15  ;;  %v1335_v29 = vadd.f32 0.5, %v1334_v49  ;;  %v3448_v49 = vld [vmem:[%s5854_s4 + $0xc0] sm:$0xf] }
 0x399   : > { %v3862_v23 = vpop.eup %3861 }
 0x39a   : > { %v4973_v22 = vmul.f32 %v3862_v23, %v1335_v29  ;;  %v3736_v29 = vld [vmem:[%s5854_s4 + $0xcc] sm:$0xf0]  ;;  %v3734_v23 = vld [vmem:[%s5854_s4 + $0xc4] sm:$0xf] }
 0x39c   : > { %v1350_v19 = vpack.c.bf16 %v4973_v22, %v4973_v22 }
 0x39e   : > { %1359 = vmatmul.bf16.vlgmr.msrb.gmra.mxu0 %v1350_v19  ;;  %1372 = vmatmul.bf16.vlgmr.msrb.gmra.mxu1 %v1350_v19 }
 0x39f   : > { %1385 = vmatmul.bf16.vlgmr.msrb.gmra.mxu2 %v1350_v19  ;;  %1398 = vmatmul.bf16.vlgmr.msra.gmra.mxu3 %v1350_v19  ;;  %v3449_v19 = vor.u32 %v3736_v29, %v3448_v49  ;;  %v3384_v49 = vld [vmem:[%s5854_s4 + $0x40] sm:$0xf] }
 0x3a0   : > { %1519 = vmatpush.bf16.msrb.mxu0 %v4133_v8  ;;  %1532 = vmatpush.bf16.msrb.mxu1 %v4496_v40  ;;  %v5890_v8 = vld [vmem:[#allocation8_spill] sm:$0xff] }
 0x3a1   : > { %1545 = vmatpush.bf16.msrb.mxu2 %v4498_v42  ;;  %1558 = vmatpush.bf16.msra.mxu3 %v4345_v31 }
 0x3a4   : > { %1520 = vmatpush.bf16.msrb.mxu0 %v4154_v17  ;;  %1533 = vmatpush.bf16.msrb.mxu1 %v4518_v50  ;;  %v639_v17 = vadd.f32 %v5890_v8, %v4704_v58  ;;  %v3450_v8 = vld [vmem:[%s5854_s4 + $0xd0] sm:$0xf0] }
 0x3a5   : > { %1546 = vmatpush.bf16.msrb.mxu2 %v4520_v51  ;;  %1559 = vmatpush.bf16.msra.mxu3 %v4366_v41 }
 0x3a8   : > { %1521 = vmatpush.bf16.msrb.mxu0 %v4175_v26  ;;  %1534 = vmatpush.bf16.msrb.mxu1 %v4542_v60  ;;  %v5891_v26 = vld [vmem:[#allocation21_spill] sm:$0xff] }
 0x3a9   : > { %1547 = vmatpush.bf16.msrb.mxu2 %v4545_v61  ;;  %1560 = vmatpush.bf16.msra.mxu3 %v4378_v46 }
 0x3ac   : > { %1522 = vmatpush.bf16.msrb.mxu0 %v4196_v35  ;;  %1535 = vmatpush.bf16.msrb.mxu1 %v4562_v2  ;;  %v668_v35 = vadd.f32 %v5891_v26, %v4742_v33  ;;  %v3737_v26 = vld [vmem:[%s5854_s4 + $0xd4] sm:$0xf0] }
 0x3ad   : > { %1548 = vmatpush.bf16.msrb.mxu2 %v4565_v3  ;;  %1561 = vmatpush.bf16.msra.mxu3 %v4400_v56 }
 0x3b0   : > { %1523 = vmatpush.bf16.msrb.mxu0 %v4218_v44  ;;  %1536 = vmatpush.bf16.msrb.mxu1 %v4582_v9 }
 0x3b1   : > { %1549 = vmatpush.bf16.msrb.mxu2 %v4585_v10  ;;  %1562 = vmatpush.bf16.msra.mxu3 %v4443_v11  ;;  %v5893_v11 = vld [vmem:[#allocation22_spill] sm:$0xff] }
 0x3b4   : > { %1524 = vmatpush.bf16.msrb.mxu0 %v4244_v53  ;;  %1537 = vmatpush.bf16.msrb.mxu1 %v4602_v20 }
 0x3b5   : > { %1550 = vmatpush.bf16.msrb.mxu2 %v4605_v21  ;;  %1563 = vmatpush.bf16.msra.mxu3 %v4466_v24  ;;  %v697_v24 = vadd.f32 %v5893_v11, %v4749_v45  ;;  %v3434_v11 = vld [vmem:[%s5854_s4 + $0xb0] sm:$0xf0] }
 0x3b8   : > { %1525 = vmatpush.bf16.msrb.mxu0 %v4269_v63  ;;  %1538 = vmatpush.bf16.msrb.mxu1 %v4622_v27 }
 0x3b9   : > { %1551 = vmatpush.bf16.msrb.mxu2 %v4628_v28  ;;  %1564 = vmatpush.bf16.msra.mxu3 %v4487_v34 }
 0x3bc   : > { %1526 = vmatpush.bf16.msrb.mxu0 %v4304_v12  ;;  %1539 = vmatpush.bf16.msrb.mxu1 %v4645_v37  ;;  %v5892_v12 = vld [vmem:[#allocation14_spill] sm:$0xff] }
 0x3bd   : > { %1552 = vmatpush.bf16.msrb.mxu2 %v4648_v38  ;;  %1565 = vmatpush.bf16.msra.mxu3 %v4507_v47  ;;  %v726_v56 = vadd.f32 %v5892_v12, %v4721_v4  ;;  %v3730_v12 = vld [vmem:[%s5854_s4 + $0xa4] sm:$0xf] }
 0x41b   : > { %v1360_v44 = vpop.f32.mrf.mxu0  ;;  %v1373_v53 = vpop.f32.mrf.mxu1 }
 0x41c   : > { %v1403_v63 = vadd.f32 %v1360_v44, %v639_v17  ;;  %v1404_v31 = vadd.f32 %v1373_v53, %v668_v35  ;;  %v3456_v17 = vld [vmem:[%s5854_s4 + $0xc8] sm:$0xf]  ;;  %v3453_v35 = vor.u32 %v3734_v23, %v3450_v8  ;;  %v3735_v53 = vld [vmem:[%s5854_s4 + $0xcc] sm:$0xf]  ;;  %v3720_v23 = vld [vmem:[%s5854_s4 + $0x4c] sm:$0xf0] }
 0x41d   : > { %v3457_v44 = vor.u32 %v3737_v26, %v3456_v17  ;;  %v3386_v8 = vld [vmem:[%s5854_s4 + $0x50] sm:$0xf0] }
 0x41e   : > { %v1407_v41 = vmul.f32 0.5, %v1403_v63  ;;  %v1411_v46 = vmul.f32 0.5, %v1404_v31  ;;  %v3458_v63 = vld [vmem:[%s5854_s4 + $0xd8] sm:$0xf0] }
 0x41f   : > { %v3461_v31 = vor.u32 %v3735_v53, %v3458_v63  ;;  %v3392_v53 = vld [vmem:[%s5854_s4 + $0x48] sm:$0xf]  ;;  %v3721_v63 = vld [vmem:[%s5854_s4 + $0x54] sm:$0xf0] }
 0x420   : > { %3863 = vtanh.f32 %v1407_v41  ;;  %v3432_v41 = vld [vmem:[%s5854_s4 + $0xa0] sm:$0xf] }
 0x421   : > { %3865 = vtanh.f32 %v1411_v46  ;;  %v3732_v46 = vld [vmem:[%s5854_s4 + $0xac] sm:$0xf0] }
 0x422   : > { %v1386_v34 = vpop.f32.mrf.mxu2  ;;  %v1399_v40 = vpop.f32.mrf.mxu3 }
 0x423   : > { %v1405_v42 = vadd.f32 %v1386_v34, %v697_v24  ;;  %v1406_v47 = vadd.f32 %v1399_v40, %v726_v56  ;;  %v1362_v50 = vpop.f32.mrf.mxu0  ;;  %v1375_v51 = vpop.f32.mrf.mxu1  ;;  %v3433_v56 = vor.u32 %v3732_v46, %v3432_v41  ;;  %v3440_v24 = vld [vmem:[%s5854_s4 + $0xa8] sm:$0xf]  ;;  %v3733_v34 = vld [vmem:[%s5854_s4 + $0xb4] sm:$0xf0]  ;;  %v3437_v40 = vor.u32 %v3730_v12, %v3434_v11  ;;  %v3719_v41 = vld [vmem:[%s5854_s4 + $0x4c] sm:$0xf] }
 0x424   : > { %v3442_v50 = vld [vmem:[%s5854_s4 + $0xb8] sm:$0xf0]  ;;  %v3368_v12 = vld [vmem:[%s5854_s4 + $0x20] sm:$0xf]  ;;  %v3716_v11 = vld [vmem:[%s5854_s4 + $0x2c] sm:$0xf0] }
 0x425   : > { %3867 = vtanh.f32 %v1405_v42  ;;  %v1416_v60 = vmul.f32 0.5, %v1406_v47  ;;  %v3441_v42 = vor.u32 %v3733_v34, %v3440_v24  ;;  %v3731_v47 = vld [vmem:[%s5854_s4 + $0xac] sm:$0xf]  ;;  %v3394_v46 = vld [vmem:[%s5854_s4 + $0x58] sm:$0xf0] }
 0x426   : > { %v3864_v61 = vpop.eup %3863  ;;  %v3445_v51 = vor.u32 %v3731_v47, %v3442_v50  ;;  %v3714_v24 = vld [vmem:[%s5854_s4 + $0x24] sm:$0xf]  ;;  %v3370_v34 = vld [vmem:[%s5854_s4 + $0x30] sm:$0xf0]  ;;  %v3717_v47 = vld [vmem:[%s5854_s4 + $0x34] sm:$0xf0] }
 0x427   : > { %v3866_v2 = vpop.eup %3865  ;;  %v1409_v3 = vmul.f32 0.5, %v3864_v61  ;;  %3869 = vtanh.f32 %v1416_v60  ;;  %v3416_v60 = vld [vmem:[%s5854_s4 + $0x80] sm:$0xf]  ;;  %v3728_v61 = vld [vmem:[%s5854_s4 + $0x8c] sm:$0xf0] }
 0x428   : > { %v1413_v9 = vmul.f32 0.5, %v3866_v2  ;;  %v3726_v2 = vld [vmem:[%s5854_s4 + $0x84] sm:$0xf]  ;;  %v3715_v50 = vld [vmem:[%s5854_s4 + $0x2c] sm:$0xf] }
 0x429   : > { %v1410_v10 = vadd.f32 0.5, %v1409_v3  ;;  %v3417_v3 = vor.u32 %v3728_v61, %v3416_v60  ;;  %v3373_v61 = vor.u32 %v3714_v24, %v3370_v34  ;;  %v3594_v24 = vld [vmem:[#allocation4 + $0xf0] sm:$0xf0]  ;;  %v3600_v34 = vld [vmem:[#allocation4 + $0xe8] sm:$0xf] }
 0x42a   : > { %v1414_v20 = vadd.f32 0.5, %v1413_v9  ;;  %v1388_v21 = vpop.f32.mrf.mxu2  ;;  %v1401_v27 = vpop.f32.mrf.mxu3  ;;  %v3418_v9 = vld [vmem:[%s5854_s4 + $0x90] sm:$0xf0] }
 0x42b   : > { %v3868_v28 = vpop.eup %3867  ;;  %v3421_v21 = vor.u32 %v3726_v2, %v3418_v9  ;;  %v3352_v9 = vld [vmem:[%s5854_s4] sm:$0xf] }
 0x42c   : > { %v1420_v37 = vmul.f32 %v1414_v20, %v4970_v15  ;;  %v1421_v38 = vmul.f32 %v3868_v28, %v1410_v10  ;;  %v3477_v15 = vor.u32 %v3739_v13, %v3474_v59  ;;  %v3424_v10 = vld [vmem:[%s5854_s4 + $0x88] sm:$0xf]  ;;  %v3729_v20 = vld [vmem:[%s5854_s4 + $0x94] sm:$0xf0]  ;;  %v3727_v28 = vld [vmem:[%s5854_s4 + $0x8c] sm:$0xf] }
 0x42d   : > { %v3870_v30 = vpop.eup %3869  ;;  %v3425_v27 = vor.u32 %v3729_v20, %v3424_v10  ;;  %v3723_v59 = vld [vmem:[%s5854_s4 + $0x6c] sm:$0xf]  ;;  %v3712_v10 = vld [vmem:[%s5854_s4 + $0xc] sm:$0xf0] }
 0x42e   : > { %v5018_v32 = vadd.f32 %v1421_v38, %v1420_v37  ;;  %v1418_v16 = vmul.f32 0.5, %v3870_v30  ;;  %v3426_v37 = vld [vmem:[%s5854_s4 + $0x98] sm:$0xf0]  ;;  %v3400_v30 = vld [vmem:[%s5854_s4 + $0x60] sm:$0xf]  ;;  %v5896_v20 = vld [vmem:[#allocation24_spill] sm:$0xff] }
 0x42f   : > { %v3429_v38 = vor.u32 %v3727_v28, %v3426_v37 }
 0x430   : > { %3871 = vtanh.f32 %v5018_v32  ;;  %v1419_v7 = vadd.f32 0.5, %v1418_v16  ;;  %v3724_v16 = vld [vmem:[%s5854_s4 + $0x6c] sm:$0xf0] }
 0x431   : > { %v3401_v5 = vor.u32 %v3724_v16, %v3400_v30  ;;  %v3710_v16 = vld [vmem:[%s5854_s4 + $0x4] sm:$0xf] }
 0x436   : > { %v3872_v25 = vpop.eup %3871 }
 0x437   : > { %v5021_v0 = vmul.f32 %v3872_v25, %v1419_v7  ;;  %v3722_v7 = vld [vmem:[%s5854_s4 + $0x64] sm:$0xf] }
 0x439   : > { %v1434_v18 = vpack.c.bf16 %v5021_v0, %v5021_v0 }
 0x43b   : > { %1443 = vmatmul.bf16.vlgmr.msra.gmra.mxu0 %v1434_v18  ;;  %1456 = vmatmul.bf16.vlgmr.msra.gmra.mxu1 %v1434_v18 }
 0x43c   : > { %1469 = vmatmul.bf16.vlgmr.msra.gmra.mxu2 %v1434_v18  ;;  %1482 = vmatmul.bf16.vlgmr.msrb.gmra.mxu3 %v1434_v18 }
 0x43d   : > { %1841 = vmatpush.bf16.msra.mxu0 %v3465_v43  ;;  %1870 = vmatpush.bf16.msra.mxu1 %v3469_v14  ;;  %v3725_v43 = vld [vmem:[%s5854_s4 + $0x74] sm:$0xf0] }
 0x43e   : > { %1899 = vmatpush.bf16.msra.mxu2 %v3473_v55  ;;  %1928 = vmatpush.bf16.msrb.mxu3 %v3477_v15  ;;  %v3405_v55 = vor.u32 %v3722_v7, %v3402_v52  ;;  %v3409_v13 = vor.u32 %v3725_v43, %v3408_v1  ;;  %v3410_v15 = vld [vmem:[%s5854_s4 + $0x78] sm:$0xf0]  ;;  %v3354_v7 = vld [vmem:[%s5854_s4 + $0x10] sm:$0xf0]  ;;  %v3353_v43 = vor.u32 %v3712_v10, %v3352_v9  ;;  %v3584_v10 = vld [vmem:[#allocation4 + $0xc8] sm:$0xf] }
 0x43f   : > { %v3413_v29 = vor.u32 %v3723_v59, %v3410_v15  ;;  %v3362_v52 = vld [vmem:[%s5854_s4 + $0x18] sm:$0xf0] }
 0x441   : > { %1842 = vmatpush.bf16.msra.mxu0 %v3449_v19  ;;  %1871 = vmatpush.bf16.msra.mxu1 %v3453_v35  ;;  %v3718_v19 = vld [vmem:[%s5854_s4 + $0x44] sm:$0xf]  ;;  %v3385_v35 = vor.u32 %v3720_v23, %v3384_v49 }
 0x442   : > { %1900 = vmatpush.bf16.msra.mxu2 %v3457_v44  ;;  %1929 = vmatpush.bf16.msrb.mxu3 %v3461_v31  ;;  %v3389_v44 = vor.u32 %v3718_v19, %v3386_v8  ;;  %v3393_v31 = vor.u32 %v3721_v63, %v3392_v53 }
 0x445   : > { %1843 = vmatpush.bf16.msra.mxu0 %v3433_v56  ;;  %1872 = vmatpush.bf16.msra.mxu1 %v3437_v40  ;;  %v3397_v56 = vor.u32 %v3719_v41, %v3394_v46  ;;  %v3369_v40 = vor.u32 %v3716_v11, %v3368_v12  ;;  %v3592_v46 = vld [vmem:[#allocation4 + $0xe0] sm:$0xf]  ;;  %v3772_v12 = vld [vmem:[#allocation4 + $0xec] sm:$0xf0] }
 0x446   : > { %1901 = vmatpush.bf16.msra.mxu2 %v3441_v42  ;;  %1930 = vmatpush.bf16.msrb.mxu3 %v3445_v51  ;;  %v3376_v42 = vld [vmem:[%s5854_s4 + $0x28] sm:$0xf]  ;;  %v5231_v11 = vor.u32 %v3772_v12, %v3592_v46  ;;  %v3755_v46 = vld [vmem:[#allocation4 + $0x6c] sm:$0xf]  ;;  %v5898_v12 = vld [vmem:[#allocation11_spill] sm:$0xff] }
 0x447   : > { %v3377_v2 = vor.u32 %v3717_v47, %v3376_v42 }
 0x449   : > { %1844 = vmatpush.bf16.msra.mxu0 %v3417_v3  ;;  %1873 = vmatpush.bf16.msra.mxu1 %v3421_v21  ;;  %v3378_v3 = vld [vmem:[%s5854_s4 + $0x38] sm:$0xf0] }
 0x44a   : > { %1902 = vmatpush.bf16.msra.mxu2 %v3425_v27  ;;  %1931 = vmatpush.bf16.msrb.mxu3 %v3429_v38  ;;  %v5897_v27 = vld [vmem:[#allocation15_spill] sm:$0xff]  ;;  %v3381_v30 = vor.u32 %v3715_v50, %v3378_v3  ;;  %v3771_v50 = vld [vmem:[#allocation4 + $0xec] sm:$0xf] }
 0x44d   : > { %1845 = vmatpush.bf16.msra.mxu0 %v3401_v5  ;;  %1874 = vmatpush.bf16.msra.mxu1 %v3405_v55  ;;  %v3711_v5 = vld [vmem:[%s5854_s4 + $0xc] sm:$0xf] }
 0x44e   : > { %1903 = vmatpush.bf16.msra.mxu2 %v3409_v13  ;;  %1932 = vmatpush.bf16.msrb.mxu3 %v3413_v29  ;;  %v3365_v13 = vor.u32 %v3711_v5, %v3362_v52  ;;  %v3765_v5 = vld [vmem:[#allocation4 + $0xb4] sm:$0xf0] }
 0x451   : > { %1846 = vmatpush.bf16.msra.mxu0 %v3385_v35  ;;  %1875 = vmatpush.bf16.msra.mxu1 %v3389_v44 }
 0x452   : > { %1904 = vmatpush.bf16.msra.mxu2 %v3393_v31  ;;  %1933 = vmatpush.bf16.msrb.mxu3 %v3397_v56  ;;  %v3770_v56 = vld [vmem:[#allocation4 + $0xe4] sm:$0xf] }
 0x453   : > { %v5233_v42 = vor.u32 %v3770_v56, %v3594_v24  ;;  %v644_v56 = vadd.f32 %v5898_v12, %v4704_v58  ;;  %v5899_v24 = vld [vmem:[#allocation25_spill] sm:$0xff] }
 0x455   : > { %1847 = vmatpush.bf16.msra.mxu0 %v3369_v40  ;;  %1876 = vmatpush.bf16.msra.mxu1 %v3373_v61  ;;  %v3773_v40 = vld [vmem:[#allocation4 + $0xf4] sm:$0xf0]  ;;  %v3766_v61 = vld [vmem:[#allocation4 + $0xc4] sm:$0xf] }
 0x456   : > { %1905 = vmatpush.bf16.msra.mxu2 %v3377_v2  ;;  %1934 = vmatpush.bf16.msrb.mxu3 %v3381_v30  ;;  %v5235_v47 = vor.u32 %v3773_v40, %v3600_v34  ;;  %v3578_v2 = vld [vmem:[#allocation4 + $0xd0] sm:$0xf0]  ;;  %v673_v34 = vadd.f32 %v5899_v24, %v4742_v33  ;;  %v3753_v33 = vld [vmem:[#allocation4 + $0x54] sm:$0xf0] }
 0x457   : > { %v5244_v9 = vor.u32 %v3766_v61, %v3578_v2 }
 0x459   : > { %1848 = vmatpush.bf16.msra.mxu0 %v3353_v43  ;;  %v1669_v43 = vpack.c.bf16 %v4929_v48, %v4881_v62  ;;  %v3758_v62 = vld [vmem:[#allocation4 + $0x84] sm:$0xf] }
 0x45a   : > { %1935 = vmatpush.bf16.msrb.mxu3 %v3365_v13  ;;  %v3760_v13 = vld [vmem:[#allocation4 + $0x8c] sm:$0xf0] }
 0x4b8   : > { %v1444_v25 = vpop.f32.mrf.mxu0  ;;  %v1457_v18 = vpop.f32.mrf.mxu1 }
 0x4b9   : > { %v1487_v36 = vadd.f32 %v1444_v25, %v5894_v39  ;;  %v1488_v14 = vadd.f32 %v1457_v18, %v5895_v6  ;;  %v3360_v25 = vld [vmem:[%s5854_s4 + $0x8] sm:$0xf]  ;;  %v3713_v18 = vld [vmem:[%s5854_s4 + $0x14] sm:$0xf0] }
 0x4ba   : > { %v3361_v6 = vor.u32 %v3713_v18, %v3360_v25  ;;  %v3568_v25 = vld [vmem:[#allocation4 + $0xa8] sm:$0xf] }
 0x4bb   : > { %v1491_v17 = vmul.f32 0.5, %v1487_v36  ;;  %v1495_v26 = vmul.f32 0.5, %v1488_v14  ;;  %v3357_v36 = vor.u32 %v3710_v16, %v3354_v7  ;;  %v3762_v16 = vld [vmem:[#allocation4 + $0xa4] sm:$0xf]  ;;  %v3562_v7 = vld [vmem:[#allocation4 + $0xb0] sm:$0xf0] }
 0x4bc   : > { %1906 = vmatpush.bf16.msra.mxu2 %v3361_v6  ;;  %v5256_v52 = vor.u32 %v3762_v16, %v3562_v7  ;;  %v3570_v6 = vld [vmem:[#allocation4 + $0xb8] sm:$0xf0] }
 0x4bd   : > { %3873 = vtanh.f32 %v1491_v17  ;;  %1877 = vmatpush.bf16.msra.mxu1 %v3357_v36  ;;  %v3763_v36 = vld [vmem:[#allocation4 + $0xac] sm:$0xf]  ;;  %v3522_v16 = vld [vmem:[#allocation4 + $0x58] sm:$0xf0] }
 0x4be   : > { %3875 = vtanh.f32 %v1495_v26 }
 0x4bf   : > { %v1470_v51 = vpop.f32.mrf.mxu2  ;;  %v1483_v60 = vpop.f32.mrf.mxu3 }
 0x4c0   : > { %v1489_v21 = vadd.f32 %v1470_v51, %v5896_v20  ;;  %v1490_v28 = vadd.f32 %v1483_v60, %v5897_v27  ;;  %v1446_v37 = vpop.f32.mrf.mxu0  ;;  %v1459_v38 = vpop.f32.mrf.mxu1  ;;  %v3602_v51 = vld [vmem:[#allocation4 + $0xf8] sm:$0xf0]  ;;  %v3576_v60 = vld [vmem:[#allocation4 + $0xc0] sm:$0xf]  ;;  %v3769_v20 = vld [vmem:[#allocation4 + $0xd4] sm:$0xf0] }
 0x4c1   : > { %v5247_v27 = vor.u32 %v3769_v20, %v3584_v10  ;;  %v3560_v37 = vld [vmem:[#allocation4 + $0xa0] sm:$0xf]  ;;  %v3764_v38 = vld [vmem:[#allocation4 + $0xac] sm:$0xf0]  ;;  %v3750_v10 = vld [vmem:[#allocation4 + $0x44] sm:$0xf] }
 0x4c2   : > { %3877 = vtanh.f32 %v1489_v21  ;;  %v1500_v1 = vmul.f32 0.5, %v1490_v28  ;;  %v3767_v21 = vld [vmem:[#allocation4 + $0xcc] sm:$0xf]  ;;  %v3586_v28 = vld [vmem:[#allocation4 + $0xd8] sm:$0xf0]  ;;  %v5252_v18 = vor.u32 %v3764_v38, %v3560_v37 }
 0x4c3   : > { %v3874_v39 = vpop.eup %3873  ;;  %v5249_v30 = vor.u32 %v3767_v21, %v3586_v28  ;;  %v3514_v20 = vld [vmem:[#allocation4 + $0x50] sm:$0xf0]  ;;  %v3520_v21 = vld [vmem:[#allocation4 + $0x48] sm:$0xf]  ;;  %v3751_v38 = vld [vmem:[#allocation4 + $0x4c] sm:$0xf] }
 0x4c4   : > { %v3876_v14 = vpop.eup %3875  ;;  %v1493_v55 = vmul.f32 0.5, %v3874_v39  ;;  %3879 = vtanh.f32 %v1500_v1  ;;  %v5258_v1 = vor.u32 %v3765_v5, %v3568_v25  ;;  %v1670_v39 = vpack.c.bf16 %v5021_v0, %v4973_v22  ;;  %v3759_v0 = vld [vmem:[#allocation4 + $0x8c] sm:$0xf]  ;;  %v3496_v5 = vld [vmem:[#allocation4 + $0x20] sm:$0xf] }
 0x4c5   : > { %v1497_v59 = vmul.f32 0.5, %v3876_v14  ;;  %v5268_v14 = vor.u32 %v3763_v36, %v3570_v6  ;;  %v5300_v7 = vor.u32 %v3750_v10, %v3514_v20  ;;  %v5302_v25 = vor.u32 %v3753_v33, %v3520_v21  ;;  %v3745_v10 = vld [vmem:[#allocation4 + $0x14] sm:$0xf0]  ;;  %v3490_v33 = vld [vmem:[#allocation4 + $0x18] sm:$0xf0] }
 0x4c6   : > { %v1494_v15 = vadd.f32 0.5, %v1493_v55  ;;  %v3544_v55 = vld [vmem:[#allocation4 + $0x80] sm:$0xf] }
 0x4c7   : > { %v1498_v49 = vadd.f32 0.5, %v1497_v59  ;;  %v1472_v29 = vpop.f32.mrf.mxu2  ;;  %v1485_v23 = vpop.f32.mrf.mxu3  ;;  %v5271_v48 = vor.u32 %v3760_v13, %v3544_v55  ;;  %v3546_v59 = vld [vmem:[#allocation4 + $0x90] sm:$0xf0]  ;;  %v5305_v55 = vor.u32 %v3751_v38, %v3522_v16 }
 0x4c8   : > { %v3878_v19 = vpop.eup %3877  ;;  %v5273_v29 = vor.u32 %v3758_v62, %v3546_v59  ;;  %v3554_v23 = vld [vmem:[#allocation4 + $0x98] sm:$0xf0]  ;;  %v3498_v13 = vld [vmem:[#allocation4 + $0x30] sm:$0xf0]  ;;  %v3504_v62 = vld [vmem:[#allocation4 + $0x28] sm:$0xf] }
 0x4c9   : > { %v1504_v8 = vmul.f32 %v1498_v49, %v5018_v32  ;;  %v1505_v17 = vmul.f32 %v3878_v19, %v1494_v15  ;;  %v1668_v32 = vpack.c.bf16 %v4837_v54, %v4789_v57  ;;  %v5238_v57 = vor.u32 %v3771_v50, %v3602_v51  ;;  %v3768_v54 = vld [vmem:[#allocation4 + $0xcc] sm:$0xf0]  ;;  %v3552_v15 = vld [vmem:[#allocation4 + $0x88] sm:$0xf]  ;;  %v3761_v49 = vld [vmem:[#allocation4 + $0x94] sm:$0xf0] }
 0x4ca   : > { %v3880_v26 = vpop.eup %3879  ;;  %v5242_v3 = vor.u32 %v3768_v54, %v3576_v60  ;;  %v5275_v22 = vor.u32 %v3761_v49, %v3552_v15  ;;  %v3528_v19 = vld [vmem:[#allocation4 + $0x60] sm:$0xf]  ;;  %v3538_v50 = vld [vmem:[#allocation4 + $0x78] sm:$0xf0]  ;;  %v3752_v60 = vld [vmem:[#allocation4 + $0x4c] sm:$0xf0] }
 0x4cb   : > { %v5222_v35 = vadd.f32 %v1505_v17, %v1504_v8  ;;  %v1502_v44 = vmul.f32 0.5, %v3880_v26  ;;  %v5278_v8 = vor.u32 %v3759_v0, %v3554_v23  ;;  %v3756_v17 = vld [vmem:[#allocation4 + $0x6c] sm:$0xf0]  ;;  %v3754_v26 = vld [vmem:[#allocation4 + $0x64] sm:$0xf]  ;;  %v5293_v2 = vor.u32 %v3755_v46, %v3538_v50  ;;  %v5900_v0 = vld [vmem:[#allocation18_spill] sm:$0xff] }
 0x4cc   : > { %v3512_v51 = vld [vmem:[#allocation4 + $0x40] sm:$0xf]  ;;  %v3749_v59 = vld [vmem:[#allocation4 + $0x34] sm:$0xf0]  ;;  %v3747_v15 = vld [vmem:[#allocation4 + $0x2c] sm:$0xf]  ;;  %v731_v23 = vadd.f32 %v5900_v0, %v4721_v4 }
 0x4cd   : > { %3881 = vtanh.f32 %v5222_v35  ;;  %v1503_v53 = vadd.f32 0.5, %v1502_v44  ;;  %v3530_v44 = vld [vmem:[#allocation4 + $0x70] sm:$0xf0]  ;;  %v5296_v58 = vor.u32 %v3752_v60, %v3512_v51  ;;  %v3506_v49 = vld [vmem:[#allocation4 + $0x38] sm:$0xf0] }
 0x4ce   : > { %v5321_v4 = vor.u32 %v3747_v15, %v3506_v49  ;;  %v3744_v50 = vld [vmem:[#allocation4 + $0xc] sm:$0xf0]  ;;  %v3742_v51 = vld [vmem:[#allocation4 + $0x4] sm:$0xf] }
 0x4d3   : > { %v3882_v63 = vpop.eup %3881 }
 0x4d4   : > { %v5225_v31 = vmul.f32 %v3882_v63, %v1503_v53  ;;  %v5282_v53 = vor.u32 %v3756_v17, %v3528_v19  ;;  %v5284_v63 = vor.u32 %v3754_v26, %v3530_v44  ;;  %v5901_v17 = vld [vmem:[#allocation26_spill] sm:$0xff] }
 0x4d5   : > { %v702_v26 = vadd.f32 %v5901_v17, %v4749_v45  ;;  %v3480_v45 = vld [vmem:[#allocation4] sm:$0xf] }
 0x4d6   : > { %v1518_v41 = vpack.c.bf16 %v5225_v31, %v5225_v31  ;;  %v5324_v60 = vor.u32 %v3744_v50, %v3480_v45 }
 0x4d8   : > { %1527 = vmatmul.bf16.vlgmr.msrb.gmra.mxu0 %v1518_v41  ;;  %1540 = vmatmul.bf16.vlgmr.msrb.gmra.mxu1 %v1518_v41 }
 0x4d9   : > { %1553 = vmatmul.bf16.vlgmr.msrb.gmra.mxu2 %v1518_v41  ;;  %1566 = vmatmul.bf16.vlgmr.msra.gmra.mxu3 %v1518_v41  ;;  %v3536_v41 = vld [vmem:[#allocation4 + $0x68] sm:$0xf] }
 0x4da   : > { %2153 = vmatpush.bf16.msrb.mxu0 %v5231_v11  ;;  %2166 = vmatpush.bf16.msrb.mxu1 %v5233_v42 }
 0x4db   : > { %2179 = vmatpush.bf16.msrb.mxu2 %v5235_v47  ;;  %2192 = vmatpush.bf16.msra.mxu3 %v5238_v57 }
 0x4de   : > { %2154 = vmatpush.bf16.msrb.mxu0 %v5242_v3  ;;  %2167 = vmatpush.bf16.msrb.mxu1 %v5244_v9 }
 0x4df   : > { %2180 = vmatpush.bf16.msrb.mxu2 %v5247_v27  ;;  %2193 = vmatpush.bf16.msra.mxu3 %v5249_v30 }
 0x4e2   : > { %2155 = vmatpush.bf16.msrb.mxu0 %v5252_v18  ;;  %2168 = vmatpush.bf16.msrb.mxu1 %v5256_v52 }
 0x4e3   : > { %2181 = vmatpush.bf16.msrb.mxu2 %v5258_v1  ;;  %2194 = vmatpush.bf16.msra.mxu3 %v5268_v14 }
 0x4e6   : > { %2156 = vmatpush.bf16.msrb.mxu0 %v5271_v48  ;;  %2169 = vmatpush.bf16.msrb.mxu1 %v5273_v29 }
 0x4e7   : > { %2182 = vmatpush.bf16.msrb.mxu2 %v5275_v22  ;;  %2195 = vmatpush.bf16.msra.mxu3 %v5278_v8 }
 0x4e8   : > { %1849 = vmatmul.bf16.vlgmr.msra.gmra.mxu0 %v1668_v32  ;;  %1878 = vmatmul.bf16.vlgmr.msra.gmra.mxu1 %v1668_v32 }
 0x4e9   : > { %1907 = vmatmul.bf16.vlgmr.msra.gmra.mxu2 %v1668_v32  ;;  %1936 = vmatmul.bf16.vlgmr.msrb.gmra.mxu3 %v1668_v32  ;;  %v3757_v32 = vld [vmem:[#allocation4 + $0x74] sm:$0xf0] }
 0x4ea   : > { %v5291_v40 = vor.u32 %v3757_v32, %v3536_v41  ;;  %2157 = vmatpush.bf16.msrb.mxu0 %v5282_v53  ;;  %2170 = vmatpush.bf16.msrb.mxu1 %v5284_v63  ;;  %v5318_v41 = vor.u32 %v3749_v59, %v3504_v62 }
 0x4eb   : > { %2196 = vmatpush.bf16.msra.mxu3 %v5293_v2 }
 0x4ec   : > { %2183 = vmatpush.bf16.msrb.mxu2 %v5291_v40 }
 0x4ee   : > { %2158 = vmatpush.bf16.msrb.mxu0 %v5296_v58  ;;  %2171 = vmatpush.bf16.msrb.mxu1 %v5300_v7 }
 0x4ef   : > { %2197 = vmatpush.bf16.msra.mxu3 %v5305_v55 }
 0x4f0   : > { %2184 = vmatpush.bf16.msrb.mxu2 %v5302_v25 }
 0x4f3   : > { %2198 = vmatpush.bf16.msra.mxu3 %v5321_v4 }
 0x4f4   : > { %2185 = vmatpush.bf16.msrb.mxu2 %v5318_v41 }
 0x4f8   : > { %1854 = vmatmul.bf16.gmra.mxu0 %v1669_v43  ;;  %1883 = vmatmul.bf16.gmra.mxu1 %v1669_v43 }
 0x4f9   : > { %1912 = vmatmul.bf16.gmra.mxu2 %v1669_v43  ;;  %1941 = vmatmul.bf16.gmra.mxu3 %v1669_v43  ;;  %v3748_v43 = vld [vmem:[#allocation4 + $0x2c] sm:$0xf0] }
 0x4fa   : > { %v5310_v19 = vor.u32 %v3748_v43, %v3496_v5 }
 0x4fc   : > { %2159 = vmatpush.bf16.msrb.mxu0 %v5310_v19 }
 0x500   : > { %2160 = vmatpush.bf16.msrb.mxu0 %v5324_v60 }
 0x504   : > { %2233 = vmatpush.bf16.msra.mxu0 %v5231_v11 }
 0x508   : > { %1859 = vmatmul.bf16.gmra.mxu0 %v1670_v39  ;;  %1888 = vmatmul.bf16.gmra.mxu1 %v1670_v39 }
 0x509   : > { %1917 = vmatmul.bf16.gmra.mxu2 %v1670_v39  ;;  %1946 = vmatmul.bf16.gmra.mxu3 %v1670_v39  ;;  %v3746_v39 = vld [vmem:[#allocation4 + $0x24] sm:$0xf] }
 0x50a   : > { %v5316_v44 = vor.u32 %v3746_v39, %v3498_v13  ;;  %2234 = vmatpush.bf16.msra.mxu0 %v5242_v3 }
 0x50c   : > { %2172 = vmatpush.bf16.msrb.mxu1 %v5316_v44 }
 0x50e   : > { %2235 = vmatpush.bf16.msra.mxu0 %v5252_v18 }
 0x512   : > { %2236 = vmatpush.bf16.msra.mxu0 %v5271_v48 }
 0x516   : > { %2237 = vmatpush.bf16.msra.mxu0 %v5282_v53 }
 0x51a   : > { %2238 = vmatpush.bf16.msra.mxu0 %v5296_v58 }
 0x51e   : > { %2239 = vmatpush.bf16.msra.mxu0 %v5310_v19 }
 0x522   : > { %2240 = vmatpush.bf16.msra.mxu0 %v5324_v60 }
 0x555   : > { %v1528_v54 = vpop.f32.mrf.mxu0  ;;  %v1541_v61 = vpop.f32.mrf.mxu1 }
 0x556   : > { %v1571_v28 = vadd.f32 %v1528_v54, %v644_v56  ;;  %v1572_v37 = vadd.f32 %v1541_v61, %v673_v34  ;;  %v3482_v54 = vld [vmem:[#allocation4 + $0x10] sm:$0xf0]  ;;  %v3488_v61 = vld [vmem:[#allocation4 + $0x8] sm:$0xf] }
 0x557   : > { %v5328_v21 = vor.u32 %v3742_v51, %v3482_v54 }
 0x558   : > { %v1575_v36 = vmul.f32 0.5, %v1571_v28  ;;  %v1579_v6 = vmul.f32 0.5, %v1572_v37  ;;  %v5330_v28 = vor.u32 %v3745_v10, %v3488_v61  ;;  %v3743_v37 = vld [vmem:[#allocation4 + $0xc] sm:$0xf] }
 0x559   : > { %v5333_v16 = vor.u32 %v3743_v37, %v3490_v33  ;;  %2173 = vmatpush.bf16.msrb.mxu1 %v5328_v21 }
 0x55a   : > { %3883 = vtanh.f32 %v1575_v36  ;;  %2186 = vmatpush.bf16.msrb.mxu2 %v5330_v28 }
 0x55b   : > { %3885 = vtanh.f32 %v1579_v6  ;;  %2199 = vmatpush.bf16.msra.mxu3 %v5333_v16 }
 0x55c   : > { %v1554_v32 = vpop.f32.mrf.mxu2  ;;  %v1567_v46 = vpop.f32.mrf.mxu3 }
 0x55d   : > { %v1573_v12 = vadd.f32 %v1554_v32, %v702_v26  ;;  %v1574_v56 = vadd.f32 %v1567_v46, %v731_v23  ;;  %v1530_v24 = vpop.f32.mrf.mxu0  ;;  %v1543_v34 = vpop.f32.mrf.mxu1  ;;  %2246 = vmatpush.bf16.msra.mxu1 %v5233_v42 }
 0x55e   : > { %2259 = vmatpush.bf16.msra.mxu2 %v5235_v47 }
 0x55f   : > { %3887 = vtanh.f32 %v1573_v12  ;;  %v1584_v20 = vmul.f32 0.5, %v1574_v56  ;;  %2272 = vmatpush.bf16.msrb.mxu3 %v5238_v57 }
 0x560   : > { %v3884_v38 = vpop.eup %3883 }
 0x561   : > { %v3886_v5 = vpop.eup %3885  ;;  %v1577_v43 = vmul.f32 0.5, %v3884_v38  ;;  %3889 = vtanh.f32 %v1584_v20  ;;  %2247 = vmatpush.bf16.msra.mxu1 %v5244_v9 }
 0x562   : > { %v1581_v39 = vmul.f32 0.5, %v3886_v5  ;;  %2260 = vmatpush.bf16.msra.mxu2 %v5247_v27 }
 0x563   : > { %v1578_v36 = vadd.f32 0.5, %v1577_v43  ;;  %2273 = vmatpush.bf16.msrb.mxu3 %v5249_v30 }
 0x564   : > { %v1582_v6 = vadd.f32 0.5, %v1581_v39  ;;  %v1556_v13 = vpop.f32.mrf.mxu2  ;;  %v1569_v62 = vpop.f32.mrf.mxu3 }
 0x565   : > { %v3888_v59 = vpop.eup %3887  ;;  %2248 = vmatpush.bf16.msra.mxu1 %v5256_v52  ;;  %v1850_v12 = vpop.f32.mrf.mxu0 }
 0x566   : > { %v1588_v15 = vmul.f32 %v1582_v6, %v5222_v35  ;;  %v1589_v49 = vmul.f32 %v3888_v59, %v1578_v36  ;;  %2261 = vmatpush.bf16.msra.mxu2 %v5258_v1  ;;  %v1879_v56 = vpop.f32.mrf.mxu1 }
 0x567   : > { %v3890_v0 = vpop.eup %3889  ;;  %2274 = vmatpush.bf16.msrb.mxu3 %v5268_v14 }
 0x568   : > { %v1590_v23 = vadd.f32 %v1589_v49, %v1588_v15  ;;  %v1586_v17 = vmul.f32 0.5, %v3890_v0 }
 0x569   : > { %2249 = vmatpush.bf16.msra.mxu1 %v5273_v29 }
 0x56a   : > { %3891 = vtanh.f32 %v1590_v23  ;;  %v1587_v35 = vadd.f32 0.5, %v1586_v17  ;;  %2262 = vmatpush.bf16.msra.mxu2 %v5275_v22 }
 0x56b   : > { %2275 = vmatpush.bf16.msrb.mxu3 %v5278_v8 }
 0x56c   : > { %v1908_v24 = vpop.f32.mrf.mxu2  ;;  %v1937_v34 = vpop.f32.mrf.mxu3 }
 0x56d   : > { %2250 = vmatpush.bf16.msra.mxu1 %v5284_v63  ;;  %v5409_v45 = vpop.f32.mrf.mxu0 }
 0x56e   : > { %2263 = vmatpush.bf16.msra.mxu2 %v5291_v40  ;;  %v5411_v50 = vpop.f32.mrf.mxu1 }
 0x56f   : > { %2276 = vmatpush.bf16.msrb.mxu3 %v5293_v2 }
 0x570   : > { %v3892_v26 = vpop.eup %3891 }
 0x571   : > { %v1592_v32 = vmul.f32 %v3892_v26, %v1587_v35  ;;  %2251 = vmatpush.bf16.msra.mxu1 %v5300_v7  ;;  %v1659_v26 = vld [vmem:[%s5856_s6] sm:$0xf] }
 0x572   : > { %2264 = vmatpush.bf16.msra.mxu2 %v5302_v25 }
 0x573   : > { %v1671_v46 = vpack.c.bf16 %v1592_v32, %v5225_v31  ;;  %2277 = vmatpush.bf16.msrb.mxu3 %v5305_v55  ;;  %v5902_v31 = vmov 0  }
 0x574   : > { %v5413_v51 = vpop.f32.mrf.mxu2  ;;  %v5415_v54 = vpop.f32.mrf.mxu3 }
 0x575   : > { %1864 = vmatmul.bf16.gmra.mxu0 %v1671_v46  ;;  %1893 = vmatmul.bf16.gmra.mxu1 %v1671_v46  ;;  %v5417_v61 = vpop.f32.mrf.mxu0 }
 0x576   : > { %1922 = vmatmul.bf16.gmra.mxu2 %v1671_v46  ;;  %1951 = vmatmul.bf16.gmra.mxu3 %v1671_v46  ;;  %v5419_v10 = vpop.f32.mrf.mxu1 }
 0x577   : > { %2252 = vmatpush.bf16.msra.mxu1 %v5316_v44  ;;  %2265 = vmatpush.bf16.msra.mxu2 %v5318_v41 }
 0x578   : > { %2278 = vmatpush.bf16.msrb.mxu3 %v5321_v4 }
 0x57b   : > { %2253 = vmatpush.bf16.msra.mxu1 %v5328_v21  ;;  %2266 = vmatpush.bf16.msra.mxu2 %v5330_v28 }
 0x57c   : > { %2279 = vmatpush.bf16.msrb.mxu3 %v5333_v16  ;;  %v5421_v20 = vpop.f32.mrf.mxu2  ;;  %v5423_v37 = vpop.f32.mrf.mxu3 }
 0x57d   : > { %5903 = vst [vmem:[#allocation10_spill] sm:$0xff] %v5421_v20  ;;  %v5425_v33 = vpop.f32.mrf.mxu0 }
 0x57e   : > { %5904 = vst [vmem:[#allocation16_spill] sm:$0xff] %v5423_v37  ;;  %v5427_v38 = vpop.f32.mrf.mxu1 }
 0x57f   : > { %5905 = vst [vmem:[#allocation12_spill] sm:$0xff] %v5425_v33 }
 0x580   : > { %5906 = vst [vmem:[#allocation17_spill] sm:$0xff] %v5427_v38 }
 0x584   : > { %v5429_v5 = vpop.f32.mrf.mxu2  ;;  %v5431_v43 = vpop.f32.mrf.mxu3 }
 0x585   : > { %2161 = vmatmul.bf16.vlgmr.msrb.gmra.mxu0 %v5902_v31  ;;  %2174 = vmatmul.bf16.vlgmr.msrb.gmra.mxu1 %v5902_v31  ;;  %5907 = vst [vmem:[#allocation7_spill] sm:$0xff] %v5429_v5  ;;  %v5433_v39 = vpop.f32.mrf.mxu0 }
 0x586   : > { %2187 = vmatmul.bf16.vlgmr.msrb.gmra.mxu2 %v5902_v31  ;;  %2200 = vmatmul.bf16.vlgmr.msra.gmra.mxu3 %v5902_v31  ;;  %5908 = vst [vmem:[#allocation19_spill] sm:$0xff] %v5431_v43  ;;  %v5435_v36 = vpop.f32.mrf.mxu1  ;;  %v5464_v31 = vperm.slane %v1659_v26, 0 }
 0x587   : > { %2313 = vmatpush.bf16.msrb.mxu0 %v5231_v11  ;;  %2326 = vmatpush.bf16.msrb.mxu1 %v5233_v42  ;;  %5909 = vst [vmem:[#allocation20_spill] sm:$0xff] %v5433_v39 }
 0x588   : > { %2339 = vmatpush.bf16.msrb.mxu2 %v5235_v47  ;;  %2352 = vmatpush.bf16.msra.mxu3 %v5238_v57  ;;  %5910 = vst [vmem:[#allocation13_spill] sm:$0xff] %v5435_v36 }
 0x58b   : > { %2314 = vmatpush.bf16.msrb.mxu0 %v5242_v3  ;;  %2327 = vmatpush.bf16.msrb.mxu1 %v5244_v9 }
 0x58c   : > { %2340 = vmatpush.bf16.msrb.mxu2 %v5247_v27  ;;  %2353 = vmatpush.bf16.msra.mxu3 %v5249_v30  ;;  %v5437_v6 = vpop.f32.mrf.mxu2  ;;  %v5439_v13 = vpop.f32.mrf.mxu3 }
 0x58d   : > { %5911 = vst [vmem:[#allocation8_spill] sm:$0xff] %v5437_v6  ;;  %v5441_v62 = vpop.f32.mrf.mxu0  ;;  %v5474_v6 = vperm.slane %v1659_v26, 2 }
 0x58e   : > { %5912 = vst [vmem:[#allocation21_spill] sm:$0xff] %v5439_v13  ;;  %v5443_v59 = vpop.f32.mrf.mxu1 }
 0x58f   : > { %2315 = vmatpush.bf16.msrb.mxu0 %v5252_v18  ;;  %2328 = vmatpush.bf16.msrb.mxu1 %v5256_v52  ;;  %5913 = vst [vmem:[#allocation14_spill] sm:$0xff] %v5441_v62  ;;  %v1909_v39 = vadd.f32 %v1908_v24, %v5474_v6 }
 0x590   : > { %2341 = vmatpush.bf16.msrb.mxu2 %v5258_v1  ;;  %2354 = vmatpush.bf16.msra.mxu3 %v5268_v14  ;;  %5914 = vst [vmem:[#allocation22_spill] sm:$0xff] %v5443_v59 }
 0x593   : > { %2316 = vmatpush.bf16.msrb.mxu0 %v5271_v48  ;;  %2329 = vmatpush.bf16.msrb.mxu1 %v5273_v29 }
 0x594   : > { %2342 = vmatpush.bf16.msrb.mxu2 %v5275_v22  ;;  %2355 = vmatpush.bf16.msra.mxu3 %v5278_v8  ;;  %v5445_v15 = vpop.f32.mrf.mxu2  ;;  %v5447_v49 = vpop.f32.mrf.mxu3 }
 0x595   : > { %5915 = vst [vmem:[#allocation9_spill] sm:$0xff] %v5445_v15  ;;  %v5466_v15 = vperm.slane %v1659_v26, 1 }
 0x596   : > { %5916 = vst [vmem:[#allocation23_spill] sm:$0xff] %v5447_v49 }
 0x597   : > { %2317 = vmatpush.bf16.msrb.mxu0 %v5282_v53  ;;  %2330 = vmatpush.bf16.msrb.mxu1 %v5284_v63 }
 0x598   : > { %2343 = vmatpush.bf16.msrb.mxu2 %v5291_v40  ;;  %2356 = vmatpush.bf16.msra.mxu3 %v5293_v2 }
 0x59b   : > { %2318 = vmatpush.bf16.msrb.mxu0 %v5296_v58  ;;  %2331 = vmatpush.bf16.msrb.mxu1 %v5300_v7 }
 0x59c   : > { %2344 = vmatpush.bf16.msrb.mxu2 %v5302_v25  ;;  %2357 = vmatpush.bf16.msra.mxu3 %v5305_v55 }
 0x59f   : > { %2319 = vmatpush.bf16.msrb.mxu0 %v5310_v19  ;;  %2332 = vmatpush.bf16.msrb.mxu1 %v5316_v44 }
 0x5a0   : > { %2345 = vmatpush.bf16.msrb.mxu2 %v5318_v41  ;;  %2358 = vmatpush.bf16.msra.mxu3 %v5321_v4 }
 0x5a3   : > { %2320 = vmatpush.bf16.msrb.mxu0 %v5324_v60  ;;  %2333 = vmatpush.bf16.msrb.mxu1 %v5328_v21 }
 0x5a4   : > { %2346 = vmatpush.bf16.msrb.mxu2 %v5330_v28  ;;  %2359 = vmatpush.bf16.msra.mxu3 %v5333_v16 }
 0x5f2   : > { %v5449_v0 = vpop.f32.mrf.mxu0  ;;  %v5451_v23 = vpop.f32.mrf.mxu1 }
 0x5f3   : > { %5917 = vst [vmem:[#allocation24_spill] sm:$0xff] %v5449_v0  ;;  %v1851_v0 = vadd.f32 %v1850_v12, %v5464_v31 }
 0x5f4   : > { %5918 = vst [vmem:[#allocation15_spill] sm:$0xff] %v5451_v23  ;;  %v1880_v23 = vadd.f32 %v1879_v56, %v5466_v15 }
 0x5f9   : > { %v5453_v17 = vpop.f32.mrf.mxu2  ;;  %v5455_v35 = vpop.f32.mrf.mxu3 }
 0x5fa   : > { %5919 = vst [vmem:[#allocation11_spill] sm:$0xff] %v5453_v17  ;;  %v5460_v32 = vpop.f32.mrf.mxu0  ;;  %v5462_v46 = vpop.f32.mrf.mxu1 }
 0x5fb   : > { %5920 = vst [vmem:[#allocation25_spill] sm:$0xff] %v5455_v35 }
 0x5fc   : > { %5921 = vst [vmem:[#allocation18_spill] sm:$0xff] %v5460_v32  ;;  %v5476_v32 = vperm.slane %v1659_v26, 3 }
 0x5fd   : > { %5922 = vst [vmem:[#allocation26_spill] sm:$0xff] %v5462_v46 }
 0x5fe   : > { %v1938_v12 = vadd.f32 %v1937_v34, %v5476_v32 }
 0x601   : > { %v5470_v49 = vpop.f32.mrf.mxu2  ;;  %v5472_v17 = vpop.f32.mrf.mxu3 }
 0x602   : > { %5923 = vst [vmem:[#allocation27_spill] sm:$0xff] %v5470_v49  ;;  %v2162_v35 = vpop.f32.mrf.mxu0  ;;  %v2175_v59 = vpop.f32.mrf.mxu1 }
 0x603   : > { %5924 = vst [vmem:[#allocation28_spill] sm:$0xff] %v5472_v17  ;;  %v2205_v62 = vadd.f32 %v2162_v35, %v1851_v0  ;;  %v2206_v13 = vadd.f32 %v2175_v59, %v1880_v23 }
 0x605   : > { %v2209_v46 = vmul.f32 0.5, %v2205_v62  ;;  %v2213_v36 = vmul.f32 0.5, %v2206_v13 }
 0x607   : > { %3893 = vtanh.f32 %v2209_v46 }
 0x608   : > { %3895 = vtanh.f32 %v2213_v36 }
 0x609   : > { %v2188_v56 = vpop.f32.mrf.mxu2  ;;  %v2201_v49 = vpop.f32.mrf.mxu3 }
 0x60a   : > { %v2207_v43 = vadd.f32 %v2188_v56, %v1909_v39  ;;  %v2208_v17 = vadd.f32 %v2201_v49, %v1938_v12  ;;  %v2164_v5 = vpop.f32.mrf.mxu0  ;;  %v2177_v38 = vpop.f32.mrf.mxu1 }
 0x60c   : > { %3897 = vtanh.f32 %v2207_v43  ;;  %v2218_v59 = vmul.f32 0.5, %v2208_v17 }
 0x60d   : > { %v3894_v0 = vpop.eup %3893 }
 0x60e   : > { %v3896_v23 = vpop.eup %3895  ;;  %v2211_v35 = vmul.f32 0.5, %v3894_v0  ;;  %3899 = vtanh.f32 %v2218_v59 }
 0x60f   : > { %v2215_v26 = vmul.f32 0.5, %v3896_v23 }
 0x610   : > { %v2212_v13 = vadd.f32 0.5, %v2211_v35  ;;  %v1911_v35 = vadd.f32 %v5413_v51, %v5474_v6 }
 0x611   : > { %v2216_v62 = vadd.f32 0.5, %v2215_v26  ;;  %v2190_v46 = vpop.f32.mrf.mxu2  ;;  %v2203_v24 = vpop.f32.mrf.mxu3  ;;  %v1940_v26 = vadd.f32 %v5415_v54, %v5476_v32 }
 0x612   : > { %v3898_v33 = vpop.eup %3897 }
 0x613   : > { %v2222_v34 = vmul.f32 0.0, %v2216_v62  ;;  %v2223_v36 = vmul.f32 %v3898_v33, %v2212_v13  ;;  %v1882_v33 = vadd.f32 %v5411_v50, %v5466_v15 }
 0x614   : > { %v3900_v37 = vpop.eup %3899 }
 0x615   : > { %v5480_v20 = vadd.f32 %v2223_v36, %v2222_v34  ;;  %v2220_v38 = vmul.f32 0.5, %v3900_v37  ;;  %v1853_v37 = vadd.f32 %v5409_v45, %v5464_v31 }
 0x617   : > { %3901 = vtanh.f32 %v5480_v20  ;;  %v2221_v5 = vadd.f32 0.5, %v2220_v38 }
 0x61d   : > { %v3902_v43 = vpop.eup %3901 }
 0x61e   : > { %v5483_v39 = vmul.f32 %v3902_v43, %v2221_v5 }
 0x620   : > { %v2232_v49 = vpack.c.bf16 %v5483_v39, %v5483_v39 }
 0x622   : > { %2241 = vmatmul.bf16.vlgmr.msra.gmra.mxu0 %v2232_v49  ;;  %2254 = vmatmul.bf16.vlgmr.msra.gmra.mxu1 %v2232_v49 }
 0x623   : > { %2267 = vmatmul.bf16.vlgmr.msra.gmra.mxu2 %v2232_v49  ;;  %2280 = vmatmul.bf16.vlgmr.msrb.gmra.mxu3 %v2232_v49 }
 0x624   : > { %2393 = vmatpush.bf16.msra.mxu0 %v5231_v11  ;;  %2406 = vmatpush.bf16.msra.mxu1 %v5233_v42 }
 0x625   : > { %2419 = vmatpush.bf16.msra.mxu2 %v5235_v47  ;;  %2432 = vmatpush.bf16.msrb.mxu3 %v5238_v57 }
 0x628   : > { %2394 = vmatpush.bf16.msra.mxu0 %v5242_v3  ;;  %2407 = vmatpush.bf16.msra.mxu1 %v5244_v9 }
 0x629   : > { %2420 = vmatpush.bf16.msra.mxu2 %v5247_v27  ;;  %2433 = vmatpush.bf16.msrb.mxu3 %v5249_v30 }
 0x62c   : > { %2395 = vmatpush.bf16.msra.mxu0 %v5252_v18  ;;  %2408 = vmatpush.bf16.msra.mxu1 %v5256_v52 }
 0x62d   : > { %2421 = vmatpush.bf16.msra.mxu2 %v5258_v1  ;;  %2434 = vmatpush.bf16.msrb.mxu3 %v5268_v14 }
 0x630   : > { %2396 = vmatpush.bf16.msra.mxu0 %v5271_v48  ;;  %2409 = vmatpush.bf16.msra.mxu1 %v5273_v29 }
 0x631   : > { %2422 = vmatpush.bf16.msra.mxu2 %v5275_v22  ;;  %2435 = vmatpush.bf16.msrb.mxu3 %v5278_v8 }
 0x634   : > { %2397 = vmatpush.bf16.msra.mxu0 %v5282_v53  ;;  %2410 = vmatpush.bf16.msra.mxu1 %v5284_v63 }
 0x635   : > { %2423 = vmatpush.bf16.msra.mxu2 %v5291_v40  ;;  %2436 = vmatpush.bf16.msrb.mxu3 %v5293_v2 }
 0x638   : > { %2398 = vmatpush.bf16.msra.mxu0 %v5296_v58  ;;  %2411 = vmatpush.bf16.msra.mxu1 %v5300_v7 }
 0x639   : > { %2424 = vmatpush.bf16.msra.mxu2 %v5302_v25  ;;  %2437 = vmatpush.bf16.msrb.mxu3 %v5305_v55 }
 0x63c   : > { %2399 = vmatpush.bf16.msra.mxu0 %v5310_v19  ;;  %2412 = vmatpush.bf16.msra.mxu1 %v5316_v44 }
 0x63d   : > { %2425 = vmatpush.bf16.msra.mxu2 %v5318_v41  ;;  %2438 = vmatpush.bf16.msrb.mxu3 %v5321_v4 }
 0x640   : > { %2400 = vmatpush.bf16.msra.mxu0 %v5324_v60  ;;  %2413 = vmatpush.bf16.msra.mxu1 %v5328_v21 }
 0x641   : > { %2426 = vmatpush.bf16.msra.mxu2 %v5330_v28  ;;  %2439 = vmatpush.bf16.msrb.mxu3 %v5333_v16 }
 0x69f   : > { %v2242_v17 = vpop.f32.mrf.mxu0  ;;  %v2255_v12 = vpop.f32.mrf.mxu1 }
 0x6a0   : > { %v2285_v56 = vadd.f32 %v2242_v17, %v1853_v37  ;;  %v2286_v59 = vadd.f32 %v2255_v12, %v1882_v33 }
 0x6a2   : > { %v2289_v0 = vmul.f32 0.5, %v2285_v56  ;;  %v2293_v23 = vmul.f32 0.5, %v2286_v59 }
 0x6a4   : > { %3903 = vtanh.f32 %v2289_v0 }
 0x6a5   : > { %3905 = vtanh.f32 %v2293_v23 }
 0x6a6   : > { %v2268_v13 = vpop.f32.mrf.mxu2  ;;  %v2281_v62 = vpop.f32.mrf.mxu3 }
 0x6a7   : > { %v2287_v45 = vadd.f32 %v2268_v13, %v1911_v35  ;;  %v2288_v46 = vadd.f32 %v2281_v62, %v1940_v26  ;;  %v2244_v24 = vpop.f32.mrf.mxu0  ;;  %v2257_v50 = vpop.f32.mrf.mxu1  ;;  %v1885_v62 = vadd.f32 %v5419_v10, %v5466_v15 }
 0x6a9   : > { %3907 = vtanh.f32 %v2287_v45  ;;  %v2298_v34 = vmul.f32 0.5, %v2288_v46 }
 0x6aa   : > { %v3904_v36 = vpop.eup %3903 }
 0x6ab   : > { %v3906_v38 = vpop.eup %3905  ;;  %v2291_v5 = vmul.f32 0.5, %v3904_v36  ;;  %3909 = vtanh.f32 %v2298_v34 }
 0x6ac   : > { %v2295_v43 = vmul.f32 0.5, %v3906_v38  ;;  %v5925_v38 = vld [vmem:[#allocation10_spill] sm:$0xff] }
 0x6ad   : > { %v2292_v49 = vadd.f32 0.5, %v2291_v5  ;;  %v1914_v5 = vadd.f32 %v5925_v38, %v5474_v6 }
 0x6ae   : > { %v2296_v37 = vadd.f32 0.5, %v2295_v43  ;;  %v2270_v51 = vpop.f32.mrf.mxu2  ;;  %v2283_v33 = vpop.f32.mrf.mxu3  ;;  %v5926_v43 = vld [vmem:[#allocation16_spill] sm:$0xff] }
 0x6af   : > { %v3908_v17 = vpop.eup %3907 }
 0x6b0   : > { %v2302_v54 = vmul.f32 %v2296_v37, %v5480_v20  ;;  %v2303_v12 = vmul.f32 %v3908_v17, %v2292_v49  ;;  %v1856_v20 = vadd.f32 %v5417_v61, %v5464_v31  ;;  %v1943_v49 = vadd.f32 %v5926_v43, %v5476_v32 }
 0x6b1   : > { %v3910_v56 = vpop.eup %3909 }
 0x6b2   : > { %v5528_v59 = vadd.f32 %v2303_v12, %v2302_v54  ;;  %v2300_v0 = vmul.f32 0.5, %v3910_v56 }
 0x6b4   : > { %3911 = vtanh.f32 %v5528_v59  ;;  %v2301_v23 = vadd.f32 0.5, %v2300_v0 }
 0x6ba   : > { %v3912_v35 = vpop.eup %3911 }
 0x6bb   : > { %v5531_v26 = vmul.f32 %v3912_v35, %v2301_v23 }
 0x6bd   : > { %v2312_v13 = vpack.c.bf16 %v5531_v26, %v5531_v26 }
 0x6bf   : > { %2321 = vmatmul.bf16.vlgmr.msrb.gmra.mxu0 %v2312_v13  ;;  %2334 = vmatmul.bf16.vlgmr.msrb.gmra.mxu1 %v2312_v13 }
 0x6c0   : > { %2347 = vmatmul.bf16.vlgmr.msrb.gmra.mxu2 %v2312_v13  ;;  %2360 = vmatmul.bf16.vlgmr.msra.gmra.mxu3 %v2312_v13 }
 0x6c1   : > { %2473 = vmatpush.bf16.msrb.mxu0 %v5231_v11  ;;  %2486 = vmatpush.bf16.msrb.mxu1 %v5233_v42 }
 0x6c2   : > { %2499 = vmatpush.bf16.msrb.mxu2 %v5235_v47  ;;  %2512 = vmatpush.bf16.msra.mxu3 %v5238_v57 }
 0x6c5   : > { %2474 = vmatpush.bf16.msrb.mxu0 %v5242_v3  ;;  %2487 = vmatpush.bf16.msrb.mxu1 %v5244_v9 }
 0x6c6   : > { %2500 = vmatpush.bf16.msrb.mxu2 %v5247_v27  ;;  %2513 = vmatpush.bf16.msra.mxu3 %v5249_v30 }
 0x6c9   : > { %2475 = vmatpush.bf16.msrb.mxu0 %v5252_v18  ;;  %2488 = vmatpush.bf16.msrb.mxu1 %v5256_v52 }
 0x6ca   : > { %2501 = vmatpush.bf16.msrb.mxu2 %v5258_v1  ;;  %2514 = vmatpush.bf16.msra.mxu3 %v5268_v14 }
 0x6cd   : > { %2476 = vmatpush.bf16.msrb.mxu0 %v5271_v48  ;;  %2489 = vmatpush.bf16.msrb.mxu1 %v5273_v29 }
 0x6ce   : > { %2502 = vmatpush.bf16.msrb.mxu2 %v5275_v22  ;;  %2515 = vmatpush.bf16.msra.mxu3 %v5278_v8 }
 0x6d1   : > { %2477 = vmatpush.bf16.msrb.mxu0 %v5282_v53  ;;  %2490 = vmatpush.bf16.msrb.mxu1 %v5284_v63 }
 0x6d2   : > { %2503 = vmatpush.bf16.msrb.mxu2 %v5291_v40  ;;  %2516 = vmatpush.bf16.msra.mxu3 %v5293_v2 }
 0x6d5   : > { %2478 = vmatpush.bf16.msrb.mxu0 %v5296_v58  ;;  %2491 = vmatpush.bf16.msrb.mxu1 %v5300_v7 }
 0x6d6   : > { %2504 = vmatpush.bf16.msrb.mxu2 %v5302_v25  ;;  %2517 = vmatpush.bf16.msra.mxu3 %v5305_v55 }
 0x6d9   : > { %2479 = vmatpush.bf16.msrb.mxu0 %v5310_v19  ;;  %2492 = vmatpush.bf16.msrb.mxu1 %v5316_v44 }
 0x6da   : > { %2505 = vmatpush.bf16.msrb.mxu2 %v5318_v41  ;;  %2518 = vmatpush.bf16.msra.mxu3 %v5321_v4 }
 0x6dd   : > { %2480 = vmatpush.bf16.msrb.mxu0 %v5324_v60  ;;  %2493 = vmatpush.bf16.msrb.mxu1 %v5328_v21 }
 0x6de   : > { %2506 = vmatpush.bf16.msrb.mxu2 %v5330_v28  ;;  %2519 = vmatpush.bf16.msra.mxu3 %v5333_v16 }
 0x73c   : > { %v2322_v45 = vpop.f32.mrf.mxu0  ;;  %v2335_v46 = vpop.f32.mrf.mxu1 }
 0x73d   : > { %v2365_v24 = vadd.f32 %v2322_v45, %v1856_v20  ;;  %v2366_v50 = vadd.f32 %v2335_v46, %v1885_v62 }
 0x73f   : > { %v2369_v34 = vmul.f32 0.5, %v2365_v24  ;;  %v2373_v36 = vmul.f32 0.5, %v2366_v50 }
 0x741   : > { %3913 = vtanh.f32 %v2369_v34 }
 0x742   : > { %3915 = vtanh.f32 %v2373_v36 }
 0x743   : > { %v2348_v37 = vpop.f32.mrf.mxu2  ;;  %v2361_v51 = vpop.f32.mrf.mxu3 }
 0x744   : > { %v2367_v61 = vadd.f32 %v2348_v37, %v1914_v5  ;;  %v2368_v33 = vadd.f32 %v2361_v51, %v1943_v49  ;;  %v2324_v17 = vpop.f32.mrf.mxu0  ;;  %v2337_v10 = vpop.f32.mrf.mxu1  ;;  %v5928_v51 = vld [vmem:[#allocation17_spill] sm:$0xff] }
 0x746   : > { %3917 = vtanh.f32 %v2367_v61  ;;  %v2378_v54 = vmul.f32 0.5, %v2368_v33  ;;  %v1887_v61 = vadd.f32 %v5928_v51, %v5466_v15 }
 0x747   : > { %v3914_v12 = vpop.eup %3913 }
 0x748   : > { %v3916_v56 = vpop.eup %3915  ;;  %v2371_v0 = vmul.f32 0.5, %v3914_v12  ;;  %3919 = vtanh.f32 %v2378_v54 }
 0x749   : > { %v2375_v23 = vmul.f32 0.5, %v3916_v56 }
 0x74a   : > { %v2372_v35 = vadd.f32 0.5, %v2371_v0  ;;  %v5929_v0 = vld [vmem:[#allocation7_spill] sm:$0xff] }
 0x74b   : > { %v2376_v13 = vadd.f32 0.5, %v2375_v23  ;;  %v2350_v20 = vpop.f32.mrf.mxu2  ;;  %v2363_v62 = vpop.f32.mrf.mxu3  ;;  %v1916_v23 = vadd.f32 %v5929_v0, %v5474_v6 }
 0x74c   : > { %v3918_v45 = vpop.eup %3917 }
 0x74d   : > { %v2382_v46 = vmul.f32 %v2376_v13, %v5528_v59  ;;  %v2383_v24 = vmul.f32 %v3918_v45, %v2372_v35  ;;  %v5927_v59 = vld [vmem:[#allocation12_spill] sm:$0xff]  ;;  %v5930_v35 = vld [vmem:[#allocation19_spill] sm:$0xff] }
 0x74e   : > { %v3920_v50 = vpop.eup %3919  ;;  %v1858_v37 = vadd.f32 %v5927_v59, %v5464_v31  ;;  %v1945_v13 = vadd.f32 %v5930_v35, %v5476_v32 }
 0x74f   : > { %v5576_v34 = vadd.f32 %v2383_v24, %v2382_v46  ;;  %v2380_v36 = vmul.f32 0.5, %v3920_v50 }
 0x751   : > { %3921 = vtanh.f32 %v5576_v34  ;;  %v2381_v38 = vadd.f32 0.5, %v2380_v36 }
 0x757   : > { %v3922_v5 = vpop.eup %3921 }
 0x758   : > { %v5579_v43 = vmul.f32 %v3922_v5, %v2381_v38 }
 0x75a   : > { %v2392_v49 = vpack.c.bf16 %v5579_v43, %v5579_v43 }
 0x75c   : > { %2401 = vmatmul.bf16.vlgmr.msra.gmra.mxu0 %v2392_v49  ;;  %2414 = vmatmul.bf16.vlgmr.msra.gmra.mxu1 %v2392_v49 }
 0x75d   : > { %2427 = vmatmul.bf16.vlgmr.msra.gmra.mxu2 %v2392_v49  ;;  %2440 = vmatmul.bf16.vlgmr.msrb.gmra.mxu3 %v2392_v49 }
 0x75e   : > { %2553 = vmatpush.bf16.msra.mxu0 %v5231_v11  ;;  %2566 = vmatpush.bf16.msra.mxu1 %v5233_v42 }
 0x75f   : > { %2579 = vmatpush.bf16.msra.mxu2 %v5235_v47  ;;  %2592 = vmatpush.bf16.msrb.mxu3 %v5238_v57 }
 0x762   : > { %2554 = vmatpush.bf16.msra.mxu0 %v5242_v3  ;;  %2567 = vmatpush.bf16.msra.mxu1 %v5244_v9 }
 0x763   : > { %2580 = vmatpush.bf16.msra.mxu2 %v5247_v27  ;;  %2593 = vmatpush.bf16.msrb.mxu3 %v5249_v30 }
 0x766   : > { %2555 = vmatpush.bf16.msra.mxu0 %v5252_v18  ;;  %2568 = vmatpush.bf16.msra.mxu1 %v5256_v52 }
 0x767   : > { %2581 = vmatpush.bf16.msra.mxu2 %v5258_v1  ;;  %2594 = vmatpush.bf16.msrb.mxu3 %v5268_v14 }
 0x76a   : > { %2556 = vmatpush.bf16.msra.mxu0 %v5271_v48  ;;  %2569 = vmatpush.bf16.msra.mxu1 %v5273_v29 }
 0x76b   : > { %2582 = vmatpush.bf16.msra.mxu2 %v5275_v22  ;;  %2595 = vmatpush.bf16.msrb.mxu3 %v5278_v8 }
 0x76e   : > { %2557 = vmatpush.bf16.msra.mxu0 %v5282_v53  ;;  %2570 = vmatpush.bf16.msra.mxu1 %v5284_v63 }
 0x76f   : > { %2583 = vmatpush.bf16.msra.mxu2 %v5291_v40  ;;  %2596 = vmatpush.bf16.msrb.mxu3 %v5293_v2 }
 0x772   : > { %2558 = vmatpush.bf16.msra.mxu0 %v5296_v58  ;;  %2571 = vmatpush.bf16.msra.mxu1 %v5300_v7 }
 0x773   : > { %2584 = vmatpush.bf16.msra.mxu2 %v5302_v25  ;;  %2597 = vmatpush.bf16.msrb.mxu3 %v5305_v55 }
 0x776   : > { %2559 = vmatpush.bf16.msra.mxu0 %v5310_v19  ;;  %2572 = vmatpush.bf16.msra.mxu1 %v5316_v44 }
 0x777   : > { %2585 = vmatpush.bf16.msra.mxu2 %v5318_v41  ;;  %2598 = vmatpush.bf16.msrb.mxu3 %v5321_v4 }
 0x77a   : > { %2560 = vmatpush.bf16.msra.mxu0 %v5324_v60  ;;  %2573 = vmatpush.bf16.msra.mxu1 %v5328_v21 }
 0x77b   : > { %2586 = vmatpush.bf16.msra.mxu2 %v5330_v28  ;;  %2599 = vmatpush.bf16.msrb.mxu3 %v5333_v16 }
 0x7d9   : > { %v2402_v33 = vpop.f32.mrf.mxu0  ;;  %v2415_v17 = vpop.f32.mrf.mxu1 }
 0x7da   : > { %v2445_v10 = vadd.f32 %v2402_v33, %v1858_v37  ;;  %v2446_v54 = vadd.f32 %v2415_v17, %v1887_v61 }
 0x7dc   : > { %v2449_v12 = vmul.f32 0.5, %v2445_v10  ;;  %v2453_v56 = vmul.f32 0.5, %v2446_v54 }
 0x7de   : > { %3923 = vtanh.f32 %v2449_v12 }
 0x7df   : > { %3925 = vtanh.f32 %v2453_v56 }
 0x7e0   : > { %v2428_v20 = vpop.f32.mrf.mxu2  ;;  %v2441_v62 = vpop.f32.mrf.mxu3 }
 0x7e1   : > { %v2447_v45 = vadd.f32 %v2428_v20, %v1916_v23  ;;  %v2448_v46 = vadd.f32 %v2441_v62, %v1945_v13  ;;  %v2404_v24 = vpop.f32.mrf.mxu0  ;;  %v2417_v50 = vpop.f32.mrf.mxu1 }
 0x7e3   : > { %3927 = vtanh.f32 %v2447_v45  ;;  %v2458_v36 = vmul.f32 0.5, %v2448_v46  ;;  %v5932_v45 = vld [vmem:[#allocation13_spill] sm:$0xff] }
 0x7e4   : > { %v3924_v38 = vpop.eup %3923  ;;  %v1890_v46 = vadd.f32 %v5932_v45, %v5466_v15 }
 0x7e5   : > { %v3926_v5 = vpop.eup %3925  ;;  %v2451_v49 = vmul.f32 0.5, %v3924_v38  ;;  %3929 = vtanh.f32 %v2458_v36 }
 0x7e6   : > { %v2455_v59 = vmul.f32 0.5, %v3926_v5 }
 0x7e7   : > { %v2452_v37 = vadd.f32 0.5, %v2451_v49 }
 0x7e8   : > { %v2456_v51 = vadd.f32 0.5, %v2455_v59  ;;  %v2430_v61 = vpop.f32.mrf.mxu2  ;;  %v2443_v33 = vpop.f32.mrf.mxu3  ;;  %v5933_v59 = vld [vmem:[#allocation8_spill] sm:$0xff] }
 0x7e9   : > { %v3928_v17 = vpop.eup %3927 }
 0x7ea   : > { %v2462_v10 = vmul.f32 %v2456_v51, %v5576_v34  ;;  %v2463_v54 = vmul.f32 %v3928_v17, %v2452_v37  ;;  %v5931_v34 = vld [vmem:[#allocation20_spill] sm:$0xff]  ;;  %v1919_v37 = vadd.f32 %v5933_v59, %v5474_v6  ;;  %v5934_v51 = vld [vmem:[#allocation21_spill] sm:$0xff] }
 0x7eb   : > { %v3930_v12 = vpop.eup %3929  ;;  %v1861_v62 = vadd.f32 %v5931_v34, %v5464_v31  ;;  %v1948_v61 = vadd.f32 %v5934_v51, %v5476_v32 }
 0x7ec   : > { %v5624_v56 = vadd.f32 %v2463_v54, %v2462_v10  ;;  %v2460_v0 = vmul.f32 0.5, %v3930_v12 }
 0x7ee   : > { %3931 = vtanh.f32 %v5624_v56  ;;  %v2461_v23 = vadd.f32 0.5, %v2460_v0 }
 0x7f4   : > { %v3932_v35 = vpop.eup %3931 }
 0x7f5   : > { %v5627_v13 = vmul.f32 %v3932_v35, %v2461_v23 }
 0x7f7   : > { %v2472_v20 = vpack.c.bf16 %v5627_v13, %v5627_v13 }
 0x7f9   : > { %2481 = vmatmul.bf16.vlgmr.msrb.gmra.mxu0 %v2472_v20  ;;  %2494 = vmatmul.bf16.vlgmr.msrb.gmra.mxu1 %v2472_v20 }
 0x7fa   : > { %2507 = vmatmul.bf16.vlgmr.msrb.gmra.mxu2 %v2472_v20  ;;  %2520 = vmatmul.bf16.vlgmr.msra.gmra.mxu3 %v2472_v20 }
 0x7fb   : > { %2633 = vmatpush.bf16.msrb.mxu0 %v5231_v11  ;;  %2646 = vmatpush.bf16.msrb.mxu1 %v5233_v42 }
 0x7fc   : > { %2659 = vmatpush.bf16.msrb.mxu2 %v5235_v47  ;;  %2672 = vmatpush.bf16.msra.mxu3 %v5238_v57 }
 0x7ff   : > { %2634 = vmatpush.bf16.msrb.mxu0 %v5242_v3  ;;  %2647 = vmatpush.bf16.msrb.mxu1 %v5244_v9 }
 0x800   : > { %2660 = vmatpush.bf16.msrb.mxu2 %v5247_v27  ;;  %2673 = vmatpush.bf16.msra.mxu3 %v5249_v30 }
 0x803   : > { %2635 = vmatpush.bf16.msrb.mxu0 %v5252_v18  ;;  %2648 = vmatpush.bf16.msrb.mxu1 %v5256_v52 }
 0x804   : > { %2661 = vmatpush.bf16.msrb.mxu2 %v5258_v1  ;;  %2674 = vmatpush.bf16.msra.mxu3 %v5268_v14 }
 0x807   : > { %2636 = vmatpush.bf16.msrb.mxu0 %v5271_v48  ;;  %2649 = vmatpush.bf16.msrb.mxu1 %v5273_v29 }
 0x808   : > { %2662 = vmatpush.bf16.msrb.mxu2 %v5275_v22  ;;  %2675 = vmatpush.bf16.msra.mxu3 %v5278_v8 }
 0x80b   : > { %2637 = vmatpush.bf16.msrb.mxu0 %v5282_v53  ;;  %2650 = vmatpush.bf16.msrb.mxu1 %v5284_v63 }
 0x80c   : > { %2663 = vmatpush.bf16.msrb.mxu2 %v5291_v40  ;;  %2676 = vmatpush.bf16.msra.mxu3 %v5293_v2 }
 0x80f   : > { %2638 = vmatpush.bf16.msrb.mxu0 %v5296_v58  ;;  %2651 = vmatpush.bf16.msrb.mxu1 %v5300_v7 }
 0x810   : > { %2664 = vmatpush.bf16.msrb.mxu2 %v5302_v25  ;;  %2677 = vmatpush.bf16.msra.mxu3 %v5305_v55 }
 0x813   : > { %2639 = vmatpush.bf16.msrb.mxu0 %v5310_v19  ;;  %2652 = vmatpush.bf16.msrb.mxu1 %v5316_v44 }
 0x814   : > { %2665 = vmatpush.bf16.msrb.mxu2 %v5318_v41  ;;  %2678 = vmatpush.bf16.msra.mxu3 %v5321_v4 }
 0x817   : > { %2640 = vmatpush.bf16.msrb.mxu0 %v5324_v60  ;;  %2653 = vmatpush.bf16.msrb.mxu1 %v5328_v21 }
 0x818   : > { %2666 = vmatpush.bf16.msrb.mxu2 %v5330_v28  ;;  %2679 = vmatpush.bf16.msra.mxu3 %v5333_v16 }
 0x876   : > { %v2482_v24 = vpop.f32.mrf.mxu0  ;;  %v2495_v50 = vpop.f32.mrf.mxu1 }
 0x877   : > { %v2525_v36 = vadd.f32 %v2482_v24, %v1861_v62  ;;  %v2526_v38 = vadd.f32 %v2495_v50, %v1890_v46 }
 0x879   : > { %v2529_v5 = vmul.f32 0.5, %v2525_v36  ;;  %v2533_v49 = vmul.f32 0.5, %v2526_v38 }
 0x87b   : > { %3933 = vtanh.f32 %v2529_v5 }
 0x87c   : > { %3935 = vtanh.f32 %v2533_v49 }
 0x87d   : > { %v2508_v33 = vpop.f32.mrf.mxu2  ;;  %v2521_v17 = vpop.f32.mrf.mxu3 }
 0x87e   : > { %v2527_v10 = vadd.f32 %v2508_v33, %v1919_v37  ;;  %v2528_v54 = vadd.f32 %v2521_v17, %v1948_v61  ;;  %v2484_v12 = vpop.f32.mrf.mxu0  ;;  %v2497_v0 = vpop.f32.mrf.mxu1 }
 0x880   : > { %3937 = vtanh.f32 %v2527_v10  ;;  %v2538_v23 = vmul.f32 0.5, %v2528_v54 }
 0x881   : > { %v3934_v35 = vpop.eup %3933 }
 0x882   : > { %v3936_v20 = vpop.eup %3935  ;;  %v2531_v34 = vmul.f32 0.5, %v3934_v35  ;;  %3939 = vtanh.f32 %v2538_v23 }
 0x883   : > { %v2535_v62 = vmul.f32 0.5, %v3936_v20  ;;  %v3781_v20 = vld [vmem:[%s5857_s7 + $0x38] sm:$0xff] }
 0x884   : > { %v2532_v45 = vadd.f32 0.5, %v2531_v34  ;;  %v3780_v34 = vld [vmem:[%s5857_s7 + $0x30] sm:$0xff] }
 0x885   : > { %v2536_v46 = vadd.f32 0.5, %v2535_v62  ;;  %v2510_v24 = vpop.f32.mrf.mxu2  ;;  %v2523_v50 = vpop.f32.mrf.mxu3  ;;  %v3779_v62 = vld [vmem:[%s5857_s7 + $0x28] sm:$0xff] }
 0x886   : > { %v3938_v36 = vpop.eup %3937  ;;  %v5940_v50 = vld [vmem:[#allocation15_spill] sm:$0xff] }
 0x887   : > { %v2542_v38 = vmul.f32 %v2536_v46, %v5624_v56  ;;  %v2543_v5 = vmul.f32 %v3938_v36, %v2532_v45  ;;  %v3778_v45 = vld [vmem:[%s5857_s7 + $0x20] sm:$0xff]  ;;  %v5939_v46 = vld [vmem:[#allocation24_spill] sm:$0xff]  ;;  %v1895_v36 = vadd.f32 %v5940_v50, %v5466_v15 }
 0x888   : > { %v3940_v49 = vpop.eup %3939  ;;  %v1866_v24 = vadd.f32 %v5939_v46, %v5464_v31  ;;  %v5946_v46 = vld [vmem:[#allocation28_spill] sm:$0xff] }
 0x889   : > { %v5672_v59 = vadd.f32 %v2543_v5, %v2542_v38  ;;  %v2540_v37 = vmul.f32 0.5, %v3940_v49  ;;  %v3777_v49 = vld [vmem:[%s5857_s7 + $0x18] sm:$0xff] }
 0x88b   : > { %3941 = vtanh.f32 %v5672_v59  ;;  %v2541_v51 = vadd.f32 0.5, %v2540_v37 }
 0x891   : > { %v3942_v61 = vpop.eup %3941 }
 0x892   : > { %v5675_v33 = vmul.f32 %v3942_v61, %v2541_v51  ;;  %v3776_v51 = vld [vmem:[%s5857_s7 + $0x10] sm:$0xff] }
 0x894   : > { %v2552_v17 = vpack.c.bf16 %v5675_v33, %v5675_v33 }
 0x896   : > { %2561 = vmatmul.bf16.vlgmr.msra.gmra.mxu0 %v2552_v17  ;;  %2574 = vmatmul.bf16.vlgmr.msra.gmra.mxu1 %v2552_v17 }
 0x897   : > { %2587 = vmatmul.bf16.vlgmr.msra.gmra.mxu2 %v2552_v17  ;;  %2600 = vmatmul.bf16.vlgmr.msrb.gmra.mxu3 %v2552_v17 }
 0x898   : > { %2713 = vmatpush.bf16.msra.mxu0 %v5231_v11  ;;  %2726 = vmatpush.bf16.msra.mxu1 %v5233_v42  ;;  %v5935_v11 = vld [vmem:[#allocation14_spill] sm:$0xff] }
 0x899   : > { %2739 = vmatpush.bf16.msra.mxu2 %v5235_v47  ;;  %2752 = vmatpush.bf16.msrb.mxu3 %v5238_v57  ;;  %v1863_v42 = vadd.f32 %v5935_v11, %v5464_v31  ;;  %v5936_v47 = vld [vmem:[#allocation22_spill] sm:$0xff]  ;;  %v5941_v11 = vld [vmem:[#allocation11_spill] sm:$0xff] }
 0x89a   : > { %v1892_v57 = vadd.f32 %v5936_v47, %v5466_v15  ;;  %v5942_v47 = vld [vmem:[#allocation25_spill] sm:$0xff] }
 0x89c   : > { %2714 = vmatpush.bf16.msra.mxu0 %v5242_v3  ;;  %2727 = vmatpush.bf16.msra.mxu1 %v5244_v9 }
 0x89d   : > { %2740 = vmatpush.bf16.msra.mxu2 %v5247_v27  ;;  %2753 = vmatpush.bf16.msrb.mxu3 %v5249_v30 }
 0x8a0   : > { %2715 = vmatpush.bf16.msra.mxu0 %v5252_v18  ;;  %2728 = vmatpush.bf16.msra.mxu1 %v5256_v52 }
 0x8a1   : > { %2741 = vmatpush.bf16.msra.mxu2 %v5258_v1  ;;  %2754 = vmatpush.bf16.msrb.mxu3 %v5268_v14  ;;  %v5937_v1 = vld [vmem:[#allocation9_spill] sm:$0xff] }
 0x8a2   : > { %v1921_v14 = vadd.f32 %v5937_v1, %v5474_v6 }
 0x8a4   : > { %2716 = vmatpush.bf16.msra.mxu0 %v5271_v48  ;;  %2729 = vmatpush.bf16.msra.mxu1 %v5273_v29  ;;  %v5938_v48 = vld [vmem:[#allocation23_spill] sm:$0xff] }
 0x8a5   : > { %2742 = vmatpush.bf16.msra.mxu2 %v5275_v22  ;;  %2755 = vmatpush.bf16.msrb.mxu3 %v5278_v8  ;;  %v1950_v29 = vadd.f32 %v5938_v48, %v5476_v32  ;;  %v3774_v48 = vld [vmem:[%s5857_s7] sm:$0xff] }
 0x8a8   : > { %2717 = vmatpush.bf16.msra.mxu0 %v5282_v53  ;;  %2730 = vmatpush.bf16.msra.mxu1 %v5284_v63 }
 0x8a9   : > { %2743 = vmatpush.bf16.msra.mxu2 %v5291_v40  ;;  %2756 = vmatpush.bf16.msrb.mxu3 %v5293_v2 }
 0x8ac   : > { %2718 = vmatpush.bf16.msra.mxu0 %v5296_v58  ;;  %2731 = vmatpush.bf16.msra.mxu1 %v5300_v7 }
 0x8ad   : > { %2744 = vmatpush.bf16.msra.mxu2 %v5302_v25  ;;  %2757 = vmatpush.bf16.msrb.mxu3 %v5305_v55 }
 0x8b0   : > { %2719 = vmatpush.bf16.msra.mxu0 %v5310_v19  ;;  %2732 = vmatpush.bf16.msra.mxu1 %v5316_v44 }
 0x8b1   : > { %2745 = vmatpush.bf16.msra.mxu2 %v5318_v41  ;;  %2758 = vmatpush.bf16.msrb.mxu3 %v5321_v4 }
 0x8b4   : > { %2720 = vmatpush.bf16.msra.mxu0 %v5324_v60  ;;  %2733 = vmatpush.bf16.msra.mxu1 %v5328_v21 }
 0x8b5   : > { %2746 = vmatpush.bf16.msra.mxu2 %v5330_v28  ;;  %2759 = vmatpush.bf16.msrb.mxu3 %v5333_v16 }
 0x913   : > { %v2562_v3 = vpop.f32.mrf.mxu0  ;;  %v2575_v9 = vpop.f32.mrf.mxu1 }
 0x914   : > { %v2605_v27 = vadd.f32 %v2562_v3, %v1863_v42  ;;  %v2606_v30 = vadd.f32 %v2575_v9, %v1892_v57  ;;  %v1924_v42 = vadd.f32 %v5941_v11, %v5474_v6  ;;  %v1953_v57 = vadd.f32 %v5942_v47, %v5476_v32  ;;  %v3775_v3 = vld [vmem:[%s5857_s7 + $0x8] sm:$0xff] }
 0x916   : > { %v2609_v18 = vmul.f32 0.5, %v2605_v27  ;;  %v2613_v52 = vmul.f32 0.5, %v2606_v30 }
 0x918   : > { %3943 = vtanh.f32 %v2609_v18 }
 0x919   : > { %3945 = vtanh.f32 %v2613_v52 }
 0x91a   : > { %v2588_v22 = vpop.f32.mrf.mxu2  ;;  %v2601_v8 = vpop.f32.mrf.mxu3 }
 0x91b   : > { %v2607_v53 = vadd.f32 %v2588_v22, %v1921_v14  ;;  %v2608_v63 = vadd.f32 %v2601_v8, %v1950_v29  ;;  %v2564_v40 = vpop.f32.mrf.mxu0  ;;  %v2577_v2 = vpop.f32.mrf.mxu1 }
 0x91d   : > { %3947 = vtanh.f32 %v2607_v53  ;;  %v2618_v58 = vmul.f32 0.5, %v2608_v63 }
 0x91e   : > { %v3944_v7 = vpop.eup %3943 }
 0x91f   : > { %v3946_v25 = vpop.eup %3945  ;;  %v2611_v55 = vmul.f32 0.5, %v3944_v7  ;;  %3949 = vtanh.f32 %v2618_v58 }
 0x920   : > { %v2615_v19 = vmul.f32 0.5, %v3946_v25 }
 0x921   : > { %v2612_v44 = vadd.f32 0.5, %v2611_v55 }
 0x922   : > { %v2616_v41 = vadd.f32 0.5, %v2615_v19  ;;  %v2590_v4 = vpop.f32.mrf.mxu2  ;;  %v2603_v60 = vpop.f32.mrf.mxu3 }
 0x923   : > { %v3948_v21 = vpop.eup %3947 }
 0x924   : > { %v2622_v28 = vmul.f32 %v2616_v41, %v5672_v59  ;;  %v2623_v16 = vmul.f32 %v3948_v21, %v2612_v44 }
 0x925   : > { %v3950_v56 = vpop.eup %3949 }
 0x926   : > { %v2624_v10 = vadd.f32 %v2623_v16, %v2622_v28  ;;  %v2620_v54 = vmul.f32 0.5, %v3950_v56  ;;  %v2796_v16 = vpack.c.bf16 %v5531_v26, %v5483_v39  ;;  %v2797_v56 = vpack.c.bf16 %v5627_v13, %v5579_v43  ;;  %v5945_v43 = vld [vmem:[#allocation27_spill] sm:$0xff] }
 0x927   : > { %v1926_v13 = vadd.f32 %v5945_v43, %v5474_v6  ;;  %v3812_v6 = vld [vmem:[%s5858_s8] ss:$0 sm:$0xff] }
 0x928   : > { %3951 = vtanh.f32 %v2624_v10  ;;  %v2621_v12 = vadd.f32 0.5, %v2620_v54  ;;  %v5943_v54 = vld [vmem:[#allocation18_spill] sm:$0xff] }
 0x92e   : > { %v3952_v0 = vpop.eup %3951 }
 0x92f   : > { %v5720_v23 = vmul.f32 %v3952_v0, %v2621_v12  ;;  %v1868_v12 = vadd.f32 %v5943_v54, %v5464_v31  ;;  %v5944_v0 = vld [vmem:[#allocation26_spill] sm:$0xff] }
 0x931   : > { %v2632_v35 = vpack.c.bf16 %v5720_v23, %v5720_v23 }
 0x933   : > { %2641 = vmatmul.bf16.vlgmr.msrb.gmra.mxu0 %v2632_v35  ;;  %2654 = vmatmul.bf16.vlgmr.msrb.gmra.mxu1 %v2632_v35 }
 0x934   : > { %2667 = vmatmul.bf16.vlgmr.msrb.gmra.mxu2 %v2632_v35  ;;  %2680 = vmatmul.bf16.vlgmr.msra.gmra.mxu3 %v2632_v35  ;;  %v1897_v35 = vadd.f32 %v5944_v0, %v5466_v15 }
 0x935   : > { %2868 = vmatpush.bf16.msrb.mxu0 %v3781_v20 }
 0x939   : > { %2869 = vmatpush.bf16.msrb.mxu0 %v3780_v34 }
 0x93d   : > { %2870 = vmatpush.bf16.msrb.mxu0 %v3779_v62 }
 0x941   : > { %2871 = vmatpush.bf16.msrb.mxu0 %v3778_v45 }
 0x945   : > { %2872 = vmatpush.bf16.msrb.mxu0 %v3777_v49 }
 0x949   : > { %2873 = vmatpush.bf16.msrb.mxu0 %v3776_v51 }
 0x94d   : > { %2874 = vmatpush.bf16.msrb.mxu0 %v3775_v3 }
 0x951   : > { %2875 = vmatpush.bf16.msrb.mxu0 %v3774_v48 }
 0x9b0   : > { %v2642_v38 = vpop.f32.mrf.mxu0  ;;  %v2655_v5 = vpop.f32.mrf.mxu1 }
 0x9b1   : > { %v2685_v59 = vadd.f32 %v2642_v38, %v1866_v24  ;;  %v2686_v37 = vadd.f32 %v2655_v5, %v1895_v36 }
 0x9b3   : > { %v2689_v61 = vmul.f32 0.5, %v2685_v59  ;;  %v2693_v17 = vmul.f32 0.5, %v2686_v37 }
 0x9b5   : > { %3953 = vtanh.f32 %v2689_v61 }
 0x9b6   : > { %3955 = vtanh.f32 %v2693_v17 }
 0x9b7   : > { %v2668_v9 = vpop.f32.mrf.mxu2  ;;  %v2681_v27 = vpop.f32.mrf.mxu3 }
 0x9b8   : > { %v2687_v30 = vadd.f32 %v2668_v9, %v1924_v42  ;;  %v2688_v18 = vadd.f32 %v2681_v27, %v1953_v57  ;;  %v2644_v52 = vpop.f32.mrf.mxu0  ;;  %v2657_v1 = vpop.f32.mrf.mxu1 }
 0x9ba   : > { %3957 = vtanh.f32 %v2687_v30  ;;  %v2698_v14 = vmul.f32 0.5, %v2688_v18 }
 0x9bb   : > { %v3954_v29 = vpop.eup %3953 }
 0x9bc   : > { %v3956_v22 = vpop.eup %3955  ;;  %v2691_v8 = vmul.f32 0.5, %v3954_v29  ;;  %3959 = vtanh.f32 %v2698_v14 }
 0x9bd   : > { %v2695_v53 = vmul.f32 0.5, %v3956_v22 }
 0x9be   : > { %v2692_v63 = vadd.f32 0.5, %v2691_v8 }
 0x9bf   : > { %v2696_v40 = vadd.f32 0.5, %v2695_v53  ;;  %v2670_v2 = vpop.f32.mrf.mxu2  ;;  %v2683_v58 = vpop.f32.mrf.mxu3 }
 0x9c0   : > { %v3958_v7 = vpop.eup %3957 }
 0x9c1   : > { %v2702_v25 = vmul.f32 %v2696_v40, %v2624_v10  ;;  %v2703_v55 = vmul.f32 %v3958_v7, %v2692_v63  ;;  %v2798_v10 = vpack.c.bf16 %v5720_v23, %v5675_v33  ;;  %v1955_v33 = vadd.f32 %v5946_v46, %v5476_v32 }
 0x9c2   : > { %v3960_v19 = vpop.eup %3959 }
 0x9c3   : > { %v2704_v44 = vadd.f32 %v2703_v55, %v2702_v25  ;;  %v2700_v41 = vmul.f32 0.5, %v3960_v19 }
 0x9c5   : > { %3961 = vtanh.f32 %v2704_v44  ;;  %v2701_v4 = vadd.f32 0.5, %v2700_v41 }
 0x9cb   : > { %v3962_v60 = vpop.eup %3961 }
 0x9cc   : > { %v2706_v21 = vmul.f32 %v3962_v60, %v2701_v4 }
 0x9ce   : > { %v2712_v28 = vpack.c.bf16 %v2706_v21, %v2706_v21 }
 0x9d0   : > { %2721 = vmatmul.bf16.vlgmr.msra.gmra.mxu0 %v2712_v28  ;;  %2734 = vmatmul.bf16.vlgmr.msra.gmra.mxu1 %v2712_v28 }
 0x9d1   : > { %2747 = vmatmul.bf16.vlgmr.msra.gmra.mxu2 %v2712_v28  ;;  %2760 = vmatmul.bf16.vlgmr.msrb.gmra.mxu3 %v2712_v28 }
 0x9e0   : > { %2876 = vmatmul.bf16.vlgmr.msrb.gmra.mxu0 %v2796_v16 }
 0x9f0   : > { %2881 = vmatmul.bf16.gmra.mxu0 %v2797_v56 }
 0xa00   : > { %2886 = vmatmul.bf16.gmra.mxu0 %v2798_v10 }
 0xa4d   : > { %v2722_v20 = vpop.f32.mrf.mxu0  ;;  %v2735_v34 = vpop.f32.mrf.mxu1 }
 0xa4e   : > { %v2765_v62 = vadd.f32 %v2722_v20, %v1868_v12  ;;  %v2766_v45 = vadd.f32 %v2735_v34, %v1897_v35 }
 0xa50   : > { %v2769_v39 = vmul.f32 0.5, %v2765_v62  ;;  %v2773_v26 = vmul.f32 0.5, %v2766_v45 }
 0xa52   : > { %3963 = vtanh.f32 %v2769_v39 }
 0xa53   : > { %3965 = vtanh.f32 %v2773_v26 }
 0xa54   : > { %v2748_v23 = vpop.f32.mrf.mxu2  ;;  %v2761_v24 = vpop.f32.mrf.mxu3 }
 0xa55   : > { %v2767_v31 = vadd.f32 %v2748_v23, %v1926_v13  ;;  %v2768_v50 = vadd.f32 %v2761_v24, %v1955_v33  ;;  %v2724_v36 = vpop.f32.mrf.mxu0  ;;  %v2737_v15 = vpop.f32.mrf.mxu1 }
 0xa57   : > { %3967 = vtanh.f32 %v2767_v31  ;;  %v2778_v38 = vmul.f32 0.5, %v2768_v50 }
 0xa58   : > { %v3964_v5 = vpop.eup %3963 }
 0xa59   : > { %v3966_v49 = vpop.eup %3965  ;;  %v2771_v59 = vmul.f32 0.5, %v3964_v5  ;;  %3969 = vtanh.f32 %v2778_v38 }
 0xa5a   : > { %v2775_v37 = vmul.f32 0.5, %v3966_v49 }
 0xa5b   : > { %v2772_v51 = vadd.f32 0.5, %v2771_v59 }
 0xa5c   : > { %v2776_v32 = vadd.f32 0.5, %v2775_v37  ;;  %v2750_v61 = vpop.f32.mrf.mxu2  ;;  %v2763_v17 = vpop.f32.mrf.mxu3 }
 0xa5d   : > { %v3968_v11 = vpop.eup %3967  ;;  %v2877_v42 = vpop.f32.mrf.mxu0 }
 0xa5e   : > { %v2782_v47 = vmul.f32 %v2776_v32, %v2704_v44  ;;  %v2783_v57 = vmul.f32 %v3968_v11, %v2772_v51  ;;  %v5773_v3 = vadd.f32 %v3812_v6, %v2877_v42 }
 0xa5f   : > { %v3970_v9 = vpop.eup %3969 }
 0xa60   : > { %v2784_v27 = vadd.f32 %v2783_v57, %v2782_v47  ;;  %2897 = vmax.xlane.f32.xlu0 %v5773_v3  ;;  %v2780_v30 = vmul.f32 0.5, %v3970_v9 }
 0xa62   : > { %3971 = vtanh.f32 %v2784_v27  ;;  %v2781_v1 = vadd.f32 0.5, %v2780_v30 }
 0xa65   : > { %v2879_v18 = vpop.f32.mrf.mxu0 }
 0xa66   : > { %v5776_v52 = vadd.f32 %v3812_v6, %v2879_v18 }
 0xa68   : > { %v3972_v14 = vpop.eup %3971  ;;  %2899 = vmax.xlane.f32.xlu0 %v5776_v52 }
 0xa69   : > { %v2786_v48 = vmul.f32 %v3972_v14, %v2781_v1 }
 0xa6b   : > { %v2799_v29 = vpack.c.bf16 %v2786_v48, %v2706_v21 }
 0xa6d   : > { %2891 = vmatmul.bf16.gmra.mxu0 %v2799_v29  ;;  %v2882_v22 = vpop.f32.mrf.mxu0 }
 0xa6e   : > { %v5779_v8 = vadd.f32 %v3812_v6, %v2882_v22 }
 0xa70   : > { %2901 = vmax.xlane.f32.xlu1 %v5779_v8 }
 0xa75   : > { %v2884_v53 = vpop.f32.mrf.mxu0 }
 0xa76   : > { %v5782_v63 = vadd.f32 %v3812_v6, %v2884_v53 }
 0xa78   : > { %2903 = vmax.xlane.f32.xlu1 %v5782_v63 }
 0xa7d   : > { %v2887_v40 = vpop.f32.mrf.mxu0 }
 0xa7e   : > { %v5785_v2 = vadd.f32 %v3812_v6, %v2887_v40 }
 0xa80   : > { %2905 = vmax.xlane.f32.xlu2 %v5785_v2 }
 0xa85   : > { %v2889_v58 = vpop.f32.mrf.mxu0 }
 0xa86   : > { %v5788_v7 = vadd.f32 %v3812_v6, %v2889_v58 }
 0xa88   : > { %2907 = vmax.xlane.f32.xlu2 %v5788_v7 }
 0xad3   : > { %v2898_v25 = vpop.xlane.xlu0 %2897 }
 0xad4   : > { %v2913_v55 = vsub.f32 %v5773_v3, %v2898_v25 }
 0xad6   : > { %v2921_v19 = vmul.f32 1.442695, %v2913_v55 }
 0xad8   : > { %3973 = vpow2.f32 %v2921_v19 }
 0xadb   : > { %v5792_v41 = vpop.xlane.xlu0 %2899 }
 0xadc   : > { %v2914_v60 = vsub.f32 %v5776_v52, %v5792_v41 }
 0xade   : > { %v3974_v44 = vpop.eup %3973  ;;  %v2923_v21 = vmul.f32 1.442695, %v2914_v60 }
 0xadf   : > { %2937 = vadd.xlane.f32.xlu2 %v3974_v44 }
 0xae0   : > { %3975 = vpow2.f32 %v2923_v21 }
 0xae3   : > { %v5794_v4 = vpop.xlane.xlu1 %2901 }
 0xae4   : > { %v2915_v54 = vsub.f32 %v5779_v8, %v5794_v4 }
 0xae6   : > { %v2925_v0 = vmul.f32 1.442695, %v2915_v54  ;;  %v3976_v62 = vpop.eup %3975 }
 0xaea   : > { %v2892_v28 = vpop.f32.mrf.mxu0 }
 0xaeb   : > { %v5798_v16 = vadd.f32 %v3812_v6, %v2892_v28  ;;  %v5800_v56 = vpop.xlane.xlu1 %2903 }
 0xaec   : > { %v2916_v10 = vsub.f32 %v5782_v63, %v5800_v56 }
 0xaed   : > { %2909 = vmax.xlane.f32.xlu0 %v5798_v16 }
 0xaee   : > { %v2927_v12 = vmul.f32 1.442695, %v2916_v10 }
 0xaf0   : > { %3977 = vpow2.f32 %v2927_v12 }
 0xaf1   : > { %3979 = vpow2.f32 %v2925_v0 }
 0xaf2   : > { %v2894_v35 = vpop.f32.mrf.mxu0 }
 0xaf3   : > { %v5807_v20 = vadd.f32 %v3812_v6, %v2894_v35  ;;  %v5809_v34 = vpop.xlane.xlu2 %2905 }
 0xaf4   : > { %v2917_v45 = vsub.f32 %v5785_v2, %v5809_v34 }
 0xaf5   : > { %2911 = vmax.xlane.f32.xlu1 %v5807_v20  ;;  %2939 = vadd.xlane.f32.xlu0 %v3976_v62 }
 0xaf6   : > { %v3978_v39 = vpop.eup %3977  ;;  %v2929_v26 = vmul.f32 1.442695, %v2917_v45 }
 0xaf7   : > { %2943 = vadd.xlane.f32.xlu2 %v3978_v39  ;;  %v3980_v13 = vpop.eup %3979 }
 0xaf8   : > { %3981 = vpow2.f32 %v2929_v26 }
 0xafb   : > { %v5814_v43 = vpop.xlane.xlu2 %2907 }
 0xafc   : > { %v2918_v46 = vsub.f32 %v5788_v7, %v5814_v43 }
 0xafd   : > { %2941 = vadd.xlane.f32.xlu1 %v3980_v13 }
 0xafe   : > { %v3982_v33 = vpop.eup %3981  ;;  %v2931_v23 = vmul.f32 1.442695, %v2918_v46 }
 0xaff   : > { %2945 = vadd.xlane.f32.xlu0 %v3982_v33 }
 0xb00   : > { %3983 = vpow2.f32 %v2931_v23 }
 0xb06   : > { %v3984_v24 = vpop.eup %3983 }
 0xb07   : > { %2947 = vadd.xlane.f32.xlu1 %v3984_v24 }
 0xb52   : > { %v2938_v31 = vpop.xlane.xlu2 %2937 }
 0xb53   : > { %3985 = vlog2.f32 %v2938_v31 }
 0xb59   : > { %v3986_v50 = vpop.eup %3985 }
 0xb5a   : > { %v2954_v36 = vmul.f32 0.6931472, %v3986_v50 }
 0xb5c   : > { %v2969_v15 = vadd.f32 %v2954_v36, %v2898_v25 }
 0xb5e   : > { %v2977_v38 = vsub.f32 %v5773_v3, %v2969_v15 }
 0xb60   : > { %2985 = vst [vmem:[%s5822_s15] sm:$0xff] %v2977_v38  ;;  %v2910_v5 = vpop.xlane.xlu0 %2909 }
 0xb61   : > { %v2919_v49 = vsub.f32 %v5798_v16, %v2910_v5 }
 0xb63   : > { %v2933_v59 = vmul.f32 1.442695, %v2919_v49 }
 0xb65   : > { %3987 = vpow2.f32 %v2933_v59 }
 0xb68   : > { %v2912_v37 = vpop.xlane.xlu1 %2911  ;;  %v2940_v6 = vpop.xlane.xlu0 %2939 }
 0xb69   : > { %v2920_v51 = vsub.f32 %v5807_v20, %v2912_v37  ;;  %3989 = vlog2.f32 %v2940_v6 }
 0xb6a   : > { %v2944_v32 = vpop.xlane.xlu2 %2943 }
 0xb6b   : > { %v3988_v61 = vpop.eup %3987  ;;  %v2935_v17 = vmul.f32 1.442695, %v2920_v51  ;;  %3991 = vlog2.f32 %v2944_v32 }
 0xb6c   : > { %2949 = vadd.xlane.f32.xlu2 %v3988_v61 }
 0xb6d   : > { %3993 = vpow2.f32 %v2935_v17 }
 0xb6f   : > { %v3990_v11 = vpop.eup %3989 }
 0xb70   : > { %v2956_v42 = vmul.f32 0.6931472, %v3990_v11  ;;  %v2942_v47 = vpop.xlane.xlu1 %2941 }
 0xb71   : > { %v3992_v57 = vpop.eup %3991  ;;  %3995 = vlog2.f32 %v2942_v47 }
 0xb72   : > { %v2970_v3 = vadd.f32 %v2956_v42, %v5792_v41  ;;  %v2960_v9 = vmul.f32 0.6931472, %v3992_v57  ;;  %v2946_v27 = vpop.xlane.xlu0 %2945 }
 0xb73   : > { %v3994_v30 = vpop.eup %3993  ;;  %3997 = vlog2.f32 %v2946_v27 }
 0xb74   : > { %v2978_v18 = vsub.f32 %v5776_v52, %v2970_v3  ;;  %v2972_v1 = vadd.f32 %v2960_v9, %v5800_v56  ;;  %2951 = vadd.xlane.f32.xlu0 %v3994_v30 }
 0xb76   : > { %2986 = vst [vmem:[%s5822_s15 + $0x8] sm:$0xff] %v2978_v18  ;;  %v2980_v14 = vsub.f32 %v5782_v63, %v2972_v1 }
 0xb77   : > { %v3996_v48 = vpop.eup %3995 }
 0xb78   : > { %2988 = vst [vmem:[%s5822_s15 + $0x18] sm:$0xff] %v2980_v14  ;;  %v2958_v29 = vmul.f32 0.6931472, %v3996_v48 }
 0xb79   : > { %v3998_v22 = vpop.eup %3997 }
 0xb7a   : > { %v2971_v53 = vadd.f32 %v2958_v29, %v5794_v4  ;;  %v2962_v40 = vmul.f32 0.6931472, %v3998_v22  ;;  %v2948_v58 = vpop.xlane.xlu1 %2947 }
 0xb7b   : > { %3999 = vlog2.f32 %v2948_v58 }
 0xb7c   : > { %v2979_v25 = vsub.f32 %v5779_v8, %v2971_v53  ;;  %v2973_v52 = vadd.f32 %v2962_v40, %v5809_v34 }
 0xb7e   : > { %2987 = vst [vmem:[%s5822_s15 + $0x10] sm:$0xff] %v2979_v25  ;;  %v2981_v55 = vsub.f32 %v5785_v2, %v2973_v52 }
 0xb80   : > { %2989 = vst [vmem:[%s5822_s15 + $0x20] sm:$0xff] %v2981_v55 }
 0xb81   : > { %v4000_v63 = vpop.eup %3999 }
 0xb82   : > { %v2964_v19 = vmul.f32 0.6931472, %v4000_v63 }
 0xb84   : > { %v2974_v44 = vadd.f32 %v2964_v19, %v5814_v43 }
 0xb86   : > { %v2982_v41 = vsub.f32 %v5788_v7, %v2974_v44 }
 0xb88   : > { %2990 = vst [vmem:[%s5822_s15 + $0x28] sm:$0xff] %v2982_v41 }
 0xbdf   : > { %v2950_v4 = vpop.xlane.xlu2 %2949 }
 0xbe0   : > { %4001 = vlog2.f32 %v2950_v4 }
 0xbe6   : > { %v4002_v60 = vpop.eup %4001 }
 0xbe7   : > { %v2966_v21 = vmul.f32 0.6931472, %v4002_v60  ;;  %v2952_v8 = vpop.xlane.xlu0 %2951 }
 0xbe8   : > { %4003 = vlog2.f32 %v2952_v8 }
 0xbe9   : > { %v2975_v28 = vadd.f32 %v2966_v21, %v2910_v5 }
 0xbeb   : > { %v2983_v56 = vsub.f32 %v5798_v16, %v2975_v28 }
 0xbed   : > { %2991 = vst [vmem:[%s5822_s15 + $0x30] sm:$0xff] %v2983_v56 }
 0xbee   : > { %v4004_v2 = vpop.eup %4003 }
 0xbef   : > { %v2968_v10 = vmul.f32 0.6931472, %v4004_v2 }
 0xbf1   : > { %v2976_v54 = vadd.f32 %v2968_v10, %v2912_v37 }
 0xbf3   : > { %v2984_v12 = vsub.f32 %v5807_v20, %v2976_v54 }
 0xbf5   : > { %2992 = vst [vmem:[%s5822_s15 + $0x38] sm:$0xff] %v2984_v12 }
 0xbf6 PF: > { %s20_s30 = sadd.s32 1, %s4045_s30  }
 0xbf7   : > { %p17_p7 = scmp.ge.s32.totalorder %s20_s30, 4  }
 0xbf9   :  { %19 = sbr.rel (!%p17_p7) target bundleno = 1 (0x1), region = 106 }
 0xbfe   :  { %3014 = vsyncpa [#allocation5], 1 }
 0xbff   :  { %3016 = vsyncpa [#allocation5 + $0x1], 1 }

</bundles_post_ra>
